<compile_context>
chip_gen: v5e
topology: v5e:2x2
jax: 0.10.0
libtpu: 0.0.40
codegen_flags: <defaults>
</compile_context>

<pallas_src>
import functools

import jax
import jax.numpy as jnp
from jax.experimental import pallas as pl
from jax.experimental.pallas import tpu as pltpu


def _round_up(n, m):
    return ((n + m - 1) // m) * m


# Shapes up to this size are used as a single full-dim block (no padding, no
# extra pad/slice HBM copies).  512*512 f32 acc = 1 MiB, well inside VMEM.
_FULL_DIM_MAX = 512


@functools.lru_cache(maxsize=None)
def _mxu_tile_defaults():
    """(tm_max, tn_max, tk_max) per TPU generation.

    v5e has a 128x128 MXU -> 128-wide N/K tiles; v6e/v7x have 256-wide MXUs.
    """
    try:
        kind = jax.devices()[0].device_kind.lower()
    except Exception:  # pragma: no cover - CPU/interpret fallbacks
        kind = ""
    if ("v5 lite" in kind) or ("v5e" in kind) or ("v5litepod" in kind):
        return 256, 128, 128
    return 256, 256, 256


# -----------------------------------------------------------------------------
# Pallas kernel: tiled matmul + bias + optional LeakyReLU
#   out[i, j] = act( sum_k x[i, k] * w[k, j] + b[j] )
# -----------------------------------------------------------------------------
def _mm_bias_act_kernel(x_ref, w_ref, b_ref, o_ref, acc_ref, *, negative_slope):
    k = pl.program_id(2)

    @pl.when(k == 0)
    def _init():
        # Fold the bias into the accumulator init (one fewer add per K step).
        acc_ref[...] = jnp.broadcast_to(b_ref[...], acc_ref.shape)

    acc_ref[...] += jnp.dot(x_ref[...], w_ref[...],
                            preferred_element_type=jnp.float32)

    @pl.when(k == pl.num_programs(2) - 1)
    def _finalize():
        acc = acc_ref[...]
        if negative_slope is not None:
            acc = jnp.maximum(acc, negative_slope * acc)   # LeakyReLU, 1 VPU op
        o_ref[...] = acc.astype(o_ref.dtype)


def pallas_matmul_bias_act(x, w, b, negative_slope=None,
                           out_dtype=jnp.float32,
                           compute_dtype=jnp.bfloat16):
    """x: (M, K), w: (K, N), b: (N,) -> (M, N) in out_dtype."""
    M, K = x.shape
    K2, N = w.shape
    assert K == K2 and b.shape == (N,)
    tm_max, tn_max, tk_max = _mxu_tile_defaults()

    # --- N: keep the real width when small (full-dim block). Masked narrow
    #     stores beat writing 32x padded columns to HBM + a slice copy. ---
    if N <= _FULL_DIM_MAX:
        tn, Np = N, N
    else:
        tn = tn_max
        Np = _round_up(N, tn)

    # --- K: single full-dim contraction step when it fits; otherwise tile. ---
    if K <= _FULL_DIM_MAX:
        tk, Kp = K, K
    else:
        tk = tk_max
        Kp = _round_up(K, tk)

    # --- M: tile to minimize padded rows while keeping >= 2 parallel tiles
    #     (two TensorCores on v7x / megacore) once M is non-trivial. ---
    Mp8 = _round_up(M, 8)
    g = max(1, pl.cdiv(Mp8, tm_max))
    if g == 1 and Mp8 > 64:
        g = 2
    tm = _round_up(pl.cdiv(Mp8, g), 8)
    Mp = _round_up(M, tm)

    xp = x.astype(compute_dtype)
    if (Mp, Kp) != (M, K):
        xp = jnp.pad(xp, ((0, Mp - M), (0, Kp - K)))
    wp = w.astype(compute_dtype)
    if (Kp, Np) != (K, N):
        wp = jnp.pad(wp, ((0, Kp - K), (0, Np - N)))
    bp = b.astype(jnp.float32)
    if Np != N:
        bp = jnp.pad(bp, (0, Np - N))
    bp = bp.reshape(1, Np)

    grid = (Mp // tm, Np // tn, Kp // tk)
    itemsize_in = jnp.dtype(compute_dtype).itemsize
    itemsize_out = jnp.dtype(out_dtype).itemsize
    out = pl.pallas_call(
        functools.partial(_mm_bias_act_kernel, negative_slope=negative_slope),
        out_shape=jax.ShapeDtypeStruct((Mp, Np), out_dtype),
        grid=grid,
        in_specs=[
            pl.BlockSpec((tm, tk), lambda i, j, k: (i, k)),
            pl.BlockSpec((tk, tn), lambda i, j, k: (k, j)),
            pl.BlockSpec((1, tn), lambda i, j, k: (0, j)),
        ],
        out_specs=pl.BlockSpec((tm, tn), lambda i, j, k: (i, j)),
        scratch_shapes=[pltpu.VMEM((tm, tn), jnp.float32)],
        compiler_params=pltpu.CompilerParams(
            dimension_semantics=("parallel", "parallel", "arbitrary"),
            vmem_limit_bytes=32 * 1024 * 1024),
        cost_estimate=pl.CostEstimate(
            flops=2 * Mp * Np * Kp,
            transcendentals=0,
            bytes_accessed=(Mp * Kp + Kp * Np) * itemsize_in
                           + Mp * Np * itemsize_out),
    )(xp, wp, bp)
    if (Mp, Np) != (M, N):
        out = out[:M, :N]
    return out


# -----------------------------------------------------------------------------
# Conv2d (weight-norm weights), NHWC layout, via a "banded" weight matmul.
# The KW-tap gather over the frequency axis is folded into a sparse banded
# weight matrix (built once per layer in XLA from the tiny conv weights); only
# the KH time taps are stacked on the LHS.
# -----------------------------------------------------------------------------
def conv2d_wn_nhwc(x, w, b, stride, padding, negative_slope, out_dtype):
    """x: (B, H, W, Cin) NHWC; w: (Cout, Cin, KH, KW) (PyTorch layout)."""
    B, H, W, Cin = x.shape
    Cout, Cin2, KH, KW = w.shape
    assert Cin == Cin2
    sh, sw = stride
    ph, pw = padding
    Hout = (H + 2 * ph - KH) // sh + 1
    Wout = (W + 2 * pw - KW) // sw + 1
    Wp = W + 2 * pw

    xp = jnp.pad(x, ((0, 0), (ph, ph), (pw, pw), (0, 0)))
    # LHS: stack only the KH time taps -> (B*Hout, KH*Wp*Cin).
    lhs = jnp.stack([xp[:, i:i + sh * (Hout - 1) + 1:sh] for i in range(KH)],
                    axis=2)                                   # (B,Hout,KH,Wp,Cin)
    lhs = lhs.reshape(B * Hout, KH * Wp * Cin)

    # Banded weight: wb[i, win, ci, wout, co] = w[co, ci, i, j] iff win = sw*wout + j.
    f_out = jnp.arange(Wout)
    j = jnp.arange(KW)
    win = sw * f_out[:, None] + j[None, :]                    # (Wout, KW)
    onehot = (win[:, :, None] == jnp.arange(Wp)[None, None, :]).astype(w.dtype)
    wb = jnp.einsum('fjp,ocij->ipcfo', onehot, w)             # (KH,Wp,Cin,Wout,Cout)
    wb = wb.reshape(KH * Wp * Cin, Wout * Cout)
    bias = jnp.tile(b, Wout)                                  # column = f*Cout + co

    y = pallas_matmul_bias_act(lhs, wb, bias, negative_slope=negative_slope,
                               out_dtype=out_dtype)
    return y.reshape(B, Hout, Wout, Cout)


# -----------------------------------------------------------------------------
# STFT: torch.stft semantics (center=True reflect pad, periodic hann, onesided,
# not normalized).  Framing is done once in XLA to a lane-dense (B*T, n_fft)
# LHS; the windowed-DFT contraction runs on the generic Pallas matmul kernel.
# Output NHWC: (B, T, F_bins, 2) with channel 0 = real, 1 = imag.
# -----------------------------------------------------------------------------
def stft_pallas(x, n_fft, hop):
    B, L = x.shape
    F_bins = n_fft // 2 + 1
    xp = jnp.pad(x, ((0, 0), (n_fft // 2, n_fft // 2)), mode="reflect")
    Lp = xp.shape[1]
    T = 1 + (Lp - n_fft) // hop

    if n_fft % hop == 0:
        # Cheap framing: concat R hop-shifted chunk views (R x duplication of a
        # 1-D signal, negligible vs. the spectrogram output).
        R = n_fft // hop
        frames = jnp.concatenate(
            [xp[:, r * hop: r * hop + T * hop].reshape(B, T, hop)
             for r in range(R)], axis=2)                      # (B, T, n_fft)
    else:
        idx = jnp.arange(T)[:, None] * hop + jnp.arange(n_fft)[None, :]
        frames = xp[:, idx]                                   # gather fallback

    # Windowed DFT basis (periodic hann).  bf16 operands / f32 accumulation in
    # the kernel (per perf review; acceptable for a discriminator).
    window = 0.5 - 0.5 * jnp.cos(2.0 * jnp.pi * jnp.arange(n_fft) / n_fft)
    n = jnp.arange(n_fft, dtype=jnp.float32)[:, None]
    f = jnp.arange(F_bins, dtype=jnp.float32)[None, :]
    ang = 2.0 * jnp.pi * n * f / n_fft
    basis = jnp.concatenate([window[:, None] * jnp.cos(ang),
                             -window[:, None] * jnp.sin(ang)], axis=1)

    spec = pallas_matmul_bias_act(frames.reshape(B * T, n_fft), basis,
                                  jnp.zeros((2 * F_bins,), jnp.float32),
                                  negative_slope=None, out_dtype=jnp.float32)
    spec = spec.reshape(B, T, 2 * F_bins)
    return jnp.stack([spec[..., :F_bins], spec[..., F_bins:]], axis=-1)


# -----------------------------------------------------------------------------
# Parameters (deterministic, synthetic) with weight-norm reparameterization
# -----------------------------------------------------------------------------
_LAYER_GEOM = (                       # (kernel, stride, padding) per band layer
    ((3, 9), (1, 1), (1, 4)),
    ((3, 9), (1, 2), (1, 4)),
    ((3, 9), (1, 2), (1, 4)),
    ((3, 9), (1, 2), (1, 4)),
    ((3, 3), (1, 1), (1, 1)),
)


def make_wn_conv_params(key, cout, cin, kh, kw):
    kv, kg, kb = jax.random.split(key, 3)
    v = 0.1 * jax.random.normal(kv, (cout, cin, kh, kw), jnp.float32)
    g = jax.random.uniform(kg, (cout,), jnp.float32, 0.5, 1.5)
    v_norm = jnp.sqrt(jnp.sum(v * v, axis=(1, 2, 3)))
    w = (g / v_norm)[:, None, None, None] * v              # weight_norm reparam
    b = 0.05 * jax.random.normal(kb, (cout,), jnp.float32)
    return {"w": w, "b": b}


def build_params(key, C, num_stacks):
    chans = [(2, C), (C, C), (C, C), (C, C), (C, C)]
    params = {"bands": []}
    for _ in range(num_stacks):
        stack = []
        for (cin, cout), (k, _s, _p) in zip(chans, _LAYER_GEOM):
            key, sub = jax.random.split(key)
            stack.append(make_wn_conv_params(sub, cout, cin, *k))
        params["bands"].append(stack)
    key, sub = jax.random.split(key)
    params["conv_post"] = make_wn_conv_params(sub, 1, C, 3, 3)
    return params


# -----------------------------------------------------------------------------
# Forward (mirrors MultiBandSTFTDiscriminator.forward, return_features=False)
# -----------------------------------------------------------------------------
def mbstftd_forward(params, x, n_fft_list, hop_len_list, bands):
    if x.ndim == 1:
        x = x[None, :]
    num_stacks = len(params["bands"])
    nb = len(bands)

    # stft_band_split (NHWC: (B, T, F, 2)).  zip(x_bands, layers_per_band)
    # truncates to num_stacks, so STFTs whose bands are all dropped are never
    # computed (output-identical to the PyTorch module).
    x_bands = []
    for s_idx, (n_fft, hop) in enumerate(zip(n_fft_list, hop_len_list)):
        if s_idx * nb >= num_stacks:
            break
        spec = stft_pallas(x, n_fft, hop)
        F_bins = n_fft // 2 + 1
        for b0, b1 in bands:
            x_bands.append(spec[:, :, int(b0 * F_bins):int(b1 * F_bins), :])
    x_bands = x_bands[:num_stacks]

    outputs_per_band = []
    for band, stack in zip(x_bands, params["bands"]):
        for (_k, s, p), lp in zip(_LAYER_GEOM, stack):
            band = conv2d_wn_nhwc(band, lp["w"], lp["b"], s, p,
                                  negative_slope=0.1, out_dtype=jnp.bfloat16)
        outputs_per_band.append(band)

    z = jnp.concatenate(outputs_per_band, axis=2)            # concat along F
    cp = params["conv_post"]
    z = conv2d_wn_nhwc(z, cp["w"], cp["b"], (1, 1), (1, 1),
                       negative_slope=None, out_dtype=jnp.float32)
    return jnp.transpose(z, (0, 3, 1, 2))                    # NCHW (B, 1, T, F)


# -----------------------------------------------------------------------------
if __name__ == "__main__":
    C = 4
    n_fft_list = [64, 64]
    hop_len_list = [16, 16]
    bands = [(0.0, 0.5), (0.5, 1.0)]

    key = jax.random.PRNGKey(0)
    kx, kp = jax.random.split(key)
    x = jax.random.normal(kx, (2, 256), jnp.float32)          # (batch, samples)
    params = build_params(kp, C, len(n_fft_list))

    fwd = jax.jit(functools.partial(mbstftd_forward, n_fft_list=n_fft_list,
                                    hop_len_list=hop_len_list, bands=bands))
    z = fwd(params, x)
    z = jax.block_until_ready(z)
    assert z.shape == (2, 1, 17, 5), z.shape
    print("KERNEL_OK")
</pallas_src>

<mosaic_0001>
module attributes {stable_mosaic.version = 11 : i64} {
  func.func @_mm_bias_act_kernel(%arg0: i32, %arg1: i32, %arg2: i32, %arg3: memref<40x64xbf16, #tpu.memory_space<vmem>>, %arg4: memref<64x66xbf16, #tpu.memory_space<vmem>>, %arg5: memref<1x66xf32, #tpu.memory_space<vmem>>, %arg6: memref<40x66xf32, #tpu.memory_space<vmem>>, %arg7: memref<40x66xf32, #tpu.memory_space<vmem>>) attributes {dimension_semantics = [#tpu.dimension_semantics<parallel>, #tpu.dimension_semantics<parallel>, #tpu.dimension_semantics<arbitrary>], iteration_bounds = array<i64: 1, 1, 1>, scalar_prefetch = 0 : i64, scratch_operands = 1 : i64, tpu.core_type = #tpu.core_type<tc>, window_params = [{transform_indices = @transform_0, window_bounds = array<i64: 40, 64>}, {transform_indices = @transform_1, window_bounds = array<i64: 64, 66>}, {transform_indices = @transform_2, window_bounds = array<i64: 1, 66>}, {transform_indices = @transform_3, window_bounds = array<i64: 40, 66>}]} {
    %c0_i32 = arith.constant 0 : i32
    %0 = arith.cmpi eq, %arg2, %c0_i32 : i32
    %1 = arith.extui %0 : i1 to i32
    %c0_i32_0 = arith.constant 0 : i32
    %2 = arith.cmpi ne, %1, %c0_i32_0 : i32
    scf.if %2 {
      %c0_10 = arith.constant 0 : index
      %c0_11 = arith.constant 0 : index
      %12 = vector.load %arg5[%c0_10, %c0_11] : memref<1x66xf32, #tpu.memory_space<vmem>>, vector<1x66xf32>
      %13 = vector.shape_cast %12 : vector<1x66xf32> to vector<1x66xf32>
      %14 = vector.broadcast %13 : vector<1x66xf32> to vector<40x66xf32>
      %c0_12 = arith.constant 0 : index
      %c0_13 = arith.constant 0 : index
      %15 = vector.load %arg7[%c0_12, %c0_13] : memref<40x66xf32, #tpu.memory_space<vmem>>, vector<40x66xf32>
      tpu.vector_store %arg7[%c0_12, %c0_13], %14 {strides = array<i32>} : memref<40x66xf32, #tpu.memory_space<vmem>>, vector<40x66xf32>,
    } else {
    }
    %c0 = arith.constant 0 : index
    %c0_1 = arith.constant 0 : index
    %3 = vector.load %arg7[%c0, %c0_1] : memref<40x66xf32, #tpu.memory_space<vmem>>, vector<40x66xf32>
    %c0_2 = arith.constant 0 : index
    %c0_3 = arith.constant 0 : index
    %4 = vector.load %arg3[%c0_2, %c0_3] : memref<40x64xbf16, #tpu.memory_space<vmem>>, vector<40x64xbf16>
    %c0_4 = arith.constant 0 : index
    %c0_5 = arith.constant 0 : index
    %5 = vector.load %arg4[%c0_4, %c0_5] : memref<64x66xbf16, #tpu.memory_space<vmem>>, vector<64x66xbf16>
    %cst = arith.constant dense<0.000000e+00> : vector<40x66xf32>
    %6 = tpu.matmul %4, %5, %cst {dimension_numbers = #tpu.dot_dimension_numbers<[1], [0], [0], [1], [0, 0, 1, 1], [], []>} : vector<40x64xbf16>, vector<64x66xbf16>, vector<40x66xf32> -> vector<40x66xf32>
    %7 = arith.addf %3, %6 : vector<40x66xf32>
    %c0_6 = arith.constant 0 : index
    %c0_7 = arith.constant 0 : index
    %8 = vector.load %arg7[%c0_6, %c0_7] : memref<40x66xf32, #tpu.memory_space<vmem>>, vector<40x66xf32>
    tpu.vector_store %arg7[%c0_6, %c0_7], %7 {strides = array<i32>} : memref<40x66xf32, #tpu.memory_space<vmem>>, vector<40x66xf32>,
    %c0_i32_8 = arith.constant 0 : i32
    %9 = arith.cmpi eq, %arg2, %c0_i32_8 : i32
    %10 = arith.extui %9 : i1 to i32
    %c0_i32_9 = arith.constant 0 : i32
    %11 = arith.cmpi ne, %10, %c0_i32_9 : i32
    scf.if %11 {
      %c0_10 = arith.constant 0 : index
      %c0_11 = arith.constant 0 : index
      %12 = vector.load %arg7[%c0_10, %c0_11] : memref<40x66xf32, #tpu.memory_space<vmem>>, vector<40x66xf32>
      %c0_12 = arith.constant 0 : index
      %c0_13 = arith.constant 0 : index
      %13 = vector.load %arg6[%c0_12, %c0_13] : memref<40x66xf32, #tpu.memory_space<vmem>>, vector<40x66xf32>
      tpu.vector_store %arg6[%c0_12, %c0_13], %12 {strides = array<i32>} : memref<40x66xf32, #tpu.memory_space<vmem>>, vector<40x66xf32>,
    } else {
    }
    return
  }
  func.func @transform_0(%arg0: i32, %arg1: i32, %arg2: i32) -> (i32, i32) {
    %c0_i32 = arith.constant 0 : i32
    return %arg0, %arg2 : i32, i32
  }
  func.func @transform_1(%arg0: i32, %arg1: i32, %arg2: i32) -> (i32, i32) {
    %c0_i32 = arith.constant 0 : i32
    return %arg2, %arg1 : i32, i32
  }
  func.func @transform_2(%arg0: i32, %arg1: i32, %arg2: i32) -> (i32, i32) {
    %c0_i32 = arith.constant 0 : i32
    %c0_i32_0 = arith.constant 0 : i32
    return %c0_i32, %arg1 : i32, i32
  }
  func.func @transform_3(%arg0: i32, %arg1: i32, %arg2: i32) -> (i32, i32) {
    %c0_i32 = arith.constant 0 : i32
    return %arg0, %arg1 : i32, i32
  }
}

module attributes {stable_mosaic.version = 11 : i64} {
  func.func @_mm_bias_act_kernel(%arg0: i32, %arg1: i32, %arg2: i32, %arg3: memref<40x144xbf16, #tpu.memory_space<vmem>>, %arg4: memref<144x64xbf16, #tpu.memory_space<vmem>>, %arg5: memref<1x64xf32, #tpu.memory_space<vmem>>, %arg6: memref<40x64xbf16, #tpu.memory_space<vmem>>, %arg7: memref<40x64xf32, #tpu.memory_space<vmem>>) attributes {dimension_semantics = [#tpu.dimension_semantics<parallel>, #tpu.dimension_semantics<parallel>, #tpu.dimension_semantics<arbitrary>], iteration_bounds = array<i64: 1, 1, 1>, scalar_prefetch = 0 : i64, scratch_operands = 1 : i64, tpu.core_type = #tpu.core_type<tc>, window_params = [{transform_indices = @transform_0, window_bounds = array<i64: 40, 144>}, {transform_indices = @transform_1, window_bounds = array<i64: 144, 64>}, {transform_indices = @transform_2, window_bounds = array<i64: 1, 64>}, {transform_indices = @transform_3, window_bounds = array<i64: 40, 64>}]} {
    %c0_i32 = arith.constant 0 : i32
    %0 = arith.cmpi eq, %arg2, %c0_i32 : i32
    %1 = arith.extui %0 : i1 to i32
    %c0_i32_0 = arith.constant 0 : i32
    %2 = arith.cmpi ne, %1, %c0_i32_0 : i32
    scf.if %2 {
      %c0_10 = arith.constant 0 : index
      %c0_11 = arith.constant 0 : index
      %12 = vector.load %arg5[%c0_10, %c0_11] : memref<1x64xf32, #tpu.memory_space<vmem>>, vector<1x64xf32>
      %13 = vector.shape_cast %12 : vector<1x64xf32> to vector<1x64xf32>
      %14 = vector.broadcast %13 : vector<1x64xf32> to vector<40x64xf32>
      %c0_12 = arith.constant 0 : index
      %c0_13 = arith.constant 0 : index
      %15 = vector.load %arg7[%c0_12, %c0_13] : memref<40x64xf32, #tpu.memory_space<vmem>>, vector<40x64xf32>
      tpu.vector_store %arg7[%c0_12, %c0_13], %14 {strides = array<i32>} : memref<40x64xf32, #tpu.memory_space<vmem>>, vector<40x64xf32>,
    } else {
    }
    %c0 = arith.constant 0 : index
    %c0_1 = arith.constant 0 : index
    %3 = vector.load %arg7[%c0, %c0_1] : memref<40x64xf32, #tpu.memory_space<vmem>>, vector<40x64xf32>
    %c0_2 = arith.constant 0 : index
    %c0_3 = arith.constant 0 : index
    %4 = vector.load %arg3[%c0_2, %c0_3] : memref<40x144xbf16, #tpu.memory_space<vmem>>, vector<40x144xbf16>
    %c0_4 = arith.constant 0 : index
    %c0_5 = arith.constant 0 : index
    %5 = vector.load %arg4[%c0_4, %c0_5] : memref<144x64xbf16, #tpu.memory_space<vmem>>, vector<144x64xbf16>
    %cst = arith.constant dense<0.000000e+00> : vector<40x64xf32>
    %6 = tpu.matmul %4, %5, %cst {dimension_numbers = #tpu.dot_dimension_numbers<[1], [0], [0], [1], [0, 0, 1, 1], [], []>} : vector<40x144xbf16>, vector<144x64xbf16>, vector<40x64xf32> -> vector<40x64xf32>
    %7 = arith.addf %3, %6 : vector<40x64xf32>
    %c0_6 = arith.constant 0 : index
    %c0_7 = arith.constant 0 : index
    %8 = vector.load %arg7[%c0_6, %c0_7] : memref<40x64xf32, #tpu.memory_space<vmem>>, vector<40x64xf32>
    tpu.vector_store %arg7[%c0_6, %c0_7], %7 {strides = array<i32>} : memref<40x64xf32, #tpu.memory_space<vmem>>, vector<40x64xf32>,
    %c0_i32_8 = arith.constant 0 : i32
    %9 = arith.cmpi eq, %arg2, %c0_i32_8 : i32
    %10 = arith.extui %9 : i1 to i32
    %c0_i32_9 = arith.constant 0 : i32
    %11 = arith.cmpi ne, %10, %c0_i32_9 : i32
    scf.if %11 {
      %c0_10 = arith.constant 0 : index
      %c0_11 = arith.constant 0 : index
      %12 = vector.load %arg7[%c0_10, %c0_11] : memref<40x64xf32, #tpu.memory_space<vmem>>, vector<40x64xf32>
      %cst_12 = arith.constant 1.000000e-01 : f32
      %13 = vector.broadcast %cst_12 : f32 to vector<40x64xf32>
      %14 = arith.mulf %13, %12 : vector<40x64xf32>
      %15 = arith.maximumf %12, %14 : vector<40x64xf32>
      %16 = arith.truncf %15 : vector<40x64xf32> to vector<40x64xbf16>
      %c0_13 = arith.constant 0 : index
      %c0_14 = arith.constant 0 : index
      %17 = vector.load %arg6[%c0_13, %c0_14] : memref<40x64xbf16, #tpu.memory_space<vmem>>, vector<40x64xbf16>
      tpu.vector_store %arg6[%c0_13, %c0_14], %16 {strides = array<i32>} : memref<40x64xbf16, #tpu.memory_space<vmem>>, vector<40x64xbf16>,
    } else {
    }
    return
  }
  func.func @transform_0(%arg0: i32, %arg1: i32, %arg2: i32) -> (i32, i32) {
    %c0_i32 = arith.constant 0 : i32
    return %arg0, %arg2 : i32, i32
  }
  func.func @transform_1(%arg0: i32, %arg1: i32, %arg2: i32) -> (i32, i32) {
    %c0_i32 = arith.constant 0 : i32
    return %arg2, %arg1 : i32, i32
  }
  func.func @transform_2(%arg0: i32, %arg1: i32, %arg2: i32) -> (i32, i32) {
    %c0_i32 = arith.constant 0 : i32
    %c0_i32_0 = arith.constant 0 : i32
    return %c0_i32, %arg1 : i32, i32
  }
  func.func @transform_3(%arg0: i32, %arg1: i32, %arg2: i32) -> (i32, i32) {
    %c0_i32 = arith.constant 0 : i32
    return %arg0, %arg1 : i32, i32
  }
}

module attributes {stable_mosaic.version = 11 : i64} {
  func.func @_mm_bias_act_kernel(%arg0: i32, %arg1: i32, %arg2: i32, %arg3: memref<40x288xbf16, #tpu.memory_space<vmem>>, %arg4: memref<288x32xbf16, #tpu.memory_space<vmem>>, %arg5: memref<1x32xf32, #tpu.memory_space<vmem>>, %arg6: memref<40x32xbf16, #tpu.memory_space<vmem>>, %arg7: memref<40x32xf32, #tpu.memory_space<vmem>>) attributes {dimension_semantics = [#tpu.dimension_semantics<parallel>, #tpu.dimension_semantics<parallel>, #tpu.dimension_semantics<arbitrary>], iteration_bounds = array<i64: 1, 1, 1>, scalar_prefetch = 0 : i64, scratch_operands = 1 : i64, tpu.core_type = #tpu.core_type<tc>, window_params = [{transform_indices = @transform_0, window_bounds = array<i64: 40, 288>}, {transform_indices = @transform_1, window_bounds = array<i64: 288, 32>}, {transform_indices = @transform_2, window_bounds = array<i64: 1, 32>}, {transform_indices = @transform_3, window_bounds = array<i64: 40, 32>}]} {
    %c0_i32 = arith.constant 0 : i32
    %0 = arith.cmpi eq, %arg2, %c0_i32 : i32
    %1 = arith.extui %0 : i1 to i32
    %c0_i32_0 = arith.constant 0 : i32
    %2 = arith.cmpi ne, %1, %c0_i32_0 : i32
    scf.if %2 {
      %c0_10 = arith.constant 0 : index
      %c0_11 = arith.constant 0 : index
      %12 = vector.load %arg5[%c0_10, %c0_11] : memref<1x32xf32, #tpu.memory_space<vmem>>, vector<1x32xf32>
      %13 = vector.shape_cast %12 : vector<1x32xf32> to vector<1x32xf32>
      %14 = vector.broadcast %13 : vector<1x32xf32> to vector<40x32xf32>
      %c0_12 = arith.constant 0 : index
      %c0_13 = arith.constant 0 : index
      %15 = vector.load %arg7[%c0_12, %c0_13] : memref<40x32xf32, #tpu.memory_space<vmem>>, vector<40x32xf32>
      tpu.vector_store %arg7[%c0_12, %c0_13], %14 {strides = array<i32>} : memref<40x32xf32, #tpu.memory_space<vmem>>, vector<40x32xf32>,
    } else {
    }
    %c0 = arith.constant 0 : index
    %c0_1 = arith.constant 0 : index
    %3 = vector.load %arg7[%c0, %c0_1] : memref<40x32xf32, #tpu.memory_space<vmem>>, vector<40x32xf32>
    %c0_2 = arith.constant 0 : index
    %c0_3 = arith.constant 0 : index
    %4 = vector.load %arg3[%c0_2, %c0_3] : memref<40x288xbf16, #tpu.memory_space<vmem>>, vector<40x288xbf16>
    %c0_4 = arith.constant 0 : index
    %c0_5 = arith.constant 0 : index
    %5 = vector.load %arg4[%c0_4, %c0_5] : memref<288x32xbf16, #tpu.memory_space<vmem>>, vector<288x32xbf16>
    %cst = arith.constant dense<0.000000e+00> : vector<40x32xf32>
    %6 = tpu.matmul %4, %5, %cst {dimension_numbers = #tpu.dot_dimension_numbers<[1], [0], [0], [1], [0, 0, 1, 1], [], []>} : vector<40x288xbf16>, vector<288x32xbf16>, vector<40x32xf32> -> vector<40x32xf32>
    %7 = arith.addf %3, %6 : vector<40x32xf32>
    %c0_6 = arith.constant 0 : index
    %c0_7 = arith.constant 0 : index
    %8 = vector.load %arg7[%c0_6, %c0_7] : memref<40x32xf32, #tpu.memory_space<vmem>>, vector<40x32xf32>
    tpu.vector_store %arg7[%c0_6, %c0_7], %7 {strides = array<i32>} : memref<40x32xf32, #tpu.memory_space<vmem>>, vector<40x32xf32>,
    %c0_i32_8 = arith.constant 0 : i32
    %9 = arith.cmpi eq, %arg2, %c0_i32_8 : i32
    %10 = arith.extui %9 : i1 to i32
    %c0_i32_9 = arith.constant 0 : i32
    %11 = arith.cmpi ne, %10, %c0_i32_9 : i32
    scf.if %11 {
      %c0_10 = arith.constant 0 : index
      %c0_11 = arith.constant 0 : index
      %12 = vector.load %arg7[%c0_10, %c0_11] : memref<40x32xf32, #tpu.memory_space<vmem>>, vector<40x32xf32>
      %cst_12 = arith.constant 1.000000e-01 : f32
      %13 = vector.broadcast %cst_12 : f32 to vector<40x32xf32>
      %14 = arith.mulf %13, %12 : vector<40x32xf32>
      %15 = arith.maximumf %12, %14 : vector<40x32xf32>
      %16 = arith.truncf %15 : vector<40x32xf32> to vector<40x32xbf16>
      %c0_13 = arith.constant 0 : index
      %c0_14 = arith.constant 0 : index
      %17 = vector.load %arg6[%c0_13, %c0_14] : memref<40x32xbf16, #tpu.memory_space<vmem>>, vector<40x32xbf16>
      tpu.vector_store %arg6[%c0_13, %c0_14], %16 {strides = array<i32>} : memref<40x32xbf16, #tpu.memory_space<vmem>>, vector<40x32xbf16>,
    } else {
    }
    return
  }
  func.func @transform_0(%arg0: i32, %arg1: i32, %arg2: i32) -> (i32, i32) {
    %c0_i32 = arith.constant 0 : i32
    return %arg0, %arg2 : i32, i32
  }
  func.func @transform_1(%arg0: i32, %arg1: i32, %arg2: i32) -> (i32, i32) {
    %c0_i32 = arith.constant 0 : i32
    return %arg2, %arg1 : i32, i32
  }
  func.func @transform_2(%arg0: i32, %arg1: i32, %arg2: i32) -> (i32, i32) {
    %c0_i32 = arith.constant 0 : i32
    %c0_i32_0 = arith.constant 0 : i32
    return %c0_i32, %arg1 : i32, i32
  }
  func.func @transform_3(%arg0: i32, %arg1: i32, %arg2: i32) -> (i32, i32) {
    %c0_i32 = arith.constant 0 : i32
    return %arg0, %arg1 : i32, i32
  }
}

module attributes {stable_mosaic.version = 11 : i64} {
  func.func @_mm_bias_act_kernel(%arg0: i32, %arg1: i32, %arg2: i32, %arg3: memref<40x192xbf16, #tpu.memory_space<vmem>>, %arg4: memref<192x16xbf16, #tpu.memory_space<vmem>>, %arg5: memref<1x16xf32, #tpu.memory_space<vmem>>, %arg6: memref<40x16xbf16, #tpu.memory_space<vmem>>, %arg7: memref<40x16xf32, #tpu.memory_space<vmem>>) attributes {dimension_semantics = [#tpu.dimension_semantics<parallel>, #tpu.dimension_semantics<parallel>, #tpu.dimension_semantics<arbitrary>], iteration_bounds = array<i64: 1, 1, 1>, scalar_prefetch = 0 : i64, scratch_operands = 1 : i64, tpu.core_type = #tpu.core_type<tc>, window_params = [{transform_indices = @transform_0, window_bounds = array<i64: 40, 192>}, {transform_indices = @transform_1, window_bounds = array<i64: 192, 16>}, {transform_indices = @transform_2, window_bounds = array<i64: 1, 16>}, {transform_indices = @transform_3, window_bounds = array<i64: 40, 16>}]} {
    %c0_i32 = arith.constant 0 : i32
    %0 = arith.cmpi eq, %arg2, %c0_i32 : i32
    %1 = arith.extui %0 : i1 to i32
    %c0_i32_0 = arith.constant 0 : i32
    %2 = arith.cmpi ne, %1, %c0_i32_0 : i32
    scf.if %2 {
      %c0_10 = arith.constant 0 : index
      %c0_11 = arith.constant 0 : index
      %12 = vector.load %arg5[%c0_10, %c0_11] : memref<1x16xf32, #tpu.memory_space<vmem>>, vector<1x16xf32>
      %13 = vector.shape_cast %12 : vector<1x16xf32> to vector<1x16xf32>
      %14 = vector.broadcast %13 : vector<1x16xf32> to vector<40x16xf32>
      %c0_12 = arith.constant 0 : index
      %c0_13 = arith.constant 0 : index
      %15 = vector.load %arg7[%c0_12, %c0_13] : memref<40x16xf32, #tpu.memory_space<vmem>>, vector<40x16xf32>
      tpu.vector_store %arg7[%c0_12, %c0_13], %14 {strides = array<i32>} : memref<40x16xf32, #tpu.memory_space<vmem>>, vector<40x16xf32>,
    } else {
    }
    %c0 = arith.constant 0 : index
    %c0_1 = arith.constant 0 : index
    %3 = vector.load %arg7[%c0, %c0_1] : memref<40x16xf32, #tpu.memory_space<vmem>>, vector<40x16xf32>
    %c0_2 = arith.constant 0 : index
    %c0_3 = arith.constant 0 : index
    %4 = vector.load %arg3[%c0_2, %c0_3] : memref<40x192xbf16, #tpu.memory_space<vmem>>, vector<40x192xbf16>
    %c0_4 = arith.constant 0 : index
    %c0_5 = arith.constant 0 : index
    %5 = vector.load %arg4[%c0_4, %c0_5] : memref<192x16xbf16, #tpu.memory_space<vmem>>, vector<192x16xbf16>
    %cst = arith.constant dense<0.000000e+00> : vector<40x16xf32>
    %6 = tpu.matmul %4, %5, %cst {dimension_numbers = #tpu.dot_dimension_numbers<[1], [0], [0], [1], [0, 0, 1, 1], [], []>} : vector<40x192xbf16>, vector<192x16xbf16>, vector<40x16xf32> -> vector<40x16xf32>
    %7 = arith.addf %3, %6 : vector<40x16xf32>
    %c0_6 = arith.constant 0 : index
    %c0_7 = arith.constant 0 : index
    %8 = vector.load %arg7[%c0_6, %c0_7] : memref<40x16xf32, #tpu.memory_space<vmem>>, vector<40x16xf32>
    tpu.vector_store %arg7[%c0_6, %c0_7], %7 {strides = array<i32>} : memref<40x16xf32, #tpu.memory_space<vmem>>, vector<40x16xf32>,
    %c0_i32_8 = arith.constant 0 : i32
    %9 = arith.cmpi eq, %arg2, %c0_i32_8 : i32
    %10 = arith.extui %9 : i1 to i32
    %c0_i32_9 = arith.constant 0 : i32
    %11 = arith.cmpi ne, %10, %c0_i32_9 : i32
    scf.if %11 {
      %c0_10 = arith.constant 0 : index
      %c0_11 = arith.constant 0 : index
      %12 = vector.load %arg7[%c0_10, %c0_11] : memref<40x16xf32, #tpu.memory_space<vmem>>, vector<40x16xf32>
      %cst_12 = arith.constant 1.000000e-01 : f32
      %13 = vector.broadcast %cst_12 : f32 to vector<40x16xf32>
      %14 = arith.mulf %13, %12 : vector<40x16xf32>
      %15 = arith.maximumf %12, %14 : vector<40x16xf32>
      %16 = arith.truncf %15 : vector<40x16xf32> to vector<40x16xbf16>
      %c0_13 = arith.constant 0 : index
      %c0_14 = arith.constant 0 : index
      %17 = vector.load %arg6[%c0_13, %c0_14] : memref<40x16xbf16, #tpu.memory_space<vmem>>, vector<40x16xbf16>
      tpu.vector_store %arg6[%c0_13, %c0_14], %16 {strides = array<i32>} : memref<40x16xbf16, #tpu.memory_space<vmem>>, vector<40x16xbf16>,
    } else {
    }
    return
  }
  func.func @transform_0(%arg0: i32, %arg1: i32, %arg2: i32) -> (i32, i32) {
    %c0_i32 = arith.constant 0 : i32
    return %arg0, %arg2 : i32, i32
  }
  func.func @transform_1(%arg0: i32, %arg1: i32, %arg2: i32) -> (i32, i32) {
    %c0_i32 = arith.constant 0 : i32
    return %arg2, %arg1 : i32, i32
  }
  func.func @transform_2(%arg0: i32, %arg1: i32, %arg2: i32) -> (i32, i32) {
    %c0_i32 = arith.constant 0 : i32
    %c0_i32_0 = arith.constant 0 : i32
    return %c0_i32, %arg1 : i32, i32
  }
  func.func @transform_3(%arg0: i32, %arg1: i32, %arg2: i32) -> (i32, i32) {
    %c0_i32 = arith.constant 0 : i32
    return %arg0, %arg1 : i32, i32
  }
}

module attributes {stable_mosaic.version = 11 : i64} {
  func.func @_mm_bias_act_kernel(%arg0: i32, %arg1: i32, %arg2: i32, %arg3: memref<40x144xbf16, #tpu.memory_space<vmem>>, %arg4: memref<144x8xbf16, #tpu.memory_space<vmem>>, %arg5: memref<1x8xf32, #tpu.memory_space<vmem>>, %arg6: memref<40x8xbf16, #tpu.memory_space<vmem>>, %arg7: memref<40x8xf32, #tpu.memory_space<vmem>>) attributes {dimension_semantics = [#tpu.dimension_semantics<parallel>, #tpu.dimension_semantics<parallel>, #tpu.dimension_semantics<arbitrary>], iteration_bounds = array<i64: 1, 1, 1>, scalar_prefetch = 0 : i64, scratch_operands = 1 : i64, tpu.core_type = #tpu.core_type<tc>, window_params = [{transform_indices = @transform_0, window_bounds = array<i64: 40, 144>}, {transform_indices = @transform_1, window_bounds = array<i64: 144, 8>}, {transform_indices = @transform_2, window_bounds = array<i64: 1, 8>}, {transform_indices = @transform_3, window_bounds = array<i64: 40, 8>}]} {
    %c0_i32 = arith.constant 0 : i32
    %0 = arith.cmpi eq, %arg2, %c0_i32 : i32
    %1 = arith.extui %0 : i1 to i32
    %c0_i32_0 = arith.constant 0 : i32
    %2 = arith.cmpi ne, %1, %c0_i32_0 : i32
    scf.if %2 {
      %c0_10 = arith.constant 0 : index
      %c0_11 = arith.constant 0 : index
      %12 = vector.load %arg5[%c0_10, %c0_11] : memref<1x8xf32, #tpu.memory_space<vmem>>, vector<1x8xf32>
      %13 = vector.shape_cast %12 : vector<1x8xf32> to vector<1x8xf32>
      %14 = vector.broadcast %13 : vector<1x8xf32> to vector<40x8xf32>
      %c0_12 = arith.constant 0 : index
      %c0_13 = arith.constant 0 : index
      %15 = vector.load %arg7[%c0_12, %c0_13] : memref<40x8xf32, #tpu.memory_space<vmem>>, vector<40x8xf32>
      tpu.vector_store %arg7[%c0_12, %c0_13], %14 {strides = array<i32>} : memref<40x8xf32, #tpu.memory_space<vmem>>, vector<40x8xf32>,
    } else {
    }
    %c0 = arith.constant 0 : index
    %c0_1 = arith.constant 0 : index
    %3 = vector.load %arg7[%c0, %c0_1] : memref<40x8xf32, #tpu.memory_space<vmem>>, vector<40x8xf32>
    %c0_2 = arith.constant 0 : index
    %c0_3 = arith.constant 0 : index
    %4 = vector.load %arg3[%c0_2, %c0_3] : memref<40x144xbf16, #tpu.memory_space<vmem>>, vector<40x144xbf16>
    %c0_4 = arith.constant 0 : index
    %c0_5 = arith.constant 0 : index
    %5 = vector.load %arg4[%c0_4, %c0_5] : memref<144x8xbf16, #tpu.memory_space<vmem>>, vector<144x8xbf16>
    %cst = arith.constant dense<0.000000e+00> : vector<40x8xf32>
    %6 = tpu.matmul %4, %5, %cst {dimension_numbers = #tpu.dot_dimension_numbers<[1], [0], [0], [1], [0, 0, 1, 1], [], []>} : vector<40x144xbf16>, vector<144x8xbf16>, vector<40x8xf32> -> vector<40x8xf32>
    %7 = arith.addf %3, %6 : vector<40x8xf32>
    %c0_6 = arith.constant 0 : index
    %c0_7 = arith.constant 0 : index
    %8 = vector.load %arg7[%c0_6, %c0_7] : memref<40x8xf32, #tpu.memory_space<vmem>>, vector<40x8xf32>
    tpu.vector_store %arg7[%c0_6, %c0_7], %7 {strides = array<i32>} : memref<40x8xf32, #tpu.memory_space<vmem>>, vector<40x8xf32>,
    %c0_i32_8 = arith.constant 0 : i32
    %9 = arith.cmpi eq, %arg2, %c0_i32_8 : i32
    %10 = arith.extui %9 : i1 to i32
    %c0_i32_9 = arith.constant 0 : i32
    %11 = arith.cmpi ne, %10, %c0_i32_9 : i32
    scf.if %11 {
      %c0_10 = arith.constant 0 : index
      %c0_11 = arith.constant 0 : index
      %12 = vector.load %arg7[%c0_10, %c0_11] : memref<40x8xf32, #tpu.memory_space<vmem>>, vector<40x8xf32>
      %cst_12 = arith.constant 1.000000e-01 : f32
      %13 = vector.broadcast %cst_12 : f32 to vector<40x8xf32>
      %14 = arith.mulf %13, %12 : vector<40x8xf32>
      %15 = arith.maximumf %12, %14 : vector<40x8xf32>
      %16 = arith.truncf %15 : vector<40x8xf32> to vector<40x8xbf16>
      %c0_13 = arith.constant 0 : index
      %c0_14 = arith.constant 0 : index
      %17 = vector.load %arg6[%c0_13, %c0_14] : memref<40x8xbf16, #tpu.memory_space<vmem>>, vector<40x8xbf16>
      tpu.vector_store %arg6[%c0_13, %c0_14], %16 {strides = array<i32>} : memref<40x8xbf16, #tpu.memory_space<vmem>>, vector<40x8xbf16>,
    } else {
    }
    return
  }
  func.func @transform_0(%arg0: i32, %arg1: i32, %arg2: i32) -> (i32, i32) {
    %c0_i32 = arith.constant 0 : i32
    return %arg0, %arg2 : i32, i32
  }
  func.func @transform_1(%arg0: i32, %arg1: i32, %arg2: i32) -> (i32, i32) {
    %c0_i32 = arith.constant 0 : i32
    return %arg2, %arg1 : i32, i32
  }
  func.func @transform_2(%arg0: i32, %arg1: i32, %arg2: i32) -> (i32, i32) {
    %c0_i32 = arith.constant 0 : i32
    %c0_i32_0 = arith.constant 0 : i32
    return %c0_i32, %arg1 : i32, i32
  }
  func.func @transform_3(%arg0: i32, %arg1: i32, %arg2: i32) -> (i32, i32) {
    %c0_i32 = arith.constant 0 : i32
    return %arg0, %arg1 : i32, i32
  }
}

module attributes {stable_mosaic.version = 11 : i64} {
  func.func @_mm_bias_act_kernel(%arg0: i32, %arg1: i32, %arg2: i32, %arg3: memref<40x48xbf16, #tpu.memory_space<vmem>>, %arg4: memref<48x8xbf16, #tpu.memory_space<vmem>>, %arg5: memref<1x8xf32, #tpu.memory_space<vmem>>, %arg6: memref<40x8xbf16, #tpu.memory_space<vmem>>, %arg7: memref<40x8xf32, #tpu.memory_space<vmem>>) attributes {dimension_semantics = [#tpu.dimension_semantics<parallel>, #tpu.dimension_semantics<parallel>, #tpu.dimension_semantics<arbitrary>], iteration_bounds = array<i64: 1, 1, 1>, scalar_prefetch = 0 : i64, scratch_operands = 1 : i64, tpu.core_type = #tpu.core_type<tc>, window_params = [{transform_indices = @transform_0, window_bounds = array<i64: 40, 48>}, {transform_indices = @transform_1, window_bounds = array<i64: 48, 8>}, {transform_indices = @transform_2, window_bounds = array<i64: 1, 8>}, {transform_indices = @transform_3, window_bounds = array<i64: 40, 8>}]} {
    %c0_i32 = arith.constant 0 : i32
    %0 = arith.cmpi eq, %arg2, %c0_i32 : i32
    %1 = arith.extui %0 : i1 to i32
    %c0_i32_0 = arith.constant 0 : i32
    %2 = arith.cmpi ne, %1, %c0_i32_0 : i32
    scf.if %2 {
      %c0_10 = arith.constant 0 : index
      %c0_11 = arith.constant 0 : index
      %12 = vector.load %arg5[%c0_10, %c0_11] : memref<1x8xf32, #tpu.memory_space<vmem>>, vector<1x8xf32>
      %13 = vector.shape_cast %12 : vector<1x8xf32> to vector<1x8xf32>
      %14 = vector.broadcast %13 : vector<1x8xf32> to vector<40x8xf32>
      %c0_12 = arith.constant 0 : index
      %c0_13 = arith.constant 0 : index
      %15 = vector.load %arg7[%c0_12, %c0_13] : memref<40x8xf32, #tpu.memory_space<vmem>>, vector<40x8xf32>
      tpu.vector_store %arg7[%c0_12, %c0_13], %14 {strides = array<i32>} : memref<40x8xf32, #tpu.memory_space<vmem>>, vector<40x8xf32>,
    } else {
    }
    %c0 = arith.constant 0 : index
    %c0_1 = arith.constant 0 : index
    %3 = vector.load %arg7[%c0, %c0_1] : memref<40x8xf32, #tpu.memory_space<vmem>>, vector<40x8xf32>
    %c0_2 = arith.constant 0 : index
    %c0_3 = arith.constant 0 : index
    %4 = vector.load %arg3[%c0_2, %c0_3] : memref<40x48xbf16, #tpu.memory_space<vmem>>, vector<40x48xbf16>
    %c0_4 = arith.constant 0 : index
    %c0_5 = arith.constant 0 : index
    %5 = vector.load %arg4[%c0_4, %c0_5] : memref<48x8xbf16, #tpu.memory_space<vmem>>, vector<48x8xbf16>
    %cst = arith.constant dense<0.000000e+00> : vector<40x8xf32>
    %6 = tpu.matmul %4, %5, %cst {dimension_numbers = #tpu.dot_dimension_numbers<[1], [0], [0], [1], [0, 0, 1, 1], [], []>} : vector<40x48xbf16>, vector<48x8xbf16>, vector<40x8xf32> -> vector<40x8xf32>
    %7 = arith.addf %3, %6 : vector<40x8xf32>
    %c0_6 = arith.constant 0 : index
    %c0_7 = arith.constant 0 : index
    %8 = vector.load %arg7[%c0_6, %c0_7] : memref<40x8xf32, #tpu.memory_space<vmem>>, vector<40x8xf32>
    tpu.vector_store %arg7[%c0_6, %c0_7], %7 {strides = array<i32>} : memref<40x8xf32, #tpu.memory_space<vmem>>, vector<40x8xf32>,
    %c0_i32_8 = arith.constant 0 : i32
    %9 = arith.cmpi eq, %arg2, %c0_i32_8 : i32
    %10 = arith.extui %9 : i1 to i32
    %c0_i32_9 = arith.constant 0 : i32
    %11 = arith.cmpi ne, %10, %c0_i32_9 : i32
    scf.if %11 {
      %c0_10 = arith.constant 0 : index
      %c0_11 = arith.constant 0 : index
      %12 = vector.load %arg7[%c0_10, %c0_11] : memref<40x8xf32, #tpu.memory_space<vmem>>, vector<40x8xf32>
      %cst_12 = arith.constant 1.000000e-01 : f32
      %13 = vector.broadcast %cst_12 : f32 to vector<40x8xf32>
      %14 = arith.mulf %13, %12 : vector<40x8xf32>
      %15 = arith.maximumf %12, %14 : vector<40x8xf32>
      %16 = arith.truncf %15 : vector<40x8xf32> to vector<40x8xbf16>
      %c0_13 = arith.constant 0 : index
      %c0_14 = arith.constant 0 : index
      %17 = vector.load %arg6[%c0_13, %c0_14] : memref<40x8xbf16, #tpu.memory_space<vmem>>, vector<40x8xbf16>
      tpu.vector_store %arg6[%c0_13, %c0_14], %16 {strides = array<i32>} : memref<40x8xbf16, #tpu.memory_space<vmem>>, vector<40x8xbf16>,
    } else {
    }
    return
  }
  func.func @transform_0(%arg0: i32, %arg1: i32, %arg2: i32) -> (i32, i32) {
    %c0_i32 = arith.constant 0 : i32
    return %arg0, %arg2 : i32, i32
  }
  func.func @transform_1(%arg0: i32, %arg1: i32, %arg2: i32) -> (i32, i32) {
    %c0_i32 = arith.constant 0 : i32
    return %arg2, %arg1 : i32, i32
  }
  func.func @transform_2(%arg0: i32, %arg1: i32, %arg2: i32) -> (i32, i32) {
    %c0_i32 = arith.constant 0 : i32
    %c0_i32_0 = arith.constant 0 : i32
    return %c0_i32, %arg1 : i32, i32
  }
  func.func @transform_3(%arg0: i32, %arg1: i32, %arg2: i32) -> (i32, i32) {
    %c0_i32 = arith.constant 0 : i32
    return %arg0, %arg1 : i32, i32
  }
}

module attributes {stable_mosaic.version = 11 : i64} {
  func.func @_mm_bias_act_kernel(%arg0: i32, %arg1: i32, %arg2: i32, %arg3: memref<40x150xbf16, #tpu.memory_space<vmem>>, %arg4: memref<150x68xbf16, #tpu.memory_space<vmem>>, %arg5: memref<1x68xf32, #tpu.memory_space<vmem>>, %arg6: memref<40x68xbf16, #tpu.memory_space<vmem>>, %arg7: memref<40x68xf32, #tpu.memory_space<vmem>>) attributes {dimension_semantics = [#tpu.dimension_semantics<parallel>, #tpu.dimension_semantics<parallel>, #tpu.dimension_semantics<arbitrary>], iteration_bounds = array<i64: 1, 1, 1>, scalar_prefetch = 0 : i64, scratch_operands = 1 : i64, tpu.core_type = #tpu.core_type<tc>, window_params = [{transform_indices = @transform_0, window_bounds = array<i64: 40, 150>}, {transform_indices = @transform_1, window_bounds = array<i64: 150, 68>}, {transform_indices = @transform_2, window_bounds = array<i64: 1, 68>}, {transform_indices = @transform_3, window_bounds = array<i64: 40, 68>}]} {
    %c0_i32 = arith.constant 0 : i32
    %0 = arith.cmpi eq, %arg2, %c0_i32 : i32
    %1 = arith.extui %0 : i1 to i32
    %c0_i32_0 = arith.constant 0 : i32
    %2 = arith.cmpi ne, %1, %c0_i32_0 : i32
    scf.if %2 {
      %c0_10 = arith.constant 0 : index
      %c0_11 = arith.constant 0 : index
      %12 = vector.load %arg5[%c0_10, %c0_11] : memref<1x68xf32, #tpu.memory_space<vmem>>, vector<1x68xf32>
      %13 = vector.shape_cast %12 : vector<1x68xf32> to vector<1x68xf32>
      %14 = vector.broadcast %13 : vector<1x68xf32> to vector<40x68xf32>
      %c0_12 = arith.constant 0 : index
      %c0_13 = arith.constant 0 : index
      %15 = vector.load %arg7[%c0_12, %c0_13] : memref<40x68xf32, #tpu.memory_space<vmem>>, vector<40x68xf32>
      tpu.vector_store %arg7[%c0_12, %c0_13], %14 {strides = array<i32>} : memref<40x68xf32, #tpu.memory_space<vmem>>, vector<40x68xf32>,
    } else {
    }
    %c0 = arith.constant 0 : index
    %c0_1 = arith.constant 0 : index
    %3 = vector.load %arg7[%c0, %c0_1] : memref<40x68xf32, #tpu.memory_space<vmem>>, vector<40x68xf32>
    %c0_2 = arith.constant 0 : index
    %c0_3 = arith.constant 0 : index
    %4 = vector.load %arg3[%c0_2, %c0_3] : memref<40x150xbf16, #tpu.memory_space<vmem>>, vector<40x150xbf16>
    %c0_4 = arith.constant 0 : index
    %c0_5 = arith.constant 0 : index
    %5 = vector.load %arg4[%c0_4, %c0_5] : memref<150x68xbf16, #tpu.memory_space<vmem>>, vector<150x68xbf16>
    %cst = arith.constant dense<0.000000e+00> : vector<40x68xf32>
    %6 = tpu.matmul %4, %5, %cst {dimension_numbers = #tpu.dot_dimension_numbers<[1], [0], [0], [1], [0, 0, 1, 1], [], []>} : vector<40x150xbf16>, vector<150x68xbf16>, vector<40x68xf32> -> vector<40x68xf32>
    %7 = arith.addf %3, %6 : vector<40x68xf32>
    %c0_6 = arith.constant 0 : index
    %c0_7 = arith.constant 0 : index
    %8 = vector.load %arg7[%c0_6, %c0_7] : memref<40x68xf32, #tpu.memory_space<vmem>>, vector<40x68xf32>
    tpu.vector_store %arg7[%c0_6, %c0_7], %7 {strides = array<i32>} : memref<40x68xf32, #tpu.memory_space<vmem>>, vector<40x68xf32>,
    %c0_i32_8 = arith.constant 0 : i32
    %9 = arith.cmpi eq, %arg2, %c0_i32_8 : i32
    %10 = arith.extui %9 : i1 to i32
    %c0_i32_9 = arith.constant 0 : i32
    %11 = arith.cmpi ne, %10, %c0_i32_9 : i32
    scf.if %11 {
      %c0_10 = arith.constant 0 : index
      %c0_11 = arith.constant 0 : index
      %12 = vector.load %arg7[%c0_10, %c0_11] : memref<40x68xf32, #tpu.memory_space<vmem>>, vector<40x68xf32>
      %cst_12 = arith.constant 1.000000e-01 : f32
      %13 = vector.broadcast %cst_12 : f32 to vector<40x68xf32>
      %14 = arith.mulf %13, %12 : vector<40x68xf32>
      %15 = arith.maximumf %12, %14 : vector<40x68xf32>
      %16 = arith.truncf %15 : vector<40x68xf32> to vector<40x68xbf16>
      %c0_13 = arith.constant 0 : index
      %c0_14 = arith.constant 0 : index
      %17 = vector.load %arg6[%c0_13, %c0_14] : memref<40x68xbf16, #tpu.memory_space<vmem>>, vector<40x68xbf16>
      tpu.vector_store %arg6[%c0_13, %c0_14], %16 {strides = array<i32>} : memref<40x68xbf16, #tpu.memory_space<vmem>>, vector<40x68xbf16>,
    } else {
    }
    return
  }
  func.func @transform_0(%arg0: i32, %arg1: i32, %arg2: i32) -> (i32, i32) {
    %c0_i32 = arith.constant 0 : i32
    return %arg0, %arg2 : i32, i32
  }
  func.func @transform_1(%arg0: i32, %arg1: i32, %arg2: i32) -> (i32, i32) {
    %c0_i32 = arith.constant 0 : i32
    return %arg2, %arg1 : i32, i32
  }
  func.func @transform_2(%arg0: i32, %arg1: i32, %arg2: i32) -> (i32, i32) {
    %c0_i32 = arith.constant 0 : i32
    %c0_i32_0 = arith.constant 0 : i32
    return %c0_i32, %arg1 : i32, i32
  }
  func.func @transform_3(%arg0: i32, %arg1: i32, %arg2: i32) -> (i32, i32) {
    %c0_i32 = arith.constant 0 : i32
    return %arg0, %arg1 : i32, i32
  }
}

module attributes {stable_mosaic.version = 11 : i64} {
  func.func @_mm_bias_act_kernel(%arg0: i32, %arg1: i32, %arg2: i32, %arg3: memref<40x300xbf16, #tpu.memory_space<vmem>>, %arg4: memref<300x36xbf16, #tpu.memory_space<vmem>>, %arg5: memref<1x36xf32, #tpu.memory_space<vmem>>, %arg6: memref<40x36xbf16, #tpu.memory_space<vmem>>, %arg7: memref<40x36xf32, #tpu.memory_space<vmem>>) attributes {dimension_semantics = [#tpu.dimension_semantics<parallel>, #tpu.dimension_semantics<parallel>, #tpu.dimension_semantics<arbitrary>], iteration_bounds = array<i64: 1, 1, 1>, scalar_prefetch = 0 : i64, scratch_operands = 1 : i64, tpu.core_type = #tpu.core_type<tc>, window_params = [{transform_indices = @transform_0, window_bounds = array<i64: 40, 300>}, {transform_indices = @transform_1, window_bounds = array<i64: 300, 36>}, {transform_indices = @transform_2, window_bounds = array<i64: 1, 36>}, {transform_indices = @transform_3, window_bounds = array<i64: 40, 36>}]} {
    %c0_i32 = arith.constant 0 : i32
    %0 = arith.cmpi eq, %arg2, %c0_i32 : i32
    %1 = arith.extui %0 : i1 to i32
    %c0_i32_0 = arith.constant 0 : i32
    %2 = arith.cmpi ne, %1, %c0_i32_0 : i32
    scf.if %2 {
      %c0_10 = arith.constant 0 : index
      %c0_11 = arith.constant 0 : index
      %12 = vector.load %arg5[%c0_10, %c0_11] : memref<1x36xf32, #tpu.memory_space<vmem>>, vector<1x36xf32>
      %13 = vector.shape_cast %12 : vector<1x36xf32> to vector<1x36xf32>
      %14 = vector.broadcast %13 : vector<1x36xf32> to vector<40x36xf32>
      %c0_12 = arith.constant 0 : index
      %c0_13 = arith.constant 0 : index
      %15 = vector.load %arg7[%c0_12, %c0_13] : memref<40x36xf32, #tpu.memory_space<vmem>>, vector<40x36xf32>
      tpu.vector_store %arg7[%c0_12, %c0_13], %14 {strides = array<i32>} : memref<40x36xf32, #tpu.memory_space<vmem>>, vector<40x36xf32>,
    } else {
    }
    %c0 = arith.constant 0 : index
    %c0_1 = arith.constant 0 : index
    %3 = vector.load %arg7[%c0, %c0_1] : memref<40x36xf32, #tpu.memory_space<vmem>>, vector<40x36xf32>
    %c0_2 = arith.constant 0 : index
    %c0_3 = arith.constant 0 : index
    %4 = vector.load %arg3[%c0_2, %c0_3] : memref<40x300xbf16, #tpu.memory_space<vmem>>, vector<40x300xbf16>
    %c0_4 = arith.constant 0 : index
    %c0_5 = arith.constant 0 : index
    %5 = vector.load %arg4[%c0_4, %c0_5] : memref<300x36xbf16, #tpu.memory_space<vmem>>, vector<300x36xbf16>
    %cst = arith.constant dense<0.000000e+00> : vector<40x36xf32>
    %6 = tpu.matmul %4, %5, %cst {dimension_numbers = #tpu.dot_dimension_numbers<[1], [0], [0], [1], [0, 0, 1, 1], [], []>} : vector<40x300xbf16>, vector<300x36xbf16>, vector<40x36xf32> -> vector<40x36xf32>
    %7 = arith.addf %3, %6 : vector<40x36xf32>
    %c0_6 = arith.constant 0 : index
    %c0_7 = arith.constant 0 : index
    %8 = vector.load %arg7[%c0_6, %c0_7] : memref<40x36xf32, #tpu.memory_space<vmem>>, vector<40x36xf32>
    tpu.vector_store %arg7[%c0_6, %c0_7], %7 {strides = array<i32>} : memref<40x36xf32, #tpu.memory_space<vmem>>, vector<40x36xf32>,
    %c0_i32_8 = arith.constant 0 : i32
    %9 = arith.cmpi eq, %arg2, %c0_i32_8 : i32
    %10 = arith.extui %9 : i1 to i32
    %c0_i32_9 = arith.constant 0 : i32
    %11 = arith.cmpi ne, %10, %c0_i32_9 : i32
    scf.if %11 {
      %c0_10 = arith.constant 0 : index
      %c0_11 = arith.constant 0 : index
      %12 = vector.load %arg7[%c0_10, %c0_11] : memref<40x36xf32, #tpu.memory_space<vmem>>, vector<40x36xf32>
      %cst_12 = arith.constant 1.000000e-01 : f32
      %13 = vector.broadcast %cst_12 : f32 to vector<40x36xf32>
      %14 = arith.mulf %13, %12 : vector<40x36xf32>
      %15 = arith.maximumf %12, %14 : vector<40x36xf32>
      %16 = arith.truncf %15 : vector<40x36xf32> to vector<40x36xbf16>
      %c0_13 = arith.constant 0 : index
      %c0_14 = arith.constant 0 : index
      %17 = vector.load %arg6[%c0_13, %c0_14] : memref<40x36xbf16, #tpu.memory_space<vmem>>, vector<40x36xbf16>
      tpu.vector_store %arg6[%c0_13, %c0_14], %16 {strides = array<i32>} : memref<40x36xbf16, #tpu.memory_space<vmem>>, vector<40x36xbf16>,
    } else {
    }
    return
  }
  func.func @transform_0(%arg0: i32, %arg1: i32, %arg2: i32) -> (i32, i32) {
    %c0_i32 = arith.constant 0 : i32
    return %arg0, %arg2 : i32, i32
  }
  func.func @transform_1(%arg0: i32, %arg1: i32, %arg2: i32) -> (i32, i32) {
    %c0_i32 = arith.constant 0 : i32
    return %arg2, %arg1 : i32, i32
  }
  func.func @transform_2(%arg0: i32, %arg1: i32, %arg2: i32) -> (i32, i32) {
    %c0_i32 = arith.constant 0 : i32
    %c0_i32_0 = arith.constant 0 : i32
    return %c0_i32, %arg1 : i32, i32
  }
  func.func @transform_3(%arg0: i32, %arg1: i32, %arg2: i32) -> (i32, i32) {
    %c0_i32 = arith.constant 0 : i32
    return %arg0, %arg1 : i32, i32
  }
}

module attributes {stable_mosaic.version = 11 : i64} {
  func.func @_mm_bias_act_kernel(%arg0: i32, %arg1: i32, %arg2: i32, %arg3: memref<40x204xbf16, #tpu.memory_space<vmem>>, %arg4: memref<204x20xbf16, #tpu.memory_space<vmem>>, %arg5: memref<1x20xf32, #tpu.memory_space<vmem>>, %arg6: memref<40x20xbf16, #tpu.memory_space<vmem>>, %arg7: memref<40x20xf32, #tpu.memory_space<vmem>>) attributes {dimension_semantics = [#tpu.dimension_semantics<parallel>, #tpu.dimension_semantics<parallel>, #tpu.dimension_semantics<arbitrary>], iteration_bounds = array<i64: 1, 1, 1>, scalar_prefetch = 0 : i64, scratch_operands = 1 : i64, tpu.core_type = #tpu.core_type<tc>, window_params = [{transform_indices = @transform_0, window_bounds = array<i64: 40, 204>}, {transform_indices = @transform_1, window_bounds = array<i64: 204, 20>}, {transform_indices = @transform_2, window_bounds = array<i64: 1, 20>}, {transform_indices = @transform_3, window_bounds = array<i64: 40, 20>}]} {
    %c0_i32 = arith.constant 0 : i32
    %0 = arith.cmpi eq, %arg2, %c0_i32 : i32
    %1 = arith.extui %0 : i1 to i32
    %c0_i32_0 = arith.constant 0 : i32
    %2 = arith.cmpi ne, %1, %c0_i32_0 : i32
    scf.if %2 {
      %c0_10 = arith.constant 0 : index
      %c0_11 = arith.constant 0 : index
      %12 = vector.load %arg5[%c0_10, %c0_11] : memref<1x20xf32, #tpu.memory_space<vmem>>, vector<1x20xf32>
      %13 = vector.shape_cast %12 : vector<1x20xf32> to vector<1x20xf32>
      %14 = vector.broadcast %13 : vector<1x20xf32> to vector<40x20xf32>
      %c0_12 = arith.constant 0 : index
      %c0_13 = arith.constant 0 : index
      %15 = vector.load %arg7[%c0_12, %c0_13] : memref<40x20xf32, #tpu.memory_space<vmem>>, vector<40x20xf32>
      tpu.vector_store %arg7[%c0_12, %c0_13], %14 {strides = array<i32>} : memref<40x20xf32, #tpu.memory_space<vmem>>, vector<40x20xf32>,
    } else {
    }
    %c0 = arith.constant 0 : index
    %c0_1 = arith.constant 0 : index
    %3 = vector.load %arg7[%c0, %c0_1] : memref<40x20xf32, #tpu.memory_space<vmem>>, vector<40x20xf32>
    %c0_2 = arith.constant 0 : index
    %c0_3 = arith.constant 0 : index
    %4 = vector.load %arg3[%c0_2, %c0_3] : memref<40x204xbf16, #tpu.memory_space<vmem>>, vector<40x204xbf16>
    %c0_4 = arith.constant 0 : index
    %c0_5 = arith.constant 0 : index
    %5 = vector.load %arg4[%c0_4, %c0_5] : memref<204x20xbf16, #tpu.memory_space<vmem>>, vector<204x20xbf16>
    %cst = arith.constant dense<0.000000e+00> : vector<40x20xf32>
    %6 = tpu.matmul %4, %5, %cst {dimension_numbers = #tpu.dot_dimension_numbers<[1], [0], [0], [1], [0, 0, 1, 1], [], []>} : vector<40x204xbf16>, vector<204x20xbf16>, vector<40x20xf32> -> vector<40x20xf32>
    %7 = arith.addf %3, %6 : vector<40x20xf32>
    %c0_6 = arith.constant 0 : index
    %c0_7 = arith.constant 0 : index
    %8 = vector.load %arg7[%c0_6, %c0_7] : memref<40x20xf32, #tpu.memory_space<vmem>>, vector<40x20xf32>
    tpu.vector_store %arg7[%c0_6, %c0_7], %7 {strides = array<i32>} : memref<40x20xf32, #tpu.memory_space<vmem>>, vector<40x20xf32>,
    %c0_i32_8 = arith.constant 0 : i32
    %9 = arith.cmpi eq, %arg2, %c0_i32_8 : i32
    %10 = arith.extui %9 : i1 to i32
    %c0_i32_9 = arith.constant 0 : i32
    %11 = arith.cmpi ne, %10, %c0_i32_9 : i32
    scf.if %11 {
      %c0_10 = arith.constant 0 : index
      %c0_11 = arith.constant 0 : index
      %12 = vector.load %arg7[%c0_10, %c0_11] : memref<40x20xf32, #tpu.memory_space<vmem>>, vector<40x20xf32>
      %cst_12 = arith.constant 1.000000e-01 : f32
      %13 = vector.broadcast %cst_12 : f32 to vector<40x20xf32>
      %14 = arith.mulf %13, %12 : vector<40x20xf32>
      %15 = arith.maximumf %12, %14 : vector<40x20xf32>
      %16 = arith.truncf %15 : vector<40x20xf32> to vector<40x20xbf16>
      %c0_13 = arith.constant 0 : index
      %c0_14 = arith.constant 0 : index
      %17 = vector.load %arg6[%c0_13, %c0_14] : memref<40x20xbf16, #tpu.memory_space<vmem>>, vector<40x20xbf16>
      tpu.vector_store %arg6[%c0_13, %c0_14], %16 {strides = array<i32>} : memref<40x20xbf16, #tpu.memory_space<vmem>>, vector<40x20xbf16>,
    } else {
    }
    return
  }
  func.func @transform_0(%arg0: i32, %arg1: i32, %arg2: i32) -> (i32, i32) {
    %c0_i32 = arith.constant 0 : i32
    return %arg0, %arg2 : i32, i32
  }
  func.func @transform_1(%arg0: i32, %arg1: i32, %arg2: i32) -> (i32, i32) {
    %c0_i32 = arith.constant 0 : i32
    return %arg2, %arg1 : i32, i32
  }
  func.func @transform_2(%arg0: i32, %arg1: i32, %arg2: i32) -> (i32, i32) {
    %c0_i32 = arith.constant 0 : i32
    %c0_i32_0 = arith.constant 0 : i32
    return %c0_i32, %arg1 : i32, i32
  }
  func.func @transform_3(%arg0: i32, %arg1: i32, %arg2: i32) -> (i32, i32) {
    %c0_i32 = arith.constant 0 : i32
    return %arg0, %arg1 : i32, i32
  }
}

module attributes {stable_mosaic.version = 11 : i64} {
  func.func @_mm_bias_act_kernel(%arg0: i32, %arg1: i32, %arg2: i32, %arg3: memref<40x156xbf16, #tpu.memory_space<vmem>>, %arg4: memref<156x12xbf16, #tpu.memory_space<vmem>>, %arg5: memref<1x12xf32, #tpu.memory_space<vmem>>, %arg6: memref<40x12xbf16, #tpu.memory_space<vmem>>, %arg7: memref<40x12xf32, #tpu.memory_space<vmem>>) attributes {dimension_semantics = [#tpu.dimension_semantics<parallel>, #tpu.dimension_semantics<parallel>, #tpu.dimension_semantics<arbitrary>], iteration_bounds = array<i64: 1, 1, 1>, scalar_prefetch = 0 : i64, scratch_operands = 1 : i64, tpu.core_type = #tpu.core_type<tc>, window_params = [{transform_indices = @transform_0, window_bounds = array<i64: 40, 156>}, {transform_indices = @transform_1, window_bounds = array<i64: 156, 12>}, {transform_indices = @transform_2, window_bounds = array<i64: 1, 12>}, {transform_indices = @transform_3, window_bounds = array<i64: 40, 12>}]} {
    %c0_i32 = arith.constant 0 : i32
    %0 = arith.cmpi eq, %arg2, %c0_i32 : i32
    %1 = arith.extui %0 : i1 to i32
    %c0_i32_0 = arith.constant 0 : i32
    %2 = arith.cmpi ne, %1, %c0_i32_0 : i32
    scf.if %2 {
      %c0_10 = arith.constant 0 : index
      %c0_11 = arith.constant 0 : index
      %12 = vector.load %arg5[%c0_10, %c0_11] : memref<1x12xf32, #tpu.memory_space<vmem>>, vector<1x12xf32>
      %13 = vector.shape_cast %12 : vector<1x12xf32> to vector<1x12xf32>
      %14 = vector.broadcast %13 : vector<1x12xf32> to vector<40x12xf32>
      %c0_12 = arith.constant 0 : index
      %c0_13 = arith.constant 0 : index
      %15 = vector.load %arg7[%c0_12, %c0_13] : memref<40x12xf32, #tpu.memory_space<vmem>>, vector<40x12xf32>
      tpu.vector_store %arg7[%c0_12, %c0_13], %14 {strides = array<i32>} : memref<40x12xf32, #tpu.memory_space<vmem>>, vector<40x12xf32>,
    } else {
    }
    %c0 = arith.constant 0 : index
    %c0_1 = arith.constant 0 : index
    %3 = vector.load %arg7[%c0, %c0_1] : memref<40x12xf32, #tpu.memory_space<vmem>>, vector<40x12xf32>
    %c0_2 = arith.constant 0 : index
    %c0_3 = arith.constant 0 : index
    %4 = vector.load %arg3[%c0_2, %c0_3] : memref<40x156xbf16, #tpu.memory_space<vmem>>, vector<40x156xbf16>
    %c0_4 = arith.constant 0 : index
    %c0_5 = arith.constant 0 : index
    %5 = vector.load %arg4[%c0_4, %c0_5] : memref<156x12xbf16, #tpu.memory_space<vmem>>, vector<156x12xbf16>
    %cst = arith.constant dense<0.000000e+00> : vector<40x12xf32>
    %6 = tpu.matmul %4, %5, %cst {dimension_numbers = #tpu.dot_dimension_numbers<[1], [0], [0], [1], [0, 0, 1, 1], [], []>} : vector<40x156xbf16>, vector<156x12xbf16>, vector<40x12xf32> -> vector<40x12xf32>
    %7 = arith.addf %3, %6 : vector<40x12xf32>
    %c0_6 = arith.constant 0 : index
    %c0_7 = arith.constant 0 : index
    %8 = vector.load %arg7[%c0_6, %c0_7] : memref<40x12xf32, #tpu.memory_space<vmem>>, vector<40x12xf32>
    tpu.vector_store %arg7[%c0_6, %c0_7], %7 {strides = array<i32>} : memref<40x12xf32, #tpu.memory_space<vmem>>, vector<40x12xf32>,
    %c0_i32_8 = arith.constant 0 : i32
    %9 = arith.cmpi eq, %arg2, %c0_i32_8 : i32
    %10 = arith.extui %9 : i1 to i32
    %c0_i32_9 = arith.constant 0 : i32
    %11 = arith.cmpi ne, %10, %c0_i32_9 : i32
    scf.if %11 {
      %c0_10 = arith.constant 0 : index
      %c0_11 = arith.constant 0 : index
      %12 = vector.load %arg7[%c0_10, %c0_11] : memref<40x12xf32, #tpu.memory_space<vmem>>, vector<40x12xf32>
      %cst_12 = arith.constant 1.000000e-01 : f32
      %13 = vector.broadcast %cst_12 : f32 to vector<40x12xf32>
      %14 = arith.mulf %13, %12 : vector<40x12xf32>
      %15 = arith.maximumf %12, %14 : vector<40x12xf32>
      %16 = arith.truncf %15 : vector<40x12xf32> to vector<40x12xbf16>
      %c0_13 = arith.constant 0 : index
      %c0_14 = arith.constant 0 : index
      %17 = vector.load %arg6[%c0_13, %c0_14] : memref<40x12xbf16, #tpu.memory_space<vmem>>, vector<40x12xbf16>
      tpu.vector_store %arg6[%c0_13, %c0_14], %16 {strides = array<i32>} : memref<40x12xbf16, #tpu.memory_space<vmem>>, vector<40x12xbf16>,
    } else {
    }
    return
  }
  func.func @transform_0(%arg0: i32, %arg1: i32, %arg2: i32) -> (i32, i32) {
    %c0_i32 = arith.constant 0 : i32
    return %arg0, %arg2 : i32, i32
  }
  func.func @transform_1(%arg0: i32, %arg1: i32, %arg2: i32) -> (i32, i32) {
    %c0_i32 = arith.constant 0 : i32
    return %arg2, %arg1 : i32, i32
  }
  func.func @transform_2(%arg0: i32, %arg1: i32, %arg2: i32) -> (i32, i32) {
    %c0_i32 = arith.constant 0 : i32
    %c0_i32_0 = arith.constant 0 : i32
    return %c0_i32, %arg1 : i32, i32
  }
  func.func @transform_3(%arg0: i32, %arg1: i32, %arg2: i32) -> (i32, i32) {
    %c0_i32 = arith.constant 0 : i32
    return %arg0, %arg1 : i32, i32
  }
}

module attributes {stable_mosaic.version = 11 : i64} {
  func.func @_mm_bias_act_kernel(%arg0: i32, %arg1: i32, %arg2: i32, %arg3: memref<40x60xbf16, #tpu.memory_space<vmem>>, %arg4: memref<60x12xbf16, #tpu.memory_space<vmem>>, %arg5: memref<1x12xf32, #tpu.memory_space<vmem>>, %arg6: memref<40x12xbf16, #tpu.memory_space<vmem>>, %arg7: memref<40x12xf32, #tpu.memory_space<vmem>>) attributes {dimension_semantics = [#tpu.dimension_semantics<parallel>, #tpu.dimension_semantics<parallel>, #tpu.dimension_semantics<arbitrary>], iteration_bounds = array<i64: 1, 1, 1>, scalar_prefetch = 0 : i64, scratch_operands = 1 : i64, tpu.core_type = #tpu.core_type<tc>, window_params = [{transform_indices = @transform_0, window_bounds = array<i64: 40, 60>}, {transform_indices = @transform_1, window_bounds = array<i64: 60, 12>}, {transform_indices = @transform_2, window_bounds = array<i64: 1, 12>}, {transform_indices = @transform_3, window_bounds = array<i64: 40, 12>}]} {
    %c0_i32 = arith.constant 0 : i32
    %0 = arith.cmpi eq, %arg2, %c0_i32 : i32
    %1 = arith.extui %0 : i1 to i32
    %c0_i32_0 = arith.constant 0 : i32
    %2 = arith.cmpi ne, %1, %c0_i32_0 : i32
    scf.if %2 {
      %c0_10 = arith.constant 0 : index
      %c0_11 = arith.constant 0 : index
      %12 = vector.load %arg5[%c0_10, %c0_11] : memref<1x12xf32, #tpu.memory_space<vmem>>, vector<1x12xf32>
      %13 = vector.shape_cast %12 : vector<1x12xf32> to vector<1x12xf32>
      %14 = vector.broadcast %13 : vector<1x12xf32> to vector<40x12xf32>
      %c0_12 = arith.constant 0 : index
      %c0_13 = arith.constant 0 : index
      %15 = vector.load %arg7[%c0_12, %c0_13] : memref<40x12xf32, #tpu.memory_space<vmem>>, vector<40x12xf32>
      tpu.vector_store %arg7[%c0_12, %c0_13], %14 {strides = array<i32>} : memref<40x12xf32, #tpu.memory_space<vmem>>, vector<40x12xf32>,
    } else {
    }
    %c0 = arith.constant 0 : index
    %c0_1 = arith.constant 0 : index
    %3 = vector.load %arg7[%c0, %c0_1] : memref<40x12xf32, #tpu.memory_space<vmem>>, vector<40x12xf32>
    %c0_2 = arith.constant 0 : index
    %c0_3 = arith.constant 0 : index
    %4 = vector.load %arg3[%c0_2, %c0_3] : memref<40x60xbf16, #tpu.memory_space<vmem>>, vector<40x60xbf16>
    %c0_4 = arith.constant 0 : index
    %c0_5 = arith.constant 0 : index
    %5 = vector.load %arg4[%c0_4, %c0_5] : memref<60x12xbf16, #tpu.memory_space<vmem>>, vector<60x12xbf16>
    %cst = arith.constant dense<0.000000e+00> : vector<40x12xf32>
    %6 = tpu.matmul %4, %5, %cst {dimension_numbers = #tpu.dot_dimension_numbers<[1], [0], [0], [1], [0, 0, 1, 1], [], []>} : vector<40x60xbf16>, vector<60x12xbf16>, vector<40x12xf32> -> vector<40x12xf32>
    %7 = arith.addf %3, %6 : vector<40x12xf32>
    %c0_6 = arith.constant 0 : index
    %c0_7 = arith.constant 0 : index
    %8 = vector.load %arg7[%c0_6, %c0_7] : memref<40x12xf32, #tpu.memory_space<vmem>>, vector<40x12xf32>
    tpu.vector_store %arg7[%c0_6, %c0_7], %7 {strides = array<i32>} : memref<40x12xf32, #tpu.memory_space<vmem>>, vector<40x12xf32>,
    %c0_i32_8 = arith.constant 0 : i32
    %9 = arith.cmpi eq, %arg2, %c0_i32_8 : i32
    %10 = arith.extui %9 : i1 to i32
    %c0_i32_9 = arith.constant 0 : i32
    %11 = arith.cmpi ne, %10, %c0_i32_9 : i32
    scf.if %11 {
      %c0_10 = arith.constant 0 : index
      %c0_11 = arith.constant 0 : index
      %12 = vector.load %arg7[%c0_10, %c0_11] : memref<40x12xf32, #tpu.memory_space<vmem>>, vector<40x12xf32>
      %cst_12 = arith.constant 1.000000e-01 : f32
      %13 = vector.broadcast %cst_12 : f32 to vector<40x12xf32>
      %14 = arith.mulf %13, %12 : vector<40x12xf32>
      %15 = arith.maximumf %12, %14 : vector<40x12xf32>
      %16 = arith.truncf %15 : vector<40x12xf32> to vector<40x12xbf16>
      %c0_13 = arith.constant 0 : index
      %c0_14 = arith.constant 0 : index
      %17 = vector.load %arg6[%c0_13, %c0_14] : memref<40x12xbf16, #tpu.memory_space<vmem>>, vector<40x12xbf16>
      tpu.vector_store %arg6[%c0_13, %c0_14], %16 {strides = array<i32>} : memref<40x12xbf16, #tpu.memory_space<vmem>>, vector<40x12xbf16>,
    } else {
    }
    return
  }
  func.func @transform_0(%arg0: i32, %arg1: i32, %arg2: i32) -> (i32, i32) {
    %c0_i32 = arith.constant 0 : i32
    return %arg0, %arg2 : i32, i32
  }
  func.func @transform_1(%arg0: i32, %arg1: i32, %arg2: i32) -> (i32, i32) {
    %c0_i32 = arith.constant 0 : i32
    return %arg2, %arg1 : i32, i32
  }
  func.func @transform_2(%arg0: i32, %arg1: i32, %arg2: i32) -> (i32, i32) {
    %c0_i32 = arith.constant 0 : i32
    %c0_i32_0 = arith.constant 0 : i32
    return %c0_i32, %arg1 : i32, i32
  }
  func.func @transform_3(%arg0: i32, %arg1: i32, %arg2: i32) -> (i32, i32) {
    %c0_i32 = arith.constant 0 : i32
    return %arg0, %arg1 : i32, i32
  }
}

module attributes {stable_mosaic.version = 11 : i64} {
  func.func @_mm_bias_act_kernel(%arg0: i32, %arg1: i32, %arg2: i32, %arg3: memref<40x84xbf16, #tpu.memory_space<vmem>>, %arg4: memref<84x5xbf16, #tpu.memory_space<vmem>>, %arg5: memref<1x5xf32, #tpu.memory_space<vmem>>, %arg6: memref<40x5xf32, #tpu.memory_space<vmem>>, %arg7: memref<40x5xf32, #tpu.memory_space<vmem>>) attributes {dimension_semantics = [#tpu.dimension_semantics<parallel>, #tpu.dimension_semantics<parallel>, #tpu.dimension_semantics<arbitrary>], iteration_bounds = array<i64: 1, 1, 1>, scalar_prefetch = 0 : i64, scratch_operands = 1 : i64, tpu.core_type = #tpu.core_type<tc>, window_params = [{transform_indices = @transform_0, window_bounds = array<i64: 40, 84>}, {transform_indices = @transform_1, window_bounds = array<i64: 84, 5>}, {transform_indices = @transform_2, window_bounds = array<i64: 1, 5>}, {transform_indices = @transform_3, window_bounds = array<i64: 40, 5>}]} {
    %c0_i32 = arith.constant 0 : i32
    %0 = arith.cmpi eq, %arg2, %c0_i32 : i32
    %1 = arith.extui %0 : i1 to i32
    %c0_i32_0 = arith.constant 0 : i32
    %2 = arith.cmpi ne, %1, %c0_i32_0 : i32
    scf.if %2 {
      %c0_10 = arith.constant 0 : index
      %c0_11 = arith.constant 0 : index
      %12 = vector.load %arg5[%c0_10, %c0_11] : memref<1x5xf32, #tpu.memory_space<vmem>>, vector<1x5xf32>
      %13 = vector.shape_cast %12 : vector<1x5xf32> to vector<1x5xf32>
      %14 = vector.broadcast %13 : vector<1x5xf32> to vector<40x5xf32>
      %c0_12 = arith.constant 0 : index
      %c0_13 = arith.constant 0 : index
      %15 = vector.load %arg7[%c0_12, %c0_13] : memref<40x5xf32, #tpu.memory_space<vmem>>, vector<40x5xf32>
      tpu.vector_store %arg7[%c0_12, %c0_13], %14 {strides = array<i32>} : memref<40x5xf32, #tpu.memory_space<vmem>>, vector<40x5xf32>,
    } else {
    }
    %c0 = arith.constant 0 : index
    %c0_1 = arith.constant 0 : index
    %3 = vector.load %arg7[%c0, %c0_1] : memref<40x5xf32, #tpu.memory_space<vmem>>, vector<40x5xf32>
    %c0_2 = arith.constant 0 : index
    %c0_3 = arith.constant 0 : index
    %4 = vector.load %arg3[%c0_2, %c0_3] : memref<40x84xbf16, #tpu.memory_space<vmem>>, vector<40x84xbf16>
    %c0_4 = arith.constant 0 : index
    %c0_5 = arith.constant 0 : index
    %5 = vector.load %arg4[%c0_4, %c0_5] : memref<84x5xbf16, #tpu.memory_space<vmem>>, vector<84x5xbf16>
    %cst = arith.constant dense<0.000000e+00> : vector<40x5xf32>
    %6 = tpu.matmul %4, %5, %cst {dimension_numbers = #tpu.dot_dimension_numbers<[1], [0], [0], [1], [0, 0, 1, 1], [], []>} : vector<40x84xbf16>, vector<84x5xbf16>, vector<40x5xf32> -> vector<40x5xf32>
    %7 = arith.addf %3, %6 : vector<40x5xf32>
    %c0_6 = arith.constant 0 : index
    %c0_7 = arith.constant 0 : index
    %8 = vector.load %arg7[%c0_6, %c0_7] : memref<40x5xf32, #tpu.memory_space<vmem>>, vector<40x5xf32>
    tpu.vector_store %arg7[%c0_6, %c0_7], %7 {strides = array<i32>} : memref<40x5xf32, #tpu.memory_space<vmem>>, vector<40x5xf32>,
    %c0_i32_8 = arith.constant 0 : i32
    %9 = arith.cmpi eq, %arg2, %c0_i32_8 : i32
    %10 = arith.extui %9 : i1 to i32
    %c0_i32_9 = arith.constant 0 : i32
    %11 = arith.cmpi ne, %10, %c0_i32_9 : i32
    scf.if %11 {
      %c0_10 = arith.constant 0 : index
      %c0_11 = arith.constant 0 : index
      %12 = vector.load %arg7[%c0_10, %c0_11] : memref<40x5xf32, #tpu.memory_space<vmem>>, vector<40x5xf32>
      %c0_12 = arith.constant 0 : index
      %c0_13 = arith.constant 0 : index
      %13 = vector.load %arg6[%c0_12, %c0_13] : memref<40x5xf32, #tpu.memory_space<vmem>>, vector<40x5xf32>
      tpu.vector_store %arg6[%c0_12, %c0_13], %12 {strides = array<i32>} : memref<40x5xf32, #tpu.memory_space<vmem>>, vector<40x5xf32>,
    } else {
    }
    return
  }
  func.func @transform_0(%arg0: i32, %arg1: i32, %arg2: i32) -> (i32, i32) {
    %c0_i32 = arith.constant 0 : i32
    return %arg0, %arg2 : i32, i32
  }
  func.func @transform_1(%arg0: i32, %arg1: i32, %arg2: i32) -> (i32, i32) {
    %c0_i32 = arith.constant 0 : i32
    return %arg2, %arg1 : i32, i32
  }
  func.func @transform_2(%arg0: i32, %arg1: i32, %arg2: i32) -> (i32, i32) {
    %c0_i32 = arith.constant 0 : i32
    %c0_i32_0 = arith.constant 0 : i32
    return %c0_i32, %arg1 : i32, i32
  }
  func.func @transform_3(%arg0: i32, %arg1: i32, %arg2: i32) -> (i32, i32) {
    %c0_i32 = arith.constant 0 : i32
    return %arg0, %arg1 : i32, i32
  }
}

</mosaic_0001>

<bundles_post_ra>
// kernel: mbstftd_forward.12
= control target key start
LH: loop header
LB: loop body
LE: loop exit
PB: predicated region body
PF: predicated region fallthrough
CT: control target
= control target key end

     0   :  { %vm23_vm0 = vcmask 539648   ;;  %vm84_vm1 = vcmask 523264   ;;  %s261_s1 = inlined_call_operand.vmem [shape: bf16[64,66], index: 1, kind: input, shape index: {}]   ;;  %s262_s2 = inlined_call_operand.vmem [shape: f32[1,66], index: 2, kind: input, shape index: {}]   ;;  %s263_s0 = inlined_call_operand.vmem [shape: bf16[40,64], index: 0, kind: input, shape index: {}]   ;;  %s264_s3 = inlined_call_operand.vmem [shape: f32[40,66], index: 3, kind: output, shape index: {}]  }
   0x1   :  { %v177_v0 = vld [vmem:[%s261_s1 + $0x18] sm:$0xff]  ;;  %v176_v1 = vld [vmem:[%s261_s1 + $0x10] sm:$0xff]  ;;  %v186_v2 = vld [vmem:[%s262_s2] ss:$0 sm:$0xff] }
   0x2   :  { %98 = vmatpush.bf16.msra.mxu0 %v177_v0  ;;  %178 = vmatpush.bf16.msra.mxu1 %v177_v0  ;;  %24 = vst.msk [vmem:[#allocation2] sm:$0xff] %vm23_vm0, %v186_v2  ;;  %v175_v3 = vld [vmem:[%s261_s1 + $0x8] sm:$0xff]  ;;  %v38_v4 = vld [vmem:[%s263_s0 + $0x10] sm:$0xf]  ;;  %v174_v5 = vld [vmem:[%s261_s1] sm:$0xff] }
   0x3   :  { %179 = vmatpush.bf16.msra.mxu2 %v177_v0  ;;  %25 = vst.msk [vmem:[#allocation2 + $0x8] sm:$0xff] %vm23_vm0, %v186_v2  ;;  %v56_v6 = vunpack.c.l.b16 %v38_v4  ;;  %v172_v7 = vld [vmem:[%s263_s0] sm:$0xff]  ;;  %v173_v8 = vld [vmem:[%s263_s0 + $0x8] sm:$0xff] }
   0x4   :  { %26 = vst.msk [vmem:[#allocation2 + $0x10] sm:$0xff] %vm23_vm0, %v186_v2 }
   0x5   :  { %27 = vst.msk [vmem:[#allocation2 + $0x18] sm:$0xff] %vm23_vm0, %v186_v2  ;;  %v59_v9 = vpack.c.b16 %v56_v6, %v56_v6 }
   0x6   :  { %99 = vmatpush.bf16.msra.mxu0 %v176_v1  ;;  %180 = vmatpush.bf16.msra.mxu1 %v176_v1  ;;  %28 = vst.msk [vmem:[#allocation2 + $0x20] sm:$0xff] %vm23_vm0, %v186_v2 }
   0x7   :  { %181 = vmatpush.bf16.msra.mxu2 %v176_v1 }
   0x9   :  { %v29_v10 = vld [vmem:[#allocation2] sm:$0xff] }
   0xa   :  { %100 = vmatpush.bf16.msra.mxu0 %v175_v3  ;;  %182 = vmatpush.bf16.msra.mxu1 %v175_v3  ;;  %v30_v17 = vld [vmem:[#allocation2 + $0x8] sm:$0xff] }
   0xb   :  { %183 = vmatpush.bf16.msra.mxu2 %v175_v3  ;;  %v31_v11 = vld [vmem:[#allocation2 + $0x10] sm:$0xff] }
   0xc   :  { %v32_v19 = vld [vmem:[#allocation2 + $0x18] sm:$0xff] }
   0xd   :  { %v33_v16 = vld [vmem:[#allocation2 + $0x20] sm:$0xff] }
   0xe   :  { %101 = vmatpush.bf16.msra.mxu0 %v174_v5  ;;  %184 = vmatpush.bf16.msra.mxu1 %v174_v5 }
   0xf   :  { %185 = vmatpush.bf16.msra.mxu2 %v174_v5 }
  0x11   :  { %169 = vmatmul.msk.bf16.vlgmr.msra.gmra.mxu0 %vm84_vm1, %v172_v7  ;;  %170 = vmatmul.msk.bf16.vlgmr.msra.gmra.mxu1 %vm84_vm1, %v173_v8 }
  0x12   :  { %171 = vmatmul.msk.bf16.vlgmr.msra.gmra.mxu2 %vm84_vm1, %v59_v9 }
  0x8e   :  { %v103_v12 = vpop.f32.mrf.mxu0  ;;  %v108_v13 = vpop.f32.mrf.mxu1 }
  0x8f   :  { %v117_v14 = vadd.f32 %v103_v12, %v29_v10  ;;  %v119_v15 = vadd.f32 %v108_v13, %v31_v11 }
  0x91   :  { %123 = vst.msk [vmem:[#allocation2] sm:$0xff] %vm23_vm0, %v117_v14 }
  0x92   :  { %125 = vst.msk [vmem:[#allocation2 + $0x10] sm:$0xff] %vm23_vm0, %v119_v15 }
  0x95   :  { %v113_v18 = vpop.f32.mrf.mxu2 }
  0x96   :  { %v121_v20 = vadd.f32 %v113_v18, %v33_v16  ;;  %v105_v21 = vpop.f32.mrf.mxu0  ;;  %v110_v22 = vpop.f32.mrf.mxu1 }
  0x97   :  { %v118_v23 = vadd.f32 %v105_v21, %v30_v17  ;;  %v120_v25 = vadd.f32 %v110_v22, %v32_v19 }
  0x98   :  { %v131_v24 = vld [vmem:[#allocation2] sm:$0xff]  ;;  %127 = vst.msk [vmem:[#allocation2 + $0x20] sm:$0xff] %vm23_vm0, %v121_v20 }
  0x99   :  { %136 = vst.msk [vmem:[%s264_s3] sm:$0xff] %vm23_vm0, %v131_v24  ;;  %v133_v26 = vld [vmem:[#allocation2 + $0x10] sm:$0xff] }
  0x9a   :  { %138 = vst.msk [vmem:[%s264_s3 + $0x10] sm:$0xff] %vm23_vm0, %v133_v26 }
  0x9b   :  { %124 = vst.msk [vmem:[#allocation2 + $0x8] sm:$0xff] %vm23_vm0, %v118_v23 }
  0x9c   :  { %126 = vst.msk [vmem:[#allocation2 + $0x18] sm:$0xff] %vm23_vm0, %v120_v25 }
  0x9d   :  { %v115_v27 = vpop.f32.mrf.mxu2 }
  0x9f   :  { %v135_v28 = vld [vmem:[#allocation2 + $0x20] sm:$0xff] }
  0xa0   :  { %140 = vst.msk [vmem:[%s264_s3 + $0x20] sm:$0xff] %vm23_vm0, %v135_v28 }
  0xa2   :  { %v132_v29 = vld [vmem:[#allocation2 + $0x8] sm:$0xff] }
  0xa3   :  { %137 = vst.msk [vmem:[%s264_s3 + $0x8] sm:$0xff] %vm23_vm0, %v132_v29  ;;  %v134_v30 = vld [vmem:[#allocation2 + $0x18] sm:$0xff] }
  0xa4   :  { %139 = vst.msk [vmem:[%s264_s3 + $0x18] sm:$0xff] %vm23_vm0, %v134_v30 }

// kernel: tile.58
= control target key start
LH: loop header
LB: loop body
LE: loop exit
PB: predicated region body
PF: predicated region fallthrough
CT: control target
= control target key end

     0   :  { %s28_s0 = inlined_call_operand.vmem [shape: f32[4], index: 0, kind: input, shape index: {}]   ;;  %s29_s1 = inlined_call_operand.vmem [shape: f32[16,4], index: 1, kind: output, shape index: {}]  }
   0x1   :  { %v4_v0 = vld [vmem:[%s28_s0] ss:$0 sm:$0xff] }
   0x2   :  { %5 = vst [vmem:[%s29_s1] sm:$0xff] %v4_v0 }
   0x3   :  { %8 = vst [vmem:[%s29_s1 + $0x8] sm:$0xff] %v4_v0 }

// kernel: tile.59
= control target key start
LH: loop header
LB: loop body
LE: loop exit
PB: predicated region body
PF: predicated region fallthrough
CT: control target
= control target key end

     0   :  { %s131_s10 = smov 60   ;;  %s132_s11 = smov 52   ;;  %vm3_vm0 = vcmask 31744   ;;  %vm9_vm1 = vcmask 523744   ;;  %vm15_vm2 = vcmask 490944   ;;  %vm21_vm3 = vcmask 458144   ;;  %s207_s0 = inlined_call_operand.vmem [shape: f32[16,4], index: 0, kind: input, shape index: {}]   ;;  %s208_s1 = inlined_call_operand.vmem [shape: f32[1,64], index: 1, kind: output, shape index: {}]  }
   0x1   :  { %v101_v0 = vld [vmem:[%s207_s0 + $0xf] sm:$0x1]   ;;  %v103_v1 = vld [vmem:[%s207_s0 + $0xd] sm:$0x1]   ;;  %v105_v2 = vld [vmem:[%s207_s0 + $0xb] sm:$0x1]  }
   0x2   :  { %7 = vrot.lane.b32.xlu0 %v101_v0, %s131_s10  ;;  %19 = vrot.lane.b32.xlu1 %v103_v1, %s132_s11  ;;  %s133_s14 = smov 44   ;;  %v102_v3 = vld [vmem:[%s207_s0 + $0xe] sm:$0x1]   ;;  %v104_v4 = vld [vmem:[%s207_s0 + $0xc] sm:$0x1]   ;;  %s134_s19 = smov 56  }
   0x3   :  { %31 = vrot.lane.b32.xlu2 %v105_v2, %s133_s14  ;;  %s135_s20 = smov 48   ;;  %v106_v5 = vld [vmem:[%s207_s0 + $0xa] sm:$0x1]   ;;  %s136_s23 = smov 40   ;;  %v107_v6 = vld [vmem:[%s207_s0 + $0x9] sm:$0x1]  }
   0x4   :  { %v108_v7 = vld [vmem:[%s207_s0 + $0x8] sm:$0x1]   ;;  %s137_s28 = smov 36   ;;  %s138_s29 = smov 32   ;;  %v109_v8 = vld [vmem:[%s207_s0 + $0x7] sm:$0x1]  }
   0x5   :  { %s139_s3 = smov 28   ;;  %v110_v9 = vld [vmem:[%s207_s0 + $0x6] sm:$0x1]   ;;  %v111_v10 = vld [vmem:[%s207_s0 + $0x5] sm:$0x1]   ;;  %s140_s8 = smov 24  }
   0x6   :  { %s141_s9 = smov 20   ;;  %v112_v11 = vld [vmem:[%s207_s0 + $0x4] sm:$0x1]   ;;  %s142_s12 = smov 16   ;;  %v113_v12 = vld [vmem:[%s207_s0 + $0x3] sm:$0x1]  }
   0x7   :  { %v114_v13 = vld [vmem:[%s207_s0 + $0x2] sm:$0x1]   ;;  %s143_s17 = smov 12   ;;  %s144_s18 = smov 8   ;;  %v115_v14 = vld [vmem:[%s207_s0 + $0x1] sm:$0x1]  }
   0x8   :  { %s145_s21 = smov 4   ;;  %v2_v15 = vld [vmem:[%s207_s0] sm:$0x1]   ;;  %vm27_vm4 = vcmask 425344   ;;  %vm33_vm5 = vcmask 392544   ;;  %vm39_vm6 = vcmask 359744  }
   0x9   :  { %4 = vst.msk [vmem:[#allocation0] sm:$0x1] %vm3_vm0, %v2_v15   ;;  %vm45_vm7 = vcmask 326944   ;;  %vm51_vm8 = vcmask 294144   ;;  %vm57_vm9 = vcmask 261344   ;;  %vm63_vm10 = vcmask 228544  }
   0xa   :  { %13 = vrot.lane.b32.xlu0 %v102_v3, %s134_s19  ;;  %25 = vrot.lane.b32.xlu1 %v104_v4, %s135_s20  ;;  %vm69_vm11 = vcmask 195744   ;;  %vm75_vm12 = vcmask 162944   ;;  %vm81_vm13 = vcmask 130144   ;;  %vm87_vm14 = vcmask 97344  }
   0xb   :  { %37 = vrot.lane.b32.xlu2 %v106_v5, %s136_s23  ;;  %vm93_vm15 = vcmask 64544  }
  0x12   :  { %43 = vrot.lane.b32.xlu0 %v107_v6, %s137_s28  ;;  %49 = vrot.lane.b32.xlu1 %v108_v7, %s138_s29 }
  0x13   :  { %55 = vrot.lane.b32.xlu2 %v109_v8, %s139_s3 }
  0x1a   :  { %61 = vrot.lane.b32.xlu0 %v110_v9, %s140_s8  ;;  %67 = vrot.lane.b32.xlu1 %v111_v10, %s141_s9 }
  0x1b   :  { %73 = vrot.lane.b32.xlu2 %v112_v11, %s142_s12 }
  0x22   :  { %79 = vrot.lane.b32.xlu0 %v113_v12, %s143_s17  ;;  %85 = vrot.lane.b32.xlu1 %v114_v13, %s144_s18 }
  0x23   :  { %91 = vrot.lane.b32.xlu2 %v115_v14, %s145_s21 }
  0x5d   :  { %v32_v16 = vpop.permute.xlu2 %31  }
  0x65   :  { %v38_v17 = vpop.permute.xlu2 %37  }
  0x6d   :  { %v56_v18 = vpop.permute.xlu2 %55  }
  0x74   :  { %v8_v19 = vpop.permute.xlu0 %7   ;;  %v20_v20 = vpop.permute.xlu1 %19  }
  0x75   :  { %10 = vst.msk [vmem:[#allocation0] sm:$0x1] %vm9_vm1, %v8_v19   ;;  %v74_v21 = vpop.permute.xlu2 %73  }
  0x7c   :  { %v14_v22 = vpop.permute.xlu0 %13   ;;  %v26_v23 = vpop.permute.xlu1 %25  }
  0x7d   :  { %16 = vst.msk [vmem:[#allocation0] sm:$0x1] %vm15_vm2, %v14_v22   ;;  %v92_v24 = vpop.permute.xlu2 %91  }
  0x7e   :  { %22 = vst.msk [vmem:[#allocation0] sm:$0x1] %vm21_vm3, %v20_v20  }
  0x7f   :  { %28 = vst.msk [vmem:[#allocation0] sm:$0x1] %vm27_vm4, %v26_v23  }
  0x80   :  { %34 = vst.msk [vmem:[#allocation0] sm:$0x1] %vm33_vm5, %v32_v16  }
  0x81   :  { %40 = vst.msk [vmem:[#allocation0] sm:$0x1] %vm39_vm6, %v38_v17  }
  0x84   :  { %v44_v25 = vpop.permute.xlu0 %43   ;;  %v50_v26 = vpop.permute.xlu1 %49  }
  0x85   :  { %46 = vst.msk [vmem:[#allocation0] sm:$0x1] %vm45_vm7, %v44_v25  }
  0x86   :  { %52 = vst.msk [vmem:[#allocation0] sm:$0x1] %vm51_vm8, %v50_v26  }
  0x87   :  { %58 = vst.msk [vmem:[#allocation0] sm:$0x1] %vm57_vm9, %v56_v18  }
  0x8c   :  { %v62_v27 = vpop.permute.xlu0 %61   ;;  %v68_v28 = vpop.permute.xlu1 %67  }
  0x8d   :  { %64 = vst.msk [vmem:[#allocation0] sm:$0x1] %vm63_vm10, %v62_v27  }
  0x8e   :  { %70 = vst.msk [vmem:[#allocation0] sm:$0x1] %vm69_vm11, %v68_v28  }
  0x8f   :  { %76 = vst.msk [vmem:[#allocation0] sm:$0x1] %vm75_vm12, %v74_v21  }
  0x94   :  { %v80_v29 = vpop.permute.xlu0 %79   ;;  %v86_v30 = vpop.permute.xlu1 %85  }
  0x95   :  { %82 = vst.msk [vmem:[#allocation0] sm:$0x1] %vm81_vm13, %v80_v29  }
  0x96   :  { %88 = vst.msk [vmem:[#allocation0] sm:$0x1] %vm87_vm14, %v86_v30  }
  0x97   :  { %94 = vst.msk [vmem:[#allocation0] sm:$0x1] %vm93_vm15, %v92_v24  }
  0x9e   :  { %v97_v31 = vld [vmem:[#allocation0] sm:$0x1] }
  0x9f   :  { %100 = vst [vmem:[%s208_s1] sm:$0x1] %v97_v31 }

// kernel: mbstftd_forward.13
= control target key start
LH: loop header
LB: loop body
LE: loop exit
PB: predicated region body
PF: predicated region fallthrough
CT: control target
= control target key end

     0   :  { %vm135_vm0 = vcmask 130048   ;;  %vm23_vm1 = vcmask 523264   ;;  %vm225_vm2 = vcmask 519168   ;;  %s430_s1 = inlined_call_operand.vmem [shape: bf16[144,64], index: 1, kind: input, shape index: {}]   ;;  %s431_s0 = inlined_call_operand.vmem [shape: bf16[40,144], index: 0, kind: input, shape index: {}]   ;;  %s432_s2 = inlined_call_operand.vmem [shape: f32[1,64], index: 2, kind: input, shape index: {}]   ;;  %s433_s3 = inlined_call_operand.vmem [shape: bf16[40,64], index: 3, kind: output, shape index: {}]  }
   0x1   :  { %v301_v0 = vld [vmem:[%s430_s1 + $0x38] sm:$0xff]  ;;  %v302_v1 = vld [vmem:[%s430_s1 + $0x40] sm:$0xff]  ;;  %v239_v3 = vld [vmem:[%s431_s0 + $0x8] sm:$0xf0] }
   0x2   :  { %v290_v2 = vld [vmem:[%s431_s0 + $0x4] sm:$0xf]  ;;  %145 = vmatpush.bf16.msra.mxu0 %v301_v0  ;;  %303 = vmatpush.bf16.msra.mxu2 %v301_v0  ;;  %v300_v4 = vld [vmem:[%s430_s1 + $0x30] sm:$0xff]  ;;  %v299_v6 = vld [vmem:[%s430_s1 + $0x28] sm:$0xff] }
   0x3   :  { %304 = vmatpush.bf16.msra.mxu3 %v301_v0  ;;  %175 = vmatpush.bf16.msra.mxu1 %v302_v1  ;;  %v242_v5 = vor.u32 %v290_v2, %v239_v3  ;;  %v298_v7 = vld [vmem:[%s430_s1 + $0x20] sm:$0xff]  ;;  %v297_v8 = vld [vmem:[%s430_s1 + $0x18] sm:$0xff]  ;;  %v292_v9 = vld [vmem:[%s431_s0 + $0x14] sm:$0xf] }
   0x4   :  { %v247_v10 = vld [vmem:[%s431_s0 + $0x18] sm:$0xf0]  ;;  %v296_v11 = vld [vmem:[%s430_s1 + $0x10] sm:$0xff]  ;;  %v295_v13 = vld [vmem:[%s430_s1 + $0x8] sm:$0xff] }
   0x5   :  { %v250_v12 = vor.u32 %v292_v9, %v247_v10  ;;  %v38_v14 = vld [vmem:[%s431_s0 + $0x20] sm:$0xff]  ;;  %v291_v17 = vld [vmem:[%s431_s0 + $0x4] sm:$0xf0]  ;;  %v245_v18 = vld [vmem:[%s431_s0 + $0x10] sm:$0xf] }
   0x6   :  { %146 = vmatpush.bf16.msra.mxu0 %v300_v4  ;;  %305 = vmatpush.bf16.msra.mxu2 %v300_v4  ;;  %v294_v15 = vld [vmem:[%s430_s1] sm:$0xff]  ;;  %v293_v19 = vld [vmem:[%s431_s0 + $0x14] sm:$0xf0]  ;;  %v70_v20 = vunpack.c.l.b16 %v38_v14  ;;  %v71_v24 = vunpack.c.h.b16 %v38_v14 }
   0x7   :  { %306 = vmatpush.bf16.msra.mxu3 %v300_v4  ;;  %287 = vmatmul.msk.bf16.vlgmr.msra.gmra.mxu1 %vm135_vm0, %v242_v5  ;;  %v237_v16 = vld [vmem:[%s431_s0] sm:$0xf]  ;;  %v246_v22 = vor.u32 %v293_v19, %v245_v18 }
   0x8   :  { %v238_v21 = vor.u32 %v291_v17, %v237_v16  ;;  %v76_v23 = vpack.c.b16 %v70_v20, %v70_v20  ;;  %v77_v25 = vpack.c.b16 %v71_v24, %v71_v24  ;;  %v319_v26 = vld [vmem:[%s432_s2] ss:$0 sm:$0xff] }
   0x9   :  { %24 = vst.msk [vmem:[#allocation2] sm:$0xff] %vm23_vm1, %v319_v26 }
   0xa   :  { %147 = vmatpush.bf16.msra.mxu0 %v299_v6  ;;  %307 = vmatpush.bf16.msra.mxu2 %v299_v6  ;;  %25 = vst.msk [vmem:[#allocation2 + $0x8] sm:$0xff] %vm23_vm1, %v319_v26 }
   0xb   :  { %308 = vmatpush.bf16.msra.mxu3 %v299_v6  ;;  %26 = vst.msk [vmem:[#allocation2 + $0x10] sm:$0xff] %vm23_vm1, %v319_v26 }
   0xc   :  { %27 = vst.msk [vmem:[#allocation2 + $0x18] sm:$0xff] %vm23_vm1, %v319_v26 }
   0xd   :  { %28 = vst.msk [vmem:[#allocation2 + $0x20] sm:$0xff] %vm23_vm1, %v319_v26 }
   0xe   :  { %148 = vmatpush.bf16.msra.mxu0 %v298_v7  ;;  %309 = vmatpush.bf16.msra.mxu2 %v298_v7 }
   0xf   :  { %310 = vmatpush.bf16.msra.mxu3 %v298_v7 }
  0x10   :  { %v29_v31 = vld [vmem:[#allocation2] sm:$0xff] }
  0x11   :  { %v30_v42 = vld [vmem:[#allocation2 + $0x8] sm:$0xff] }
  0x12   :  { %149 = vmatpush.bf16.msra.mxu0 %v297_v8  ;;  %311 = vmatpush.bf16.msra.mxu2 %v297_v8  ;;  %v31_v35 = vld [vmem:[#allocation2 + $0x10] sm:$0xff] }
  0x13   :  { %312 = vmatpush.bf16.msra.mxu3 %v297_v8  ;;  %v32_v50 = vld [vmem:[#allocation2 + $0x18] sm:$0xff] }
  0x14   :  { %v33_v40 = vld [vmem:[#allocation2 + $0x20] sm:$0xff] }
  0x16   :  { %150 = vmatpush.bf16.msra.mxu0 %v296_v11  ;;  %313 = vmatpush.bf16.msra.mxu2 %v296_v11 }
  0x17   :  { %314 = vmatpush.bf16.msra.mxu3 %v296_v11  ;;  %288 = vmatmul.msk.bf16.gmra.mxu1 %vm135_vm0, %v250_v12 }
  0x1a   :  { %151 = vmatpush.bf16.msra.mxu0 %v295_v13  ;;  %315 = vmatpush.bf16.msra.mxu2 %v295_v13 }
  0x1b   :  { %316 = vmatpush.bf16.msra.mxu3 %v295_v13 }
  0x1e   :  { %152 = vmatpush.bf16.msra.mxu0 %v294_v15  ;;  %317 = vmatpush.bf16.msra.mxu2 %v294_v15 }
  0x1f   :  { %318 = vmatpush.bf16.msra.mxu3 %v294_v15 }
  0x21   :  { %153 = vmatmul.bf16.vlgmr.msra.gmra.mxu0 %v238_v21  ;;  %158 = vmatmul.bf16.vlgmr.msra.gmra.mxu2 %v246_v22 }
  0x22   :  { %163 = vmatmul.bf16.vlgmr.msra.gmra.mxu3 %v76_v23 }
  0x27   :  { %289 = vmatmul.msk.bf16.gmra.mxu1 %vm135_vm0, %v77_v25 }
  0x84   :  { %v177_v27 = vpop.f32.mrf.mxu1 }
  0x8c   :  { %v179_v28 = vpop.f32.mrf.mxu1 }
  0x94   :  { %v182_v29 = vpop.f32.mrf.mxu1 }
  0x9c   :  { %v184_v30 = vpop.f32.mrf.mxu1 }
  0x9e   :  { %v154_v32 = vpop.f32.mrf.mxu0 }
  0x9f   :  { %v178_v33 = vadd.f32 %v177_v27, %v154_v32 }
  0xa1   :  { %v191_v34 = vadd.f32 %v178_v33, %v29_v31 }
  0xa3   :  { %197 = vst.msk [vmem:[#allocation2] sm:$0xff] %vm23_vm1, %v191_v34 }
  0xa4   :  { %v159_v36 = vpop.f32.mrf.mxu2  ;;  %v187_v37 = vpop.f32.mrf.mxu1 }
  0xa5   :  { %v183_v38 = vadd.f32 %v182_v29, %v159_v36  ;;  %v164_v39 = vpop.f32.mrf.mxu3 }
  0xa6   :  { %v188_v41 = vadd.f32 %v187_v37, %v164_v39  ;;  %v156_v43 = vpop.f32.mrf.mxu0 }
  0xa7   :  { %v193_v44 = vadd.f32 %v183_v38, %v31_v35  ;;  %v180_v45 = vadd.f32 %v179_v28, %v156_v43 }
  0xa8   :  { %v195_v46 = vadd.f32 %v188_v41, %v33_v40 }
  0xa9   :  { %199 = vst.msk [vmem:[#allocation2 + $0x10] sm:$0xff] %vm23_vm1, %v193_v44  ;;  %v192_v47 = vadd.f32 %v180_v45, %v30_v42 }
  0xaa   :  { %v205_v48 = vld [vmem:[#allocation2] sm:$0xff]  ;;  %201 = vst.msk [vmem:[#allocation2 + $0x20] sm:$0xff] %vm23_vm1, %v195_v46 }
  0xab   :  { %v210_v49 = vmul.f32 0.1, %v205_v48  ;;  %198 = vst.msk [vmem:[#allocation2 + $0x8] sm:$0xff] %vm23_vm1, %v192_v47 }
  0xac   :  { %v161_v51 = vpop.f32.mrf.mxu2  ;;  %v189_v52 = vpop.f32.mrf.mxu1 }
  0xad   :  { %v215_v53 = vmax.f32 %v205_v48, %v210_v49  ;;  %v185_v54 = vadd.f32 %v184_v30, %v161_v51  ;;  %v166_v55 = vpop.f32.mrf.mxu3 }
  0xaf   :  { %v220_v56 = vpack.c.bf16 %v215_v53, %v215_v53  ;;  %v194_v57 = vadd.f32 %v185_v54, %v32_v50 }
  0xb0   :  { %v207_v58 = vld [vmem:[#allocation2 + $0x10] sm:$0xff] }
  0xb1   :  { %226 = vst.msk [vmem:[%s433_s3] sm:$0xf] %vm225_vm2, %v220_v56  ;;  %v212_v59 = vmul.f32 0.1, %v207_v58  ;;  %v209_v60 = vld [vmem:[#allocation2 + $0x20] sm:$0xff] }
  0xb2   :  { %v214_v61 = vmul.f32 0.1, %v209_v60  ;;  %v206_v62 = vld [vmem:[#allocation2 + $0x8] sm:$0xff]  ;;  %200 = vst.msk [vmem:[#allocation2 + $0x18] sm:$0xff] %vm23_vm1, %v194_v57 }
  0xb3   :  { %v217_v63 = vmax.f32 %v207_v58, %v212_v59  ;;  %v211_v0 = vmul.f32 0.1, %v206_v62 }
  0xb4   :  { %v219_v1 = vmax.f32 %v209_v60, %v214_v61 }
  0xb5   :  { %v222_v2 = vpack.c.bf16 %v217_v63, %v217_v63  ;;  %v216_v3 = vmax.f32 %v206_v62, %v211_v0 }
  0xb6   :  { %v224_v4 = vpack.c.bf16 %v219_v1, %v219_v1 }
  0xb7   :  { %228 = vst.msk [vmem:[%s433_s3 + $0x8] sm:$0xf] %vm225_vm2, %v222_v2  ;;  %v221_v5 = vpack.c.bf16 %v216_v3, %v216_v3 }
  0xb8   :  { %230 = vst.msk [vmem:[%s433_s3 + $0x10] sm:$0xf] %vm225_vm2, %v224_v4 }
  0xb9   :  { %227 = vst.msk [vmem:[%s433_s3 + $0x4] sm:$0xf] %vm225_vm2, %v221_v5  ;;  %v208_v6 = vld [vmem:[#allocation2 + $0x18] sm:$0xff] }
  0xba   :  { %v213_v7 = vmul.f32 0.1, %v208_v6 }
  0xbc   :  { %v218_v8 = vmax.f32 %v208_v6, %v213_v7 }
  0xbe   :  { %v223_v9 = vpack.c.bf16 %v218_v8, %v218_v8 }
  0xc0   :  { %229 = vst.msk [vmem:[%s433_s3 + $0xc] sm:$0xf] %vm225_vm2, %v223_v9 }

// kernel: tile.63
= control target key start
LH: loop header
LB: loop body
LE: loop exit
PB: predicated region body
PF: predicated region fallthrough
CT: control target
= control target key end

     0   :  { %s22_s0 = inlined_call_operand.vmem [shape: f32[4], index: 0, kind: input, shape index: {}]   ;;  %s23_s1 = inlined_call_operand.vmem [shape: f32[8,4], index: 1, kind: output, shape index: {}]  }
   0x1   :  { %v4_v0 = vld [vmem:[%s22_s0] ss:$0 sm:$0xff] }
   0x2   :  { %5 = vst [vmem:[%s23_s1] sm:$0xff] %v4_v0 }

// kernel: tile.64
= control target key start
LH: loop header
LB: loop body
LE: loop exit
PB: predicated region body
PF: predicated region fallthrough
CT: control target
= control target key end

     0   :  { %s67_s10 = smov 28   ;;  %s68_s11 = smov 20   ;;  %vm3_vm0 = vcmask 31744   ;;  %vm9_vm1 = vcmask 261344   ;;  %vm15_vm2 = vcmask 228544   ;;  %vm21_vm3 = vcmask 195744   ;;  %s111_s0 = inlined_call_operand.vmem [shape: f32[8,4], index: 0, kind: input, shape index: {}]   ;;  %s112_s1 = inlined_call_operand.vmem [shape: f32[1,32], index: 1, kind: output, shape index: {}]  }
   0x1   :  { %v53_v0 = vld [vmem:[%s111_s0 + $0x7] sm:$0x1]   ;;  %v55_v1 = vld [vmem:[%s111_s0 + $0x5] sm:$0x1]   ;;  %v57_v2 = vld [vmem:[%s111_s0 + $0x3] sm:$0x1]  }
   0x2   :  { %7 = vrot.lane.b32.xlu0 %v53_v0, %s67_s10  ;;  %19 = vrot.lane.b32.xlu1 %v55_v1, %s68_s11  ;;  %s69_s14 = smov 12   ;;  %v54_v3 = vld [vmem:[%s111_s0 + $0x6] sm:$0x1]   ;;  %v56_v4 = vld [vmem:[%s111_s0 + $0x4] sm:$0x1]   ;;  %s70_s21 = smov 24  }
   0x3   :  { %31 = vrot.lane.b32.xlu2 %v57_v2, %s69_s14  ;;  %v58_v5 = vld [vmem:[%s111_s0 + $0x2] sm:$0x1]   ;;  %s71_s22 = smov 16   ;;  %s72_s23 = smov 8   ;;  %v59_v6 = vld [vmem:[%s111_s0 + $0x1] sm:$0x1]  }
   0x4   :  { %s73_s26 = smov 4   ;;  %v2_v7 = vld [vmem:[%s111_s0] sm:$0x1]   ;;  %vm27_vm4 = vcmask 162944   ;;  %vm33_vm5 = vcmask 130144   ;;  %vm39_vm6 = vcmask 97344  }
   0x5   :  { %4 = vst.msk [vmem:[#allocation0] sm:$0x1] %vm3_vm0, %v2_v7   ;;  %vm45_vm7 = vcmask 64544  }
   0xa   :  { %13 = vrot.lane.b32.xlu0 %v54_v3, %s70_s21  ;;  %25 = vrot.lane.b32.xlu1 %v56_v4, %s71_s22 }
   0xb   :  { %37 = vrot.lane.b32.xlu2 %v58_v5, %s72_s23 }
  0x12   :  { %43 = vrot.lane.b32.xlu0 %v59_v6, %s73_s26 }
  0x5d   :  { %v32_v8 = vpop.permute.xlu2 %31  }
  0x65   :  { %v38_v9 = vpop.permute.xlu2 %37  }
  0x74   :  { %v8_v10 = vpop.permute.xlu0 %7   ;;  %v20_v11 = vpop.permute.xlu1 %19  }
  0x75   :  { %10 = vst.msk [vmem:[#allocation0] sm:$0x1] %vm9_vm1, %v8_v10  }
  0x7c   :  { %v14_v12 = vpop.permute.xlu0 %13   ;;  %v26_v13 = vpop.permute.xlu1 %25  }
  0x7d   :  { %16 = vst.msk [vmem:[#allocation0] sm:$0x1] %vm15_vm2, %v14_v12  }
  0x7e   :  { %22 = vst.msk [vmem:[#allocation0] sm:$0x1] %vm21_vm3, %v20_v11  }
  0x7f   :  { %28 = vst.msk [vmem:[#allocation0] sm:$0x1] %vm27_vm4, %v26_v13  }
  0x80   :  { %34 = vst.msk [vmem:[#allocation0] sm:$0x1] %vm33_vm5, %v32_v8  }
  0x81   :  { %40 = vst.msk [vmem:[#allocation0] sm:$0x1] %vm39_vm6, %v38_v9  }
  0x84   :  { %v44_v14 = vpop.permute.xlu0 %43  }
  0x85   :  { %46 = vst.msk [vmem:[#allocation0] sm:$0x1] %vm45_vm7, %v44_v14  }
  0x8c   :  { %v49_v15 = vld [vmem:[#allocation0] sm:$0x1] }
  0x8d   :  { %52 = vst [vmem:[%s112_s1] sm:$0x1] %v49_v15 }

// kernel: mbstftd_forward.14
= control target key start
LH: loop header
LB: loop body
LE: loop exit
PB: predicated region body
PF: predicated region fallthrough
CT: control target
= control target key end

     0   :  { %vm23_vm0 = vcmask 261120   ;;  %vm340_vm1 = vcmask 257024   ;;  %s634_s1 = inlined_call_operand.vmem [shape: bf16[288,32], index: 1, kind: input, shape index: {}]   ;;  %s635_s0 = inlined_call_operand.vmem [shape: bf16[40,288], index: 0, kind: input, shape index: {}]   ;;  %s636_s2 = inlined_call_operand.vmem [shape: f32[1,32], index: 2, kind: input, shape index: {}]   ;;  %s637_s3 = inlined_call_operand.vmem [shape: bf16[40,32], index: 3, kind: output, shape index: {}]  }
   0x1   :  { %v462_v0 = vld [vmem:[%s634_s1 + $0x38] sm:$0xff]  ;;  %v461_v2 = vld [vmem:[%s634_s1 + $0x30] sm:$0xff]  ;;  %v472_v4 = vld [vmem:[%s634_s1 + $0x88] sm:$0xff] }
   0x2   :  { %v470_v1 = vld [vmem:[%s634_s1 + $0x78] sm:$0xff]  ;;  %238 = vmatpush.bf16.msra.mxu0 %v462_v0  ;;  %v469_v3 = vld [vmem:[%s634_s1 + $0x70] sm:$0xff]  ;;  %473 = vmatpush.bf16.msra.mxu3 %v462_v0  ;;  %v471_v5 = vld [vmem:[%s634_s1 + $0x80] sm:$0xff] }
   0x3   :  { %261 = vmatpush.bf16.msra.mxu1 %v470_v1  ;;  %290 = vmatpush.bf16.msra.mxu2 %v472_v4  ;;  %v360_v6 = vld [vmem:[%s635_s0 + $0x8] sm:$0xf]  ;;  %v451_v7 = vld [vmem:[%s635_s0 + $0x10] sm:$0xf0]  ;;  %v459_v11 = vld [vmem:[%s634_s1 + $0x20] sm:$0xff] }
   0x4   :  { %v460_v8 = vld [vmem:[%s634_s1 + $0x28] sm:$0xff]  ;;  %v361_v10 = vor.u32 %v451_v7, %v360_v6  ;;  %v467_v12 = vld [vmem:[%s634_s1 + $0x60] sm:$0xff]  ;;  %v458_v13 = vld [vmem:[%s634_s1 + $0x18] sm:$0xff] }
   0x5   :  { %v468_v9 = vld [vmem:[%s634_s1 + $0x68] sm:$0xff]  ;;  %v466_v14 = vld [vmem:[%s634_s1 + $0x58] sm:$0xff]  ;;  %v457_v15 = vld [vmem:[%s634_s1 + $0x10] sm:$0xff] }
   0x6   :  { %239 = vmatpush.bf16.msra.mxu0 %v461_v2  ;;  %474 = vmatpush.bf16.msra.mxu3 %v461_v2  ;;  %v465_v16 = vld [vmem:[%s634_s1 + $0x50] sm:$0xff]  ;;  %v372_v17 = vld [vmem:[%s635_s0 + $0x20] sm:$0xf]  ;;  %v454_v18 = vld [vmem:[%s635_s0 + $0x28] sm:$0xf0] }
   0x7   :  { %262 = vmatpush.bf16.msra.mxu1 %v469_v3  ;;  %291 = vmatpush.bf16.msra.mxu2 %v471_v5  ;;  %v456_v19 = vld [vmem:[%s634_s1 + $0x8] sm:$0xff]  ;;  %v373_v21 = vor.u32 %v454_v18, %v372_v17  ;;  %v455_v22 = vld [vmem:[%s634_s1] sm:$0xff]  ;;  %v354_v27 = vld [vmem:[%s635_s0 + $0xc] sm:$0xf0] }
   0x8   :  { %v464_v20 = vld [vmem:[%s634_s1 + $0x48] sm:$0xff]  ;;  %v463_v23 = vld [vmem:[%s634_s1 + $0x40] sm:$0xff]  ;;  %v364_v28 = vld [vmem:[%s635_s0 + $0x18] sm:$0xf] }
   0x9   :  { %v352_v24 = vld [vmem:[%s635_s0] sm:$0xf]  ;;  %v450_v25 = vld [vmem:[%s635_s0 + $0x8] sm:$0xf0]  ;;  %v449_v26 = vld [vmem:[%s635_s0 + $0x4] sm:$0xf] }
   0xa   :  { %240 = vmatpush.bf16.msra.mxu0 %v460_v8  ;;  %475 = vmatpush.bf16.msra.mxu3 %v460_v8  ;;  %v453_v29 = vld [vmem:[%s635_s0 + $0x20] sm:$0xf0]  ;;  %v353_v30 = vor.u32 %v450_v25, %v352_v24  ;;  %v357_v31 = vor.u32 %v449_v26, %v354_v27  ;;  %v43_v33 = vld [vmem:[%s635_s0 + $0x38] sm:$0xf]  ;;  %v42_v35 = vld [vmem:[%s635_s0 + $0x30] sm:$0xff] }
   0xb   :  { %263 = vmatpush.bf16.msra.mxu1 %v468_v9  ;;  %446 = vmatmul.msk.bf16.vlgmr.msra.gmra.mxu2 %vm23_vm0, %v361_v10  ;;  %v365_v32 = vor.u32 %v453_v29, %v364_v28  ;;  %v104_v34 = vunpack.c.l.b16 %v43_v33  ;;  %v452_v37 = vld [vmem:[%s635_s0 + $0x1c] sm:$0xf]  ;;  %v366_v38 = vld [vmem:[%s635_s0 + $0x24] sm:$0xf0]  ;;  %v102_v39 = vunpack.c.l.b16 %v42_v35  ;;  %v103_v42 = vunpack.c.h.b16 %v42_v35  ;;  %v481_v44 = vld [vmem:[%s636_s2] ss:$0 sm:$0xff] }
   0xc   :  { %v369_v40 = vor.u32 %v452_v37, %v366_v38  ;;  %24 = vst.msk [vmem:[#allocation2] sm:$0xff] %vm23_vm0, %v481_v44 }
   0xd   :  { %v113_v36 = vpack.c.b16 %v104_v34, %v104_v34  ;;  %v111_v41 = vpack.c.b16 %v102_v39, %v102_v39  ;;  %v112_v43 = vpack.c.b16 %v103_v42, %v103_v42  ;;  %25 = vst.msk [vmem:[#allocation2 + $0x8] sm:$0xff] %vm23_vm0, %v481_v44 }
   0xe   :  { %241 = vmatpush.bf16.msra.mxu0 %v459_v11  ;;  %476 = vmatpush.bf16.msra.mxu3 %v459_v11  ;;  %26 = vst.msk [vmem:[#allocation2 + $0x10] sm:$0xff] %vm23_vm0, %v481_v44 }
   0xf   :  { %264 = vmatpush.bf16.msra.mxu1 %v467_v12  ;;  %27 = vst.msk [vmem:[#allocation2 + $0x18] sm:$0xff] %vm23_vm0, %v481_v44 }
  0x10   :  { %28 = vst.msk [vmem:[#allocation2 + $0x20] sm:$0xff] %vm23_vm0, %v481_v44 }
  0x12   :  { %242 = vmatpush.bf16.msra.mxu0 %v458_v13  ;;  %477 = vmatpush.bf16.msra.mxu3 %v458_v13 }
  0x13   :  { %265 = vmatpush.bf16.msra.mxu1 %v466_v14  ;;  %v29_v51 = vld [vmem:[#allocation2] sm:$0xff] }
  0x14   :  { %v30_v59 = vld [vmem:[#allocation2 + $0x8] sm:$0xff] }
  0x15   :  { %v31_v5 = vld [vmem:[#allocation2 + $0x10] sm:$0xff] }
  0x16   :  { %243 = vmatpush.bf16.msra.mxu0 %v457_v15  ;;  %478 = vmatpush.bf16.msra.mxu3 %v457_v15 }
  0x17   :  { %266 = vmatpush.bf16.msra.mxu1 %v465_v16  ;;  %v32_v16 = vld [vmem:[#allocation2 + $0x18] sm:$0xff]  ;;  %v33_v26 = vld [vmem:[#allocation2 + $0x20] sm:$0xff] }
  0x1a   :  { %244 = vmatpush.bf16.msra.mxu0 %v456_v19  ;;  %479 = vmatpush.bf16.msra.mxu3 %v456_v19 }
  0x1b   :  { %267 = vmatpush.bf16.msra.mxu1 %v464_v20  ;;  %447 = vmatmul.msk.bf16.gmra.mxu2 %vm23_vm0, %v373_v21 }
  0x1e   :  { %245 = vmatpush.bf16.msra.mxu0 %v455_v22  ;;  %480 = vmatpush.bf16.msra.mxu3 %v455_v22 }
  0x1f   :  { %268 = vmatpush.bf16.msra.mxu1 %v463_v23 }
  0x21   :  { %246 = vmatmul.bf16.vlgmr.msra.gmra.mxu0 %v353_v30  ;;  %251 = vmatmul.bf16.vlgmr.msra.gmra.mxu3 %v365_v32 }
  0x22   :  { %269 = vmatmul.bf16.vlgmr.msra.gmra.mxu1 %v357_v31 }
  0x2b   :  { %448 = vmatmul.msk.bf16.gmra.mxu2 %vm23_vm0, %v113_v36 }
  0x31   :  { %256 = vmatmul.bf16.gmra.mxu3 %v111_v41 }
  0x32   :  { %274 = vmatmul.bf16.gmra.mxu1 %v369_v40 }
  0x42   :  { %279 = vmatmul.bf16.gmra.mxu1 %v112_v43 }
  0x8e   :  { %v293_v45 = vpop.f32.mrf.mxu2 }
  0x96   :  { %v295_v46 = vpop.f32.mrf.mxu2 }
  0x9e   :  { %v247_v47 = vpop.f32.mrf.mxu0  ;;  %v298_v50 = vpop.f32.mrf.mxu2 }
  0x9f   :  { %v270_v48 = vpop.f32.mrf.mxu1 }
  0xa0   :  { %v271_v49 = vadd.f32 %v270_v48, %v247_v47 }
  0xa2   :  { %v294_v52 = vadd.f32 %v293_v45, %v271_v49 }
  0xa4   :  { %v307_v53 = vadd.f32 %v294_v52, %v29_v51  ;;  %v252_v54 = vpop.f32.mrf.mxu3 }
  0xa6   :  { %312 = vst.msk [vmem:[#allocation2] sm:$0xff] %vm23_vm0, %v307_v53  ;;  %v249_v55 = vpop.f32.mrf.mxu0  ;;  %v300_v58 = vpop.f32.mrf.mxu2 }
  0xa7   :  { %v272_v56 = vpop.f32.mrf.mxu1 }
  0xa8   :  { %v273_v57 = vadd.f32 %v272_v56, %v249_v55 }
  0xaa   :  { %v296_v60 = vadd.f32 %v295_v46, %v273_v57 }
  0xac   :  { %v308_v61 = vadd.f32 %v296_v60, %v30_v59  ;;  %v254_v0 = vpop.f32.mrf.mxu3 }
  0xad   :  { %v320_v62 = vld [vmem:[#allocation2] sm:$0xff] }
  0xae   :  { %v325_v63 = vmul.f32 0.1, %v320_v62  ;;  %313 = vst.msk [vmem:[#allocation2 + $0x8] sm:$0xff] %vm23_vm0, %v308_v61  ;;  %v303_v4 = vpop.f32.mrf.mxu2 }
  0xaf   :  { %v275_v1 = vpop.f32.mrf.mxu1 }
  0xb0   :  { %v330_v2 = vmax.f32 %v320_v62, %v325_v63  ;;  %v276_v3 = vadd.f32 %v275_v1, %v252_v54 }
  0xb2   :  { %v335_v6 = vpack.c.bf16 %v330_v2, %v330_v2  ;;  %v299_v7 = vadd.f32 %v298_v50, %v276_v3 }
  0xb4   :  { %341 = vst.msk [vmem:[%s637_s3] sm:$0xf] %vm340_vm1, %v335_v6  ;;  %v309_v8 = vadd.f32 %v299_v7, %v31_v5  ;;  %v257_v11 = vpop.f32.mrf.mxu3 }
  0xb5   :  { %v321_v9 = vld [vmem:[#allocation2 + $0x8] sm:$0xff] }
  0xb6   :  { %v326_v10 = vmul.f32 0.1, %v321_v9  ;;  %314 = vst.msk [vmem:[#allocation2 + $0x10] sm:$0xff] %vm23_vm0, %v309_v8  ;;  %v305_v15 = vpop.f32.mrf.mxu2 }
  0xb7   :  { %v277_v12 = vpop.f32.mrf.mxu1 }
  0xb8   :  { %v331_v13 = vmax.f32 %v321_v9, %v326_v10  ;;  %v278_v14 = vadd.f32 %v277_v12, %v254_v0 }
  0xba   :  { %v336_v17 = vpack.c.bf16 %v331_v13, %v331_v13  ;;  %v301_v18 = vadd.f32 %v300_v58, %v278_v14 }
  0xbc   :  { %342 = vst.msk [vmem:[%s637_s3 + $0x4] sm:$0xf] %vm340_vm1, %v336_v17  ;;  %v310_v19 = vadd.f32 %v301_v18, %v32_v16  ;;  %v259_v22 = vpop.f32.mrf.mxu3 }
  0xbd   :  { %v322_v20 = vld [vmem:[#allocation2 + $0x10] sm:$0xff] }
  0xbe   :  { %v327_v21 = vmul.f32 0.1, %v322_v20  ;;  %315 = vst.msk [vmem:[#allocation2 + $0x18] sm:$0xff] %vm23_vm0, %v310_v19 }
  0xbf   :  { %v280_v23 = vpop.f32.mrf.mxu1 }
  0xc0   :  { %v332_v24 = vmax.f32 %v322_v20, %v327_v21  ;;  %v281_v25 = vadd.f32 %v280_v23, %v257_v11 }
  0xc2   :  { %v337_v27 = vpack.c.bf16 %v332_v24, %v332_v24  ;;  %v304_v28 = vadd.f32 %v303_v4, %v281_v25 }
  0xc4   :  { %343 = vst.msk [vmem:[%s637_s3 + $0x8] sm:$0xf] %vm340_vm1, %v337_v27  ;;  %v311_v29 = vadd.f32 %v304_v28, %v33_v26 }
  0xc5   :  { %v323_v30 = vld [vmem:[#allocation2 + $0x18] sm:$0xff] }
  0xc6   :  { %v328_v31 = vmul.f32 0.1, %v323_v30  ;;  %316 = vst.msk [vmem:[#allocation2 + $0x20] sm:$0xff] %vm23_vm0, %v311_v29 }
  0xc7   :  { %v282_v32 = vpop.f32.mrf.mxu1 }
  0xc8   :  { %v333_v33 = vmax.f32 %v323_v30, %v328_v31 }
  0xca   :  { %v338_v34 = vpack.c.bf16 %v333_v33, %v333_v33 }
  0xcc   :  { %344 = vst.msk [vmem:[%s637_s3 + $0xc] sm:$0xf] %vm340_vm1, %v338_v34 }
  0xcd   :  { %v324_v35 = vld [vmem:[#allocation2 + $0x20] sm:$0xff] }
  0xce   :  { %v329_v36 = vmul.f32 0.1, %v324_v35 }
  0xd0   :  { %v334_v37 = vmax.f32 %v324_v35, %v329_v36 }
  0xd2   :  { %v339_v38 = vpack.c.bf16 %v334_v37, %v334_v37 }
  0xd4   :  { %345 = vst.msk [vmem:[%s637_s3 + $0x10] sm:$0xf] %vm340_vm1, %v339_v38 }

// kernel: tile.68
= control target key start
LH: loop header
LB: loop body
LE: loop exit
PB: predicated region body
PF: predicated region fallthrough
CT: control target
= control target key end

     0   :  { %s22_s0 = inlined_call_operand.vmem [shape: f32[4], index: 0, kind: input, shape index: {}]   ;;  %s23_s1 = inlined_call_operand.vmem [shape: f32[4,4], index: 1, kind: output, shape index: {}]  }
   0x1   :  { %v4_v0 = vld [vmem:[%s22_s0] ss:$0 sm:$0xff] }
   0x2   :  { %5 = vst [vmem:[%s23_s1] sm:$0xf] %v4_v0 }

// kernel: tile.69
= control target key start
LH: loop header
LB: loop body
LE: loop exit
PB: predicated region body
PF: predicated region fallthrough
CT: control target
= control target key end

     0   :  { %s37_s8 = smov 4   ;;  %s38_s9 = smov 8   ;;  %vm7_vm0 = vcmask 31744   ;;  %vm13_vm1 = vcmask 130144   ;;  %vm19_vm2 = vcmask 97344   ;;  %vm25_vm3 = vcmask 64544   ;;  %s55_s0 = inlined_call_operand.vmem [shape: f32[4,4], index: 0, kind: input, shape index: {}]   ;;  %s56_s1 = inlined_call_operand.vmem [shape: f32[1,16], index: 1, kind: output, shape index: {}]  }
   0x1   :  { %v4_v0 = vld [vmem:[%s55_s0] sm:$0xf]  ;;  %s36_s0 = smov 12  }
   0x2   :  { %5 = vst [vmem:[#allocation1] sm:$0xf] %v4_v0 }
   0x9   :  { %v10_v1 = vld [vmem:[#allocation1 + $0x3] sm:$0x1]   ;;  %v22_v2 = vld [vmem:[#allocation1 + $0x1] sm:$0x1]   ;;  %v16_v3 = vld [vmem:[#allocation1 + $0x2] sm:$0x1]  }
   0xa   :  { %11 = vrot.lane.b32.xlu0 %v10_v1, %s36_s0  ;;  %23 = vrot.lane.b32.xlu1 %v22_v2, %s37_s8  ;;  %v6_v4 = vld [vmem:[#allocation1] sm:$0x1]  }
   0xb   :  { %8 = vst.msk [vmem:[#allocation0] sm:$0x1] %vm7_vm0, %v6_v4  }
  0x12   :  { %17 = vrot.lane.b32.xlu0 %v16_v3, %s38_s9 }
  0x7c   :  { %v12_v5 = vpop.permute.xlu0 %11   ;;  %v24_v6 = vpop.permute.xlu1 %23  }
  0x7d   :  { %14 = vst.msk [vmem:[#allocation0] sm:$0x1] %vm13_vm1, %v12_v5  }
  0x84   :  { %v18_v7 = vpop.permute.xlu0 %17  }
  0x85   :  { %20 = vst.msk [vmem:[#allocation0] sm:$0x1] %vm19_vm2, %v18_v7  }
  0x86   :  { %26 = vst.msk [vmem:[#allocation0] sm:$0x1] %vm25_vm3, %v24_v6  }
  0x8d   :  { %v29_v8 = vld [vmem:[#allocation0] sm:$0x1] }
  0x8e   :  { %32 = vst [vmem:[%s56_s1] sm:$0x1] %v29_v8 }

// kernel: mbstftd_forward.15
= control target key start
LH: loop header
LB: loop body
LE: loop exit
PB: predicated region body
PF: predicated region fallthrough
CT: control target
= control target key end

     0   :  { %vm159_vm0 = vcmask 523264   ;;  %vm23_vm1 = vcmask 130048   ;;  %vm249_vm2 = vcmask 125952   ;;  %s474_s1 = inlined_call_operand.vmem [shape: bf16[192,16], index: 1, kind: input, shape index: {}]   ;;  %s475_s0 = inlined_call_operand.vmem [shape: bf16[40,192], index: 0, kind: input, shape index: {}]   ;;  %s476_s2 = inlined_call_operand.vmem [shape: f32[1,16], index: 2, kind: input, shape index: {}]   ;;  %s477_s3 = inlined_call_operand.vmem [shape: bf16[40,16], index: 3, kind: output, shape index: {}]  }
   0x1   :  { %v337_v0 = vld [vmem:[%s474_s1 + $0x38] sm:$0xff]  ;;  %v336_v2 = vld [vmem:[%s474_s1 + $0x30] sm:$0xff]  ;;  %v335_v4 = vld [vmem:[%s474_s1 + $0x28] sm:$0xff] }
   0x2   :  { %v341_v1 = vld [vmem:[%s474_s1 + $0x58] sm:$0xff]  ;;  %342 = vmatpush.bf16.msra.mxu2 %v337_v0  ;;  %169 = vmatpush.bf16.msra.mxu0 %v337_v0  ;;  %v340_v3 = vld [vmem:[%s474_s1 + $0x50] sm:$0xff]  ;;  %v339_v5 = vld [vmem:[%s474_s1 + $0x48] sm:$0xff] }
   0x3   :  { %350 = vmatpush.bf16.msra.mxu3 %v341_v1  ;;  %196 = vmatpush.bf16.msra.mxu1 %v341_v1  ;;  %v334_v6 = vld [vmem:[%s474_s1 + $0x20] sm:$0xff]  ;;  %v328_v8 = vld [vmem:[%s475_s0 + $0x14] sm:$0xf]  ;;  %v271_v9 = vld [vmem:[%s475_s0 + $0x18] sm:$0xf0] }
   0x4   :  { %v338_v7 = vld [vmem:[%s474_s1 + $0x40] sm:$0xff]  ;;  %v263_v11 = vld [vmem:[%s475_s0 + $0x8] sm:$0xf0]  ;;  %v333_v12 = vld [vmem:[%s474_s1 + $0x18] sm:$0xff]  ;;  %v274_v13 = vor.u32 %v328_v8, %v271_v9 }
   0x5   :  { %v326_v10 = vld [vmem:[%s475_s0 + $0x4] sm:$0xf]  ;;  %v332_v15 = vld [vmem:[%s474_s1 + $0x10] sm:$0xff]  ;;  %v331_v16 = vld [vmem:[%s474_s1 + $0x8] sm:$0xff] }
   0x6   :  { %343 = vmatpush.bf16.msra.mxu2 %v336_v2  ;;  %170 = vmatpush.bf16.msra.mxu0 %v336_v2  ;;  %v266_v14 = vor.u32 %v326_v10, %v263_v11  ;;  %v38_v17 = vld [vmem:[%s475_s0 + $0x20] sm:$0xff]  ;;  %v269_v19 = vld [vmem:[%s475_s0 + $0x10] sm:$0xf]  ;;  %v329_v20 = vld [vmem:[%s475_s0 + $0x14] sm:$0xf0] }
   0x7   :  { %351 = vmatpush.bf16.msra.mxu3 %v340_v3  ;;  %197 = vmatpush.bf16.msra.mxu1 %v340_v3  ;;  %v330_v18 = vld [vmem:[%s474_s1] sm:$0xff]  ;;  %v327_v22 = vld [vmem:[%s475_s0 + $0x4] sm:$0xf0]  ;;  %v77_v23 = vunpack.c.h.b16 %v38_v17  ;;  %v270_v24 = vor.u32 %v329_v20, %v269_v19  ;;  %v76_v27 = vunpack.c.l.b16 %v38_v17 }
   0x8   :  { %v261_v21 = vld [vmem:[%s475_s0] sm:$0xf] }
   0x9   :  { %v262_v25 = vor.u32 %v327_v22, %v261_v21  ;;  %v83_v26 = vpack.c.b16 %v77_v23, %v77_v23  ;;  %v82_v28 = vpack.c.b16 %v76_v27, %v76_v27  ;;  %v354_v29 = vld [vmem:[%s476_s2] ss:$0 sm:$0xff] }
   0xa   :  { %344 = vmatpush.bf16.msra.mxu2 %v335_v4  ;;  %171 = vmatpush.bf16.msra.mxu0 %v335_v4  ;;  %24 = vst.msk [vmem:[#allocation2] sm:$0xff] %vm23_vm1, %v354_v29 }
   0xb   :  { %352 = vmatpush.bf16.msra.mxu3 %v339_v5  ;;  %198 = vmatpush.bf16.msra.mxu1 %v339_v5  ;;  %25 = vst.msk [vmem:[#allocation2 + $0x8] sm:$0xff] %vm23_vm1, %v354_v29 }
   0xc   :  { %26 = vst.msk [vmem:[#allocation2 + $0x10] sm:$0xff] %vm23_vm1, %v354_v29 }
   0xd   :  { %27 = vst.msk [vmem:[#allocation2 + $0x18] sm:$0xff] %vm23_vm1, %v354_v29 }
   0xe   :  { %345 = vmatpush.bf16.msra.mxu2 %v334_v6  ;;  %172 = vmatpush.bf16.msra.mxu0 %v334_v6  ;;  %28 = vst.msk [vmem:[#allocation2 + $0x20] sm:$0xff] %vm23_vm1, %v354_v29 }
   0xf   :  { %353 = vmatpush.bf16.msra.mxu3 %v338_v7  ;;  %199 = vmatpush.bf16.msra.mxu1 %v338_v7 }
  0x11   :  { %v29_v33 = vld [vmem:[#allocation2] sm:$0xff] }
  0x12   :  { %346 = vmatpush.bf16.msra.mxu2 %v333_v12  ;;  %173 = vmatpush.bf16.msra.mxu0 %v333_v12  ;;  %v30_v42 = vld [vmem:[#allocation2 + $0x8] sm:$0xff] }
  0x13   :  { %324 = vmatmul.msk.bf16.vlgmr.msra.gmra.mxu3 %vm159_vm0, %v274_v13  ;;  %323 = vmatmul.msk.bf16.vlgmr.msra.gmra.mxu1 %vm159_vm0, %v266_v14  ;;  %v31_v37 = vld [vmem:[#allocation2 + $0x10] sm:$0xff] }
  0x14   :  { %v32_v49 = vld [vmem:[#allocation2 + $0x18] sm:$0xff] }
  0x15   :  { %v33_v61 = vld [vmem:[#allocation2 + $0x20] sm:$0xff] }
  0x16   :  { %347 = vmatpush.bf16.msra.mxu2 %v332_v15  ;;  %174 = vmatpush.bf16.msra.mxu0 %v332_v15 }
  0x1a   :  { %348 = vmatpush.bf16.msra.mxu2 %v331_v16  ;;  %175 = vmatpush.bf16.msra.mxu0 %v331_v16 }
  0x1e   :  { %349 = vmatpush.bf16.msra.mxu2 %v330_v18  ;;  %176 = vmatpush.bf16.msra.mxu0 %v330_v18 }
  0x21   :  { %182 = vmatmul.bf16.vlgmr.msra.gmra.mxu2 %v270_v24  ;;  %177 = vmatmul.bf16.vlgmr.msra.gmra.mxu0 %v262_v25 }
  0x23   :  { %325 = vmatmul.msk.bf16.gmra.mxu3 %vm159_vm0, %v83_v26 }
  0x31   :  { %187 = vmatmul.bf16.gmra.mxu2 %v82_v28 }
  0x90   :  { %v201_v31 = vpop.f32.mrf.mxu1 }
  0x96   :  { %v206_v30 = vpop.f32.mrf.mxu3 }
  0x98   :  { %v203_v39 = vpop.f32.mrf.mxu1 }
  0x9e   :  { %v178_v32 = vpop.f32.mrf.mxu0  ;;  %v208_v34 = vpop.f32.mrf.mxu3 }
  0x9f   :  { %v202_v35 = vadd.f32 %v201_v31, %v178_v32 }
  0xa1   :  { %v215_v36 = vadd.f32 %v202_v35, %v29_v33 }
  0xa3   :  { %221 = vst.msk [vmem:[#allocation2] sm:$0xff] %vm23_vm1, %v215_v36 }
  0xa4   :  { %v183_v38 = vpop.f32.mrf.mxu2 }
  0xa5   :  { %v207_v40 = vadd.f32 %v206_v30, %v183_v38 }
  0xa6   :  { %v180_v41 = vpop.f32.mrf.mxu0  ;;  %v211_v43 = vpop.f32.mrf.mxu3 }
  0xa7   :  { %v217_v44 = vadd.f32 %v207_v40, %v31_v37  ;;  %v204_v45 = vadd.f32 %v203_v39, %v180_v41 }
  0xa9   :  { %223 = vst.msk [vmem:[#allocation2 + $0x10] sm:$0xff] %vm23_vm1, %v217_v44  ;;  %v216_v46 = vadd.f32 %v204_v45, %v30_v42 }
  0xaa   :  { %v229_v47 = vld [vmem:[#allocation2] sm:$0xff] }
  0xab   :  { %v234_v48 = vmul.f32 0.1, %v229_v47  ;;  %222 = vst.msk [vmem:[#allocation2 + $0x8] sm:$0xff] %vm23_vm1, %v216_v46 }
  0xac   :  { %v185_v50 = vpop.f32.mrf.mxu2 }
  0xad   :  { %v239_v51 = vmax.f32 %v229_v47, %v234_v48  ;;  %v209_v52 = vadd.f32 %v208_v34, %v185_v50 }
  0xae   :  { %v213_v53 = vpop.f32.mrf.mxu3 }
  0xaf   :  { %v244_v54 = vpack.c.bf16 %v239_v51, %v239_v51  ;;  %v218_v55 = vadd.f32 %v209_v52, %v32_v49 }
  0xb0   :  { %v231_v56 = vld [vmem:[#allocation2 + $0x10] sm:$0xff] }
  0xb1   :  { %250 = vst.msk [vmem:[%s477_s3] sm:$0xf] %vm249_vm2, %v244_v54  ;;  %v236_v57 = vmul.f32 0.1, %v231_v56 }
  0xb2   :  { %v230_v58 = vld [vmem:[#allocation2 + $0x8] sm:$0xff]  ;;  %224 = vst.msk [vmem:[#allocation2 + $0x18] sm:$0xff] %vm23_vm1, %v218_v55 }
  0xb3   :  { %v241_v59 = vmax.f32 %v231_v56, %v236_v57  ;;  %v235_v60 = vmul.f32 0.1, %v230_v58 }
  0xb4   :  { %v188_v62 = vpop.f32.mrf.mxu2 }
  0xb5   :  { %v246_v63 = vpack.c.bf16 %v241_v59, %v241_v59  ;;  %v240_v0 = vmax.f32 %v230_v58, %v235_v60  ;;  %v212_v1 = vadd.f32 %v211_v43, %v188_v62 }
  0xb7   :  { %252 = vst.msk [vmem:[%s477_s3 + $0x8] sm:$0xf] %vm249_vm2, %v246_v63  ;;  %v245_v2 = vpack.c.bf16 %v240_v0, %v240_v0  ;;  %v219_v3 = vadd.f32 %v212_v1, %v33_v61 }
  0xb9   :  { %251 = vst.msk [vmem:[%s477_s3 + $0x4] sm:$0xf] %vm249_vm2, %v245_v2  ;;  %v232_v4 = vld [vmem:[#allocation2 + $0x18] sm:$0xff] }
  0xba   :  { %v237_v5 = vmul.f32 0.1, %v232_v4  ;;  %225 = vst.msk [vmem:[#allocation2 + $0x20] sm:$0xff] %vm23_vm1, %v219_v3 }
  0xbc   :  { %v242_v6 = vmax.f32 %v232_v4, %v237_v5  ;;  %v190_v7 = vpop.f32.mrf.mxu2 }
  0xbe   :  { %v247_v8 = vpack.c.bf16 %v242_v6, %v242_v6 }
  0xc0   :  { %253 = vst.msk [vmem:[%s477_s3 + $0xc] sm:$0xf] %vm249_vm2, %v247_v8 }
  0xc1   :  { %v233_v9 = vld [vmem:[#allocation2 + $0x20] sm:$0xff] }
  0xc2   :  { %v238_v10 = vmul.f32 0.1, %v233_v9 }
  0xc4   :  { %v243_v11 = vmax.f32 %v233_v9, %v238_v10 }
  0xc6   :  { %v248_v12 = vpack.c.bf16 %v243_v11, %v243_v11 }
  0xc8   :  { %254 = vst.msk [vmem:[%s477_s3 + $0x10] sm:$0xf] %vm249_vm2, %v248_v12 }

// kernel: tile.73
= control target key start
LH: loop header
LB: loop body
LE: loop exit
PB: predicated region body
PF: predicated region fallthrough
CT: control target
= control target key end

     0   :  { %s22_s0 = inlined_call_operand.vmem [shape: f32[4], index: 0, kind: input, shape index: {}]   ;;  %s23_s1 = inlined_call_operand.vmem [shape: f32[2,4], index: 1, kind: output, shape index: {}]  }
   0x1   :  { %v4_v0 = vld [vmem:[%s22_s0] ss:$0 sm:$0xff] }
   0x2   :  { %5 = vst [vmem:[%s23_s1] sm:$0x3] %v4_v0 }

// kernel: tile.74
= control target key start
LH: loop header
LB: loop body
LE: loop exit
PB: predicated region body
PF: predicated region fallthrough
CT: control target
= control target key end

     0   :  { %vm7_vm0 = vcmask 31744   ;;  %vm13_vm1 = vcmask 64544   ;;  %s39_s0 = inlined_call_operand.vmem [shape: f32[2,4], index: 0, kind: input, shape index: {}]   ;;  %s40_s1 = inlined_call_operand.vmem [shape: f32[1,8], index: 1, kind: output, shape index: {}]  }
   0x1   :  { %v4_v0 = vld [vmem:[%s39_s0] sm:$0x3]  ;;  %s22_s0 = smov 4  }
   0x2   :  { %5 = vst [vmem:[#allocation1] sm:$0x3] %v4_v0 }
   0x9   :  { %v10_v1 = vld [vmem:[#allocation1 + $0x1] sm:$0x1]   ;;  %v6_v2 = vld [vmem:[#allocation1] sm:$0x1]  }
   0xa   :  { %11 = vrot.lane.b32.xlu0 %v10_v1, %s22_s0  ;;  %8 = vst.msk [vmem:[#allocation0] sm:$0x1] %vm7_vm0, %v6_v2  }
  0x7c   :  { %v12_v3 = vpop.permute.xlu0 %11  }
  0x7d   :  { %14 = vst.msk [vmem:[#allocation0] sm:$0x1] %vm13_vm1, %v12_v3  }
  0x84   :  { %v17_v4 = vld [vmem:[#allocation0] sm:$0x1] }
  0x85   :  { %20 = vst [vmem:[%s40_s1] sm:$0x1] %v17_v4 }

// kernel: mbstftd_forward.16
= control target key start
LH: loop header
LB: loop body
LE: loop exit
PB: predicated region body
PF: predicated region fallthrough
CT: control target
= control target key end

     0   :  { %vm135_vm0 = vcmask 130048   ;;  %vm23_vm1 = vcmask 64512   ;;  %vm225_vm2 = vcmask 60416   ;;  %s430_s1 = inlined_call_operand.vmem [shape: bf16[144,8], index: 1, kind: input, shape index: {}]   ;;  %s431_s0 = inlined_call_operand.vmem [shape: bf16[40,144], index: 0, kind: input, shape index: {}]   ;;  %s432_s2 = inlined_call_operand.vmem [shape: f32[1,8], index: 2, kind: input, shape index: {}]   ;;  %s433_s3 = inlined_call_operand.vmem [shape: bf16[40,8], index: 3, kind: output, shape index: {}]  }
   0x1   :  { %v301_v0 = vld [vmem:[%s430_s1 + $0x38] sm:$0xff]  ;;  %v302_v1 = vld [vmem:[%s430_s1 + $0x40] sm:$0xff]  ;;  %v239_v3 = vld [vmem:[%s431_s0 + $0x8] sm:$0xf0] }
   0x2   :  { %v290_v2 = vld [vmem:[%s431_s0 + $0x4] sm:$0xf]  ;;  %145 = vmatpush.bf16.msra.mxu0 %v301_v0  ;;  %303 = vmatpush.bf16.msra.mxu2 %v301_v0  ;;  %v300_v4 = vld [vmem:[%s430_s1 + $0x30] sm:$0xff]  ;;  %v299_v6 = vld [vmem:[%s430_s1 + $0x28] sm:$0xff] }
   0x3   :  { %304 = vmatpush.bf16.msra.mxu3 %v301_v0  ;;  %175 = vmatpush.bf16.msra.mxu1 %v302_v1  ;;  %v242_v5 = vor.u32 %v290_v2, %v239_v3  ;;  %v298_v7 = vld [vmem:[%s430_s1 + $0x20] sm:$0xff]  ;;  %v297_v8 = vld [vmem:[%s430_s1 + $0x18] sm:$0xff]  ;;  %v292_v9 = vld [vmem:[%s431_s0 + $0x14] sm:$0xf] }
   0x4   :  { %v247_v10 = vld [vmem:[%s431_s0 + $0x18] sm:$0xf0]  ;;  %v296_v11 = vld [vmem:[%s430_s1 + $0x10] sm:$0xff]  ;;  %v295_v13 = vld [vmem:[%s430_s1 + $0x8] sm:$0xff] }
   0x5   :  { %v250_v12 = vor.u32 %v292_v9, %v247_v10  ;;  %v38_v14 = vld [vmem:[%s431_s0 + $0x20] sm:$0xff]  ;;  %v291_v17 = vld [vmem:[%s431_s0 + $0x4] sm:$0xf0]  ;;  %v245_v18 = vld [vmem:[%s431_s0 + $0x10] sm:$0xf] }
   0x6   :  { %146 = vmatpush.bf16.msra.mxu0 %v300_v4  ;;  %305 = vmatpush.bf16.msra.mxu2 %v300_v4  ;;  %v294_v15 = vld [vmem:[%s430_s1] sm:$0xff]  ;;  %v293_v19 = vld [vmem:[%s431_s0 + $0x14] sm:$0xf0]  ;;  %v70_v20 = vunpack.c.l.b16 %v38_v14  ;;  %v71_v24 = vunpack.c.h.b16 %v38_v14 }
   0x7   :  { %306 = vmatpush.bf16.msra.mxu3 %v300_v4  ;;  %287 = vmatmul.msk.bf16.vlgmr.msra.gmra.mxu1 %vm135_vm0, %v242_v5  ;;  %v237_v16 = vld [vmem:[%s431_s0] sm:$0xf]  ;;  %v246_v22 = vor.u32 %v293_v19, %v245_v18 }
   0x8   :  { %v238_v21 = vor.u32 %v291_v17, %v237_v16  ;;  %v76_v23 = vpack.c.b16 %v70_v20, %v70_v20  ;;  %v77_v25 = vpack.c.b16 %v71_v24, %v71_v24  ;;  %v319_v26 = vld [vmem:[%s432_s2] ss:$0 sm:$0xff] }
   0x9   :  { %24 = vst.msk [vmem:[#allocation2] sm:$0xff] %vm23_vm1, %v319_v26 }
   0xa   :  { %147 = vmatpush.bf16.msra.mxu0 %v299_v6  ;;  %307 = vmatpush.bf16.msra.mxu2 %v299_v6  ;;  %25 = vst.msk [vmem:[#allocation2 + $0x8] sm:$0xff] %vm23_vm1, %v319_v26 }
   0xb   :  { %308 = vmatpush.bf16.msra.mxu3 %v299_v6  ;;  %26 = vst.msk [vmem:[#allocation2 + $0x10] sm:$0xff] %vm23_vm1, %v319_v26 }
   0xc   :  { %27 = vst.msk [vmem:[#allocation2 + $0x18] sm:$0xff] %vm23_vm1, %v319_v26 }
   0xd   :  { %28 = vst.msk [vmem:[#allocation2 + $0x20] sm:$0xff] %vm23_vm1, %v319_v26 }
   0xe   :  { %148 = vmatpush.bf16.msra.mxu0 %v298_v7  ;;  %309 = vmatpush.bf16.msra.mxu2 %v298_v7 }
   0xf   :  { %310 = vmatpush.bf16.msra.mxu3 %v298_v7 }
  0x10   :  { %v29_v31 = vld [vmem:[#allocation2] sm:$0xff] }
  0x11   :  { %v30_v42 = vld [vmem:[#allocation2 + $0x8] sm:$0xff] }
  0x12   :  { %149 = vmatpush.bf16.msra.mxu0 %v297_v8  ;;  %311 = vmatpush.bf16.msra.mxu2 %v297_v8  ;;  %v31_v35 = vld [vmem:[#allocation2 + $0x10] sm:$0xff] }
  0x13   :  { %312 = vmatpush.bf16.msra.mxu3 %v297_v8  ;;  %v32_v50 = vld [vmem:[#allocation2 + $0x18] sm:$0xff] }
  0x14   :  { %v33_v40 = vld [vmem:[#allocation2 + $0x20] sm:$0xff] }
  0x16   :  { %150 = vmatpush.bf16.msra.mxu0 %v296_v11  ;;  %313 = vmatpush.bf16.msra.mxu2 %v296_v11 }
  0x17   :  { %314 = vmatpush.bf16.msra.mxu3 %v296_v11  ;;  %288 = vmatmul.msk.bf16.gmra.mxu1 %vm135_vm0, %v250_v12 }
  0x1a   :  { %151 = vmatpush.bf16.msra.mxu0 %v295_v13  ;;  %315 = vmatpush.bf16.msra.mxu2 %v295_v13 }
  0x1b   :  { %316 = vmatpush.bf16.msra.mxu3 %v295_v13 }
  0x1e   :  { %152 = vmatpush.bf16.msra.mxu0 %v294_v15  ;;  %317 = vmatpush.bf16.msra.mxu2 %v294_v15 }
  0x1f   :  { %318 = vmatpush.bf16.msra.mxu3 %v294_v15 }
  0x21   :  { %153 = vmatmul.bf16.vlgmr.msra.gmra.mxu0 %v238_v21  ;;  %158 = vmatmul.bf16.vlgmr.msra.gmra.mxu2 %v246_v22 }
  0x22   :  { %163 = vmatmul.bf16.vlgmr.msra.gmra.mxu3 %v76_v23 }
  0x27   :  { %289 = vmatmul.msk.bf16.gmra.mxu1 %vm135_vm0, %v77_v25 }
  0x84   :  { %v177_v27 = vpop.f32.mrf.mxu1 }
  0x8c   :  { %v179_v28 = vpop.f32.mrf.mxu1 }
  0x94   :  { %v182_v29 = vpop.f32.mrf.mxu1 }
  0x9c   :  { %v184_v30 = vpop.f32.mrf.mxu1 }
  0x9e   :  { %v154_v32 = vpop.f32.mrf.mxu0 }
  0x9f   :  { %v178_v33 = vadd.f32 %v177_v27, %v154_v32 }
  0xa1   :  { %v191_v34 = vadd.f32 %v178_v33, %v29_v31 }
  0xa3   :  { %197 = vst.msk [vmem:[#allocation2] sm:$0xff] %vm23_vm1, %v191_v34 }
  0xa4   :  { %v159_v36 = vpop.f32.mrf.mxu2  ;;  %v187_v37 = vpop.f32.mrf.mxu1 }
  0xa5   :  { %v183_v38 = vadd.f32 %v182_v29, %v159_v36  ;;  %v164_v39 = vpop.f32.mrf.mxu3 }
  0xa6   :  { %v188_v41 = vadd.f32 %v187_v37, %v164_v39  ;;  %v156_v43 = vpop.f32.mrf.mxu0 }
  0xa7   :  { %v193_v44 = vadd.f32 %v183_v38, %v31_v35  ;;  %v180_v45 = vadd.f32 %v179_v28, %v156_v43 }
  0xa8   :  { %v195_v46 = vadd.f32 %v188_v41, %v33_v40 }
  0xa9   :  { %199 = vst.msk [vmem:[#allocation2 + $0x10] sm:$0xff] %vm23_vm1, %v193_v44  ;;  %v192_v47 = vadd.f32 %v180_v45, %v30_v42 }
  0xaa   :  { %v205_v48 = vld [vmem:[#allocation2] sm:$0xff]  ;;  %201 = vst.msk [vmem:[#allocation2 + $0x20] sm:$0xff] %vm23_vm1, %v195_v46 }
  0xab   :  { %v210_v49 = vmul.f32 0.1, %v205_v48  ;;  %198 = vst.msk [vmem:[#allocation2 + $0x8] sm:$0xff] %vm23_vm1, %v192_v47 }
  0xac   :  { %v161_v51 = vpop.f32.mrf.mxu2  ;;  %v189_v52 = vpop.f32.mrf.mxu1 }
  0xad   :  { %v215_v53 = vmax.f32 %v205_v48, %v210_v49  ;;  %v185_v54 = vadd.f32 %v184_v30, %v161_v51  ;;  %v166_v55 = vpop.f32.mrf.mxu3 }
  0xaf   :  { %v220_v56 = vpack.c.bf16 %v215_v53, %v215_v53  ;;  %v194_v57 = vadd.f32 %v185_v54, %v32_v50 }
  0xb0   :  { %v207_v58 = vld [vmem:[#allocation2 + $0x10] sm:$0xff] }
  0xb1   :  { %226 = vst.msk [vmem:[%s433_s3] sm:$0xf] %vm225_vm2, %v220_v56  ;;  %v212_v59 = vmul.f32 0.1, %v207_v58  ;;  %v209_v60 = vld [vmem:[#allocation2 + $0x20] sm:$0xff] }
  0xb2   :  { %v214_v61 = vmul.f32 0.1, %v209_v60  ;;  %v206_v62 = vld [vmem:[#allocation2 + $0x8] sm:$0xff]  ;;  %200 = vst.msk [vmem:[#allocation2 + $0x18] sm:$0xff] %vm23_vm1, %v194_v57 }
  0xb3   :  { %v217_v63 = vmax.f32 %v207_v58, %v212_v59  ;;  %v211_v0 = vmul.f32 0.1, %v206_v62 }
  0xb4   :  { %v219_v1 = vmax.f32 %v209_v60, %v214_v61 }
  0xb5   :  { %v222_v2 = vpack.c.bf16 %v217_v63, %v217_v63  ;;  %v216_v3 = vmax.f32 %v206_v62, %v211_v0 }
  0xb6   :  { %v224_v4 = vpack.c.bf16 %v219_v1, %v219_v1 }
  0xb7   :  { %228 = vst.msk [vmem:[%s433_s3 + $0x8] sm:$0xf] %vm225_vm2, %v222_v2  ;;  %v221_v5 = vpack.c.bf16 %v216_v3, %v216_v3 }
  0xb8   :  { %230 = vst.msk [vmem:[%s433_s3 + $0x10] sm:$0xf] %vm225_vm2, %v224_v4 }
  0xb9   :  { %227 = vst.msk [vmem:[%s433_s3 + $0x4] sm:$0xf] %vm225_vm2, %v221_v5  ;;  %v208_v6 = vld [vmem:[#allocation2 + $0x18] sm:$0xff] }
  0xba   :  { %v213_v7 = vmul.f32 0.1, %v208_v6 }
  0xbc   :  { %v218_v8 = vmax.f32 %v208_v6, %v213_v7 }
  0xbe   :  { %v223_v9 = vpack.c.bf16 %v218_v8, %v218_v8 }
  0xc0   :  { %229 = vst.msk [vmem:[%s433_s3 + $0xc] sm:$0xf] %vm225_vm2, %v223_v9 }

// kernel: mbstftd_forward.17
= control target key start
LH: loop header
LB: loop body
LE: loop exit
PB: predicated region body
PF: predicated region fallthrough
CT: control target
= control target key end

     0   :  { %vm23_vm0 = vcmask 64512   ;;  %vm76_vm1 = vcmask 392192   ;;  %vm143_vm2 = vcmask 60416   ;;  %s259_s1 = inlined_call_operand.vmem [shape: bf16[48,8], index: 1, kind: input, shape index: {}]   ;;  %s260_s2 = inlined_call_operand.vmem [shape: f32[1,8], index: 2, kind: input, shape index: {}]   ;;  %s261_s0 = inlined_call_operand.vmem [shape: bf16[40,48], index: 0, kind: input, shape index: {}]   ;;  %s262_s3 = inlined_call_operand.vmem [shape: bf16[40,8], index: 3, kind: output, shape index: {}]  }
   0x1   :  { %v180_v0 = vld [vmem:[%s259_s1 + $0x10] sm:$0xff]  ;;  %v179_v1 = vld [vmem:[%s259_s1 + $0x8] sm:$0xff]  ;;  %v187_v2 = vld [vmem:[%s260_s2] ss:$0 sm:$0xff] }
   0x2   :  { %91 = vmatpush.bf16.msra.mxu0 %v180_v0  ;;  %181 = vmatpush.bf16.msra.mxu1 %v180_v0  ;;  %v38_v3 = vld [vmem:[%s261_s0 + $0x10] sm:$0xf]  ;;  %24 = vst.msk [vmem:[#allocation2] sm:$0xff] %vm23_vm0, %v187_v2  ;;  %v178_v4 = vld [vmem:[%s259_s1] sm:$0xff]  ;;  %v177_v7 = vld [vmem:[%s261_s0 + $0x8] sm:$0xff] }
   0x3   :  { %182 = vmatpush.bf16.msra.mxu2 %v180_v0  ;;  %25 = vst.msk [vmem:[#allocation2 + $0x8] sm:$0xff] %vm23_vm0, %v187_v2  ;;  %v54_v5 = vunpack.c.l.b16 %v38_v3  ;;  %v176_v6 = vld [vmem:[%s261_s0] sm:$0xff] }
   0x4   :  { %26 = vst.msk [vmem:[#allocation2 + $0x10] sm:$0xff] %vm23_vm0, %v187_v2 }
   0x5   :  { %27 = vst.msk [vmem:[#allocation2 + $0x18] sm:$0xff] %vm23_vm0, %v187_v2  ;;  %v57_v8 = vpack.c.b16 %v54_v5, %v54_v5 }
   0x6   :  { %92 = vmatpush.bf16.msra.mxu0 %v179_v1  ;;  %183 = vmatpush.bf16.msra.mxu1 %v179_v1  ;;  %28 = vst.msk [vmem:[#allocation2 + $0x20] sm:$0xff] %vm23_vm0, %v187_v2 }
   0x7   :  { %184 = vmatpush.bf16.msra.mxu2 %v179_v1 }
   0x9   :  { %v29_v9 = vld [vmem:[#allocation2] sm:$0xff] }
   0xa   :  { %93 = vmatpush.bf16.msra.mxu0 %v178_v4  ;;  %185 = vmatpush.bf16.msra.mxu1 %v178_v4  ;;  %v30_v16 = vld [vmem:[#allocation2 + $0x8] sm:$0xff] }
   0xb   :  { %186 = vmatpush.bf16.msra.mxu2 %v178_v4  ;;  %v31_v10 = vld [vmem:[#allocation2 + $0x10] sm:$0xff] }
   0xc   :  { %v32_v17 = vld [vmem:[#allocation2 + $0x18] sm:$0xff] }
   0xd   :  { %173 = vmatmul.msk.bf16.vlgmr.msra.gmra.mxu0 %vm76_vm1, %v176_v6  ;;  %174 = vmatmul.msk.bf16.vlgmr.msra.gmra.mxu1 %vm76_vm1, %v177_v7  ;;  %v33_v15 = vld [vmem:[#allocation2 + $0x20] sm:$0xff] }
   0xe   :  { %175 = vmatmul.msk.bf16.vlgmr.msra.gmra.mxu2 %vm76_vm1, %v57_v8 }
  0x8a   :  { %v95_v11 = vpop.f32.mrf.mxu0  ;;  %v100_v12 = vpop.f32.mrf.mxu1 }
  0x8b   :  { %v109_v13 = vadd.f32 %v95_v11, %v29_v9  ;;  %v111_v14 = vadd.f32 %v100_v12, %v31_v10 }
  0x8d   :  { %115 = vst.msk [vmem:[#allocation2] sm:$0xff] %vm23_vm0, %v109_v13 }
  0x8e   :  { %117 = vst.msk [vmem:[#allocation2 + $0x10] sm:$0xff] %vm23_vm0, %v111_v14 }
  0x91   :  { %v105_v18 = vpop.f32.mrf.mxu2 }
  0x92   :  { %v113_v19 = vadd.f32 %v105_v18, %v33_v15  ;;  %v97_v20 = vpop.f32.mrf.mxu0  ;;  %v102_v21 = vpop.f32.mrf.mxu1 }
  0x93   :  { %v110_v22 = vadd.f32 %v97_v20, %v30_v16  ;;  %v112_v23 = vadd.f32 %v102_v21, %v32_v17 }
  0x94   :  { %v123_v24 = vld [vmem:[#allocation2] sm:$0xff]  ;;  %119 = vst.msk [vmem:[#allocation2 + $0x20] sm:$0xff] %vm23_vm0, %v113_v19 }
  0x95   :  { %v128_v25 = vmul.f32 0.1, %v123_v24  ;;  %v125_v26 = vld [vmem:[#allocation2 + $0x10] sm:$0xff]  ;;  %116 = vst.msk [vmem:[#allocation2 + $0x8] sm:$0xff] %vm23_vm0, %v110_v22 }
  0x96   :  { %v130_v27 = vmul.f32 0.1, %v125_v26  ;;  %118 = vst.msk [vmem:[#allocation2 + $0x18] sm:$0xff] %vm23_vm0, %v112_v23 }
  0x97   :  { %v133_v28 = vmax.f32 %v123_v24, %v128_v25 }
  0x98   :  { %v135_v29 = vmax.f32 %v125_v26, %v130_v27 }
  0x99   :  { %v138_v30 = vpack.c.bf16 %v133_v28, %v133_v28  ;;  %v107_v31 = vpop.f32.mrf.mxu2 }
  0x9a   :  { %v140_v32 = vpack.c.bf16 %v135_v29, %v135_v29 }
  0x9b   :  { %144 = vst.msk [vmem:[%s262_s3] sm:$0xf] %vm143_vm2, %v138_v30  ;;  %v127_v33 = vld [vmem:[#allocation2 + $0x20] sm:$0xff] }
  0x9c   :  { %146 = vst.msk [vmem:[%s262_s3 + $0x8] sm:$0xf] %vm143_vm2, %v140_v32  ;;  %v132_v34 = vmul.f32 0.1, %v127_v33  ;;  %v124_v35 = vld [vmem:[#allocation2 + $0x8] sm:$0xff] }
  0x9d   :  { %v129_v36 = vmul.f32 0.1, %v124_v35  ;;  %v126_v37 = vld [vmem:[#allocation2 + $0x18] sm:$0xff] }
  0x9e   :  { %v137_v38 = vmax.f32 %v127_v33, %v132_v34  ;;  %v131_v39 = vmul.f32 0.1, %v126_v37 }
  0x9f   :  { %v134_v40 = vmax.f32 %v124_v35, %v129_v36 }
  0xa0   :  { %v142_v41 = vpack.c.bf16 %v137_v38, %v137_v38  ;;  %v136_v42 = vmax.f32 %v126_v37, %v131_v39 }
  0xa1   :  { %v139_v43 = vpack.c.bf16 %v134_v40, %v134_v40 }
  0xa2   :  { %148 = vst.msk [vmem:[%s262_s3 + $0x10] sm:$0xf] %vm143_vm2, %v142_v41  ;;  %v141_v44 = vpack.c.bf16 %v136_v42, %v136_v42 }
  0xa3   :  { %145 = vst.msk [vmem:[%s262_s3 + $0x4] sm:$0xf] %vm143_vm2, %v139_v43 }
  0xa4   :  { %147 = vst.msk [vmem:[%s262_s3 + $0xc] sm:$0xf] %vm143_vm2, %v141_v44 }

// kernel: tile.83
= control target key start
LH: loop header
LB: loop body
LE: loop exit
PB: predicated region body
PF: predicated region fallthrough
CT: control target
= control target key end

     0   :  { %s34_s0 = inlined_call_operand.vmem [shape: f32[4], index: 0, kind: input, shape index: {}]   ;;  %s35_s1 = inlined_call_operand.vmem [shape: f32[17,4], index: 1, kind: output, shape index: {}]  }
   0x1   :  { %v4_v0 = vld [vmem:[%s34_s0] ss:$0 sm:$0xff] }
   0x2   :  { %5 = vst [vmem:[%s35_s1] sm:$0xff] %v4_v0 }
   0x3   :  { %10 = vst [vmem:[%s35_s1 + $0x8] sm:$0xff] %v4_v0 }
   0x4   :  { %11 = vst [vmem:[%s35_s1 + $0x10] sm:$0xff] %v4_v0 }

// kernel: tile.84
= control target key start
LH: loop header
LB: loop body
LE: loop exit
PB: predicated region body
PF: predicated region fallthrough
CT: control target
= control target key end

     0   :  { %s139_s10 = smov 64   ;;  %s140_s11 = smov 56   ;;  %vm3_vm0 = vcmask 31744   ;;  %vm9_vm1 = vcmask 556544   ;;  %vm15_vm2 = vcmask 523744   ;;  %vm21_vm3 = vcmask 490944   ;;  %s219_s0 = inlined_call_operand.vmem [shape: f32[17,4], index: 0, kind: input, shape index: {}]   ;;  %s220_s1 = inlined_call_operand.vmem [shape: f32[1,68], index: 1, kind: output, shape index: {}]  }
   0x1   :  { %v107_v0 = vld [vmem:[%s219_s0 + $0x10] sm:$0x1]   ;;  %v109_v1 = vld [vmem:[%s219_s0 + $0xe] sm:$0x1]   ;;  %v111_v2 = vld [vmem:[%s219_s0 + $0xc] sm:$0x1]  }
   0x2   :  { %7 = vrot.lane.b32.xlu0 %v107_v0, %s139_s10  ;;  %19 = vrot.lane.b32.xlu1 %v109_v1, %s140_s11  ;;  %s141_s14 = smov 48   ;;  %v108_v3 = vld [vmem:[%s219_s0 + $0xf] sm:$0x1]   ;;  %v110_v4 = vld [vmem:[%s219_s0 + $0xd] sm:$0x1]   ;;  %s142_s19 = smov 60  }
   0x3   :  { %31 = vrot.lane.b32.xlu2 %v111_v2, %s141_s14  ;;  %s143_s20 = smov 52   ;;  %v112_v5 = vld [vmem:[%s219_s0 + $0xb] sm:$0x1]   ;;  %s144_s23 = smov 44   ;;  %v113_v6 = vld [vmem:[%s219_s0 + $0xa] sm:$0x1]  }
   0x4   :  { %v114_v7 = vld [vmem:[%s219_s0 + $0x9] sm:$0x1]   ;;  %s145_s28 = smov 40   ;;  %s146_s29 = smov 36   ;;  %v115_v8 = vld [vmem:[%s219_s0 + $0x8] sm:$0x1]  }
   0x5   :  { %s147_s3 = smov 32   ;;  %v116_v9 = vld [vmem:[%s219_s0 + $0x7] sm:$0x1]   ;;  %v117_v10 = vld [vmem:[%s219_s0 + $0x6] sm:$0x1]   ;;  %s148_s8 = smov 28  }
   0x6   :  { %s149_s9 = smov 24   ;;  %v118_v11 = vld [vmem:[%s219_s0 + $0x5] sm:$0x1]   ;;  %s150_s12 = smov 20   ;;  %v119_v12 = vld [vmem:[%s219_s0 + $0x4] sm:$0x1]  }
   0x7   :  { %v120_v13 = vld [vmem:[%s219_s0 + $0x3] sm:$0x1]   ;;  %s151_s17 = smov 16   ;;  %s152_s18 = smov 12   ;;  %v121_v14 = vld [vmem:[%s219_s0 + $0x2] sm:$0x1]  }
   0x8   :  { %s153_s21 = smov 8   ;;  %v122_v15 = vld [vmem:[%s219_s0 + $0x1] sm:$0x1]   ;;  %s154_s24 = smov 4   ;;  %v2_v16 = vld [vmem:[%s219_s0] sm:$0x1]  }
   0x9   :  { %4 = vst.msk [vmem:[#allocation0] sm:$0x1] %vm3_vm0, %v2_v16   ;;  %vm27_vm4 = vcmask 458144   ;;  %vm33_vm5 = vcmask 425344   ;;  %vm39_vm6 = vcmask 392544   ;;  %vm45_vm7 = vcmask 359744  }
   0xa   :  { %13 = vrot.lane.b32.xlu0 %v108_v3, %s142_s19  ;;  %25 = vrot.lane.b32.xlu1 %v110_v4, %s143_s20  ;;  %vm51_vm8 = vcmask 326944   ;;  %vm57_vm9 = vcmask 294144   ;;  %vm63_vm10 = vcmask 261344   ;;  %vm69_vm11 = vcmask 228544  }
   0xb   :  { %37 = vrot.lane.b32.xlu2 %v112_v5, %s144_s23  ;;  %vm75_vm12 = vcmask 195744   ;;  %vm81_vm13 = vcmask 162944   ;;  %vm87_vm14 = vcmask 130144   ;;  %vm93_vm15 = vcmask 97344  }
   0xc   :  { %vm99_vm0 = vcmask 64544  }
  0x12   :  { %43 = vrot.lane.b32.xlu0 %v113_v6, %s145_s28  ;;  %49 = vrot.lane.b32.xlu1 %v114_v7, %s146_s29 }
  0x13   :  { %55 = vrot.lane.b32.xlu2 %v115_v8, %s147_s3 }
  0x1a   :  { %61 = vrot.lane.b32.xlu0 %v116_v9, %s148_s8  ;;  %67 = vrot.lane.b32.xlu1 %v117_v10, %s149_s9 }
  0x1b   :  { %73 = vrot.lane.b32.xlu2 %v118_v11, %s150_s12 }
  0x22   :  { %79 = vrot.lane.b32.xlu0 %v119_v12, %s151_s17  ;;  %85 = vrot.lane.b32.xlu1 %v120_v13, %s152_s18 }
  0x23   :  { %91 = vrot.lane.b32.xlu2 %v121_v14, %s153_s21 }
  0x2a   :  { %97 = vrot.lane.b32.xlu0 %v122_v15, %s154_s24 }
  0x5d   :  { %v32_v17 = vpop.permute.xlu2 %31  }
  0x65   :  { %v38_v18 = vpop.permute.xlu2 %37  }
  0x6d   :  { %v56_v19 = vpop.permute.xlu2 %55  }
  0x74   :  { %v8_v20 = vpop.permute.xlu0 %7   ;;  %v20_v21 = vpop.permute.xlu1 %19  }
  0x75   :  { %10 = vst.msk [vmem:[#allocation0] sm:$0x1] %vm9_vm1, %v8_v20   ;;  %v74_v22 = vpop.permute.xlu2 %73  }
  0x7c   :  { %v14_v23 = vpop.permute.xlu0 %13   ;;  %v26_v24 = vpop.permute.xlu1 %25  }
  0x7d   :  { %16 = vst.msk [vmem:[#allocation0] sm:$0x1] %vm15_vm2, %v14_v23   ;;  %v92_v25 = vpop.permute.xlu2 %91  }
  0x7e   :  { %22 = vst.msk [vmem:[#allocation0] sm:$0x1] %vm21_vm3, %v20_v21  }
  0x7f   :  { %28 = vst.msk [vmem:[#allocation0] sm:$0x1] %vm27_vm4, %v26_v24  }
  0x80   :  { %34 = vst.msk [vmem:[#allocation0] sm:$0x1] %vm33_vm5, %v32_v17  }
  0x81   :  { %40 = vst.msk [vmem:[#allocation0] sm:$0x1] %vm39_vm6, %v38_v18  }
  0x84   :  { %v44_v26 = vpop.permute.xlu0 %43   ;;  %v50_v27 = vpop.permute.xlu1 %49  }
  0x85   :  { %46 = vst.msk [vmem:[#allocation0] sm:$0x1] %vm45_vm7, %v44_v26  }
  0x86   :  { %52 = vst.msk [vmem:[#allocation0] sm:$0x1] %vm51_vm8, %v50_v27  }
  0x87   :  { %58 = vst.msk [vmem:[#allocation0] sm:$0x1] %vm57_vm9, %v56_v19  }
  0x8c   :  { %v62_v28 = vpop.permute.xlu0 %61   ;;  %v68_v29 = vpop.permute.xlu1 %67  }
  0x8d   :  { %64 = vst.msk [vmem:[#allocation0] sm:$0x1] %vm63_vm10, %v62_v28  }
  0x8e   :  { %70 = vst.msk [vmem:[#allocation0] sm:$0x1] %vm69_vm11, %v68_v29  }
  0x8f   :  { %76 = vst.msk [vmem:[#allocation0] sm:$0x1] %vm75_vm12, %v74_v22  }
  0x94   :  { %v80_v30 = vpop.permute.xlu0 %79   ;;  %v86_v31 = vpop.permute.xlu1 %85  }
  0x95   :  { %82 = vst.msk [vmem:[#allocation0] sm:$0x1] %vm81_vm13, %v80_v30  }
  0x96   :  { %88 = vst.msk [vmem:[#allocation0] sm:$0x1] %vm87_vm14, %v86_v31  }
  0x97   :  { %94 = vst.msk [vmem:[#allocation0] sm:$0x1] %vm93_vm15, %v92_v25  }
  0x9c   :  { %v98_v32 = vpop.permute.xlu0 %97  }
  0x9d   :  { %100 = vst.msk [vmem:[#allocation0] sm:$0x1] %vm99_vm0, %v98_v32  }
  0xa4   :  { %v103_v33 = vld [vmem:[#allocation0] sm:$0x1] }
  0xa5   :  { %106 = vst [vmem:[%s220_s1] sm:$0x1] %v103_v33 }

// kernel: mbstftd_forward.18
= control target key start
LH: loop header
LB: loop body
LE: loop exit
PB: predicated region body
PF: predicated region fallthrough
CT: control target
= control target key end

     0   :  { %vm149_vm0 = vcmask 1042432   ;;  %vm139_vm1 = vcmask 179200   ;;  %vm23_vm2 = vcmask 556032   ;;  %vm233_vm3 = vcmask 551936   ;;  %s441_s1 = inlined_call_operand.vmem [shape: bf16[150,68], index: 1, kind: input, shape index: {}]   ;;  %s442_s0 = inlined_call_operand.vmem [shape: bf16[40,150], index: 0, kind: input, shape index: {}]   ;;  %s443_s2 = inlined_call_operand.vmem [shape: f32[1,68], index: 2, kind: input, shape index: {}]   ;;  %s444_s3 = inlined_call_operand.vmem [shape: bf16[40,68], index: 3, kind: output, shape index: {}]  }
   0x1   :  { %v309_v0 = vld [vmem:[%s441_s1 + $0x38] sm:$0xff]  ;;  %v57_v1 = vld [vmem:[%s441_s1 + $0x48] sm:$0x7]  ;;  %v308_v3 = vld [vmem:[%s441_s1 + $0x30] sm:$0xff] }
   0x2   :  { %v119_v2 = vunpack.c.l.b16 %v57_v1  ;;  %153 = vmatpush.bf16.msra.mxu0 %v309_v0  ;;  %311 = vmatpush.bf16.msra.mxu2 %v309_v0  ;;  %v310_v6 = vld [vmem:[%s441_s1 + $0x40] sm:$0xff]  ;;  %v307_v7 = vld [vmem:[%s441_s1 + $0x28] sm:$0xff]  ;;  %v305_v12 = vld [vmem:[%s441_s1 + $0x18] sm:$0xff] }
   0x3   :  { %312 = vmatpush.bf16.msra.mxu3 %v309_v0  ;;  %v298_v8 = vld [vmem:[%s442_s0 + $0x4] sm:$0xf]  ;;  %v247_v9 = vld [vmem:[%s442_s0 + $0x8] sm:$0xf0]  ;;  %v304_v13 = vld [vmem:[%s441_s1 + $0x10] sm:$0xff] }
   0x4   :  { %v129_v4 = vpack.c.b16 %v119_v2, %v119_v2  ;;  %v250_v10 = vor.u32 %v298_v8, %v247_v9  ;;  %v306_v11 = vld [vmem:[%s441_s1 + $0x20] sm:$0xff]  ;;  %v303_v14 = vld [vmem:[%s441_s1 + $0x8] sm:$0xff]  ;;  %v300_v15 = vld [vmem:[%s442_s0 + $0x14] sm:$0xf] }
   0x5   :  { %v255_v16 = vld [vmem:[%s442_s0 + $0x18] sm:$0xf0]  ;;  %v38_v17 = vld [vmem:[%s442_s0 + $0x20] sm:$0xff]  ;;  %v299_v21 = vld [vmem:[%s442_s0 + $0x4] sm:$0xf0] }
   0x6   :  { %v151_v5 = vsel %vm149_vm0, %v129_v4, 0  ;;  %154 = vmatpush.bf16.msra.mxu0 %v308_v3  ;;  %313 = vmatpush.bf16.msra.mxu2 %v308_v3  ;;  %v258_v18 = vor.u32 %v300_v15, %v255_v16  ;;  %v302_v19 = vld [vmem:[%s441_s1] sm:$0xff]  ;;  %v71_v22 = vunpack.c.l.b16 %v38_v17  ;;  %v253_v23 = vld [vmem:[%s442_s0 + $0x10] sm:$0xf]  ;;  %v301_v24 = vld [vmem:[%s442_s0 + $0x14] sm:$0xf0]  ;;  %v72_v28 = vunpack.c.h.b16 %v38_v17 }
   0x7   :  { %182 = vmatpush.bf16.msra.mxu1 %v151_v5  ;;  %314 = vmatpush.bf16.msra.mxu3 %v308_v3  ;;  %v245_v20 = vld [vmem:[%s442_s0] sm:$0xf]  ;;  %v254_v26 = vor.u32 %v301_v24, %v253_v23 }
   0x8   :  { %v246_v25 = vor.u32 %v299_v21, %v245_v20  ;;  %v77_v27 = vpack.c.b16 %v71_v22, %v71_v22  ;;  %v78_v29 = vpack.c.b16 %v72_v28, %v72_v28  ;;  %v327_v30 = vld [vmem:[%s443_s2] ss:$0 sm:$0xff] }
   0x9   :  { %24 = vst.msk [vmem:[#allocation2] sm:$0xff] %vm23_vm2, %v327_v30 }
   0xa   :  { %155 = vmatpush.bf16.msra.mxu0 %v307_v7  ;;  %315 = vmatpush.bf16.msra.mxu2 %v307_v7  ;;  %25 = vst.msk [vmem:[#allocation2 + $0x8] sm:$0xff] %vm23_vm2, %v327_v30 }
   0xb   :  { %183 = vmatpush.bf16.msra.mxu1 %v310_v6  ;;  %316 = vmatpush.bf16.msra.mxu3 %v307_v7  ;;  %26 = vst.msk [vmem:[#allocation2 + $0x10] sm:$0xff] %vm23_vm2, %v327_v30 }
   0xc   :  { %27 = vst.msk [vmem:[#allocation2 + $0x18] sm:$0xff] %vm23_vm2, %v327_v30 }
   0xd   :  { %28 = vst.msk [vmem:[#allocation2 + $0x20] sm:$0xff] %vm23_vm2, %v327_v30 }
   0xe   :  { %295 = vmatmul.msk.bf16.vlgmr.msra.gmra.mxu1 %vm139_vm1, %v250_v10  ;;  %156 = vmatpush.bf16.msra.mxu0 %v306_v11 }
   0xf   :  { %317 = vmatpush.bf16.msra.mxu2 %v306_v11  ;;  %318 = vmatpush.bf16.msra.mxu3 %v306_v11 }
  0x10   :  { %v29_v34 = vld [vmem:[#allocation2] sm:$0xff] }
  0x11   :  { %v30_v43 = vld [vmem:[#allocation2 + $0x8] sm:$0xff] }
  0x12   :  { %157 = vmatpush.bf16.msra.mxu0 %v305_v12  ;;  %v31_v39 = vld [vmem:[#allocation2 + $0x10] sm:$0xff] }
  0x13   :  { %319 = vmatpush.bf16.msra.mxu2 %v305_v12  ;;  %320 = vmatpush.bf16.msra.mxu3 %v305_v12  ;;  %v32_v55 = vld [vmem:[#allocation2 + $0x18] sm:$0xff] }
  0x14   :  { %v33_v49 = vld [vmem:[#allocation2 + $0x20] sm:$0xff] }
  0x16   :  { %158 = vmatpush.bf16.msra.mxu0 %v304_v13 }
  0x17   :  { %321 = vmatpush.bf16.msra.mxu2 %v304_v13  ;;  %322 = vmatpush.bf16.msra.mxu3 %v304_v13 }
  0x1a   :  { %159 = vmatpush.bf16.msra.mxu0 %v303_v14 }
  0x1b   :  { %323 = vmatpush.bf16.msra.mxu2 %v303_v14  ;;  %324 = vmatpush.bf16.msra.mxu3 %v303_v14 }
  0x1e   :  { %296 = vmatmul.msk.bf16.gmra.mxu1 %vm139_vm1, %v258_v18  ;;  %160 = vmatpush.bf16.msra.mxu0 %v302_v19 }
  0x1f   :  { %325 = vmatpush.bf16.msra.mxu2 %v302_v19  ;;  %326 = vmatpush.bf16.msra.mxu3 %v302_v19 }
  0x21   :  { %161 = vmatmul.bf16.vlgmr.msra.gmra.mxu0 %v246_v25 }
  0x22   :  { %166 = vmatmul.bf16.vlgmr.msra.gmra.mxu2 %v254_v26  ;;  %171 = vmatmul.bf16.vlgmr.msra.gmra.mxu3 %v77_v27 }
  0x2e   :  { %297 = vmatmul.msk.bf16.gmra.mxu1 %vm139_vm1, %v78_v29 }
  0x8b   :  { %v185_v31 = vpop.f32.mrf.mxu1 }
  0x93   :  { %v187_v32 = vpop.f32.mrf.mxu1 }
  0x9b   :  { %v190_v33 = vpop.f32.mrf.mxu1 }
  0x9e   :  { %v162_v35 = vpop.f32.mrf.mxu0 }
  0x9f   :  { %v186_v36 = vadd.f32 %v185_v31, %v162_v35 }
  0xa1   :  { %v199_v37 = vadd.f32 %v186_v36, %v29_v34 }
  0xa3   :  { %v192_v38 = vpop.f32.mrf.mxu1  ;;  %205 = vst.msk [vmem:[#allocation2] sm:$0xff] %vm23_vm2, %v199_v37 }
  0xa5   :  { %v167_v40 = vpop.f32.mrf.mxu2  ;;  %v172_v41 = vpop.f32.mrf.mxu3 }
  0xa6   :  { %v191_v42 = vadd.f32 %v190_v33, %v167_v40  ;;  %v164_v44 = vpop.f32.mrf.mxu0 }
  0xa7   :  { %v188_v45 = vadd.f32 %v187_v32, %v164_v44 }
  0xa8   :  { %v201_v46 = vadd.f32 %v191_v42, %v31_v39 }
  0xa9   :  { %v200_v47 = vadd.f32 %v188_v45, %v30_v43 }
  0xaa   :  { %v213_v48 = vld [vmem:[#allocation2] sm:$0xff]  ;;  %207 = vst.msk [vmem:[#allocation2 + $0x10] sm:$0xff] %vm23_vm2, %v201_v46 }
  0xab   :  { %v195_v50 = vpop.f32.mrf.mxu1  ;;  %v218_v51 = vmul.f32 0.1, %v213_v48  ;;  %206 = vst.msk [vmem:[#allocation2 + $0x8] sm:$0xff] %vm23_vm2, %v200_v47 }
  0xac   :  { %v196_v52 = vadd.f32 %v195_v50, %v172_v41 }
  0xad   :  { %v223_v53 = vmax.f32 %v213_v48, %v218_v51  ;;  %v169_v56 = vpop.f32.mrf.mxu2  ;;  %v174_v57 = vpop.f32.mrf.mxu3 }
  0xae   :  { %v203_v54 = vadd.f32 %v196_v52, %v33_v49  ;;  %v193_v58 = vadd.f32 %v192_v38, %v169_v56 }
  0xaf   :  { %v228_v59 = vpack.c.bf16 %v223_v53, %v223_v53 }
  0xb0   :  { %209 = vst.msk [vmem:[#allocation2 + $0x20] sm:$0xff] %vm23_vm2, %v203_v54  ;;  %v202_v60 = vadd.f32 %v193_v58, %v32_v55 }
  0xb1   :  { %234 = vst.msk [vmem:[%s444_s3] sm:$0xf] %vm233_vm3, %v228_v59  ;;  %v215_v61 = vld [vmem:[#allocation2 + $0x10] sm:$0xff] }
  0xb2   :  { %v220_v62 = vmul.f32 0.1, %v215_v61  ;;  %v214_v63 = vld [vmem:[#allocation2 + $0x8] sm:$0xff]  ;;  %208 = vst.msk [vmem:[#allocation2 + $0x18] sm:$0xff] %vm23_vm2, %v202_v60 }
  0xb3   :  { %v197_v0 = vpop.f32.mrf.mxu1  ;;  %v219_v1 = vmul.f32 0.1, %v214_v63 }
  0xb4   :  { %v225_v2 = vmax.f32 %v215_v61, %v220_v62 }
  0xb5   :  { %v224_v3 = vmax.f32 %v214_v63, %v219_v1 }
  0xb6   :  { %v230_v4 = vpack.c.bf16 %v225_v2, %v225_v2 }
  0xb7   :  { %v217_v5 = vld [vmem:[#allocation2 + $0x20] sm:$0xff]  ;;  %v229_v6 = vpack.c.bf16 %v224_v3, %v224_v3 }
  0xb8   :  { %v222_v7 = vmul.f32 0.1, %v217_v5  ;;  %236 = vst.msk [vmem:[%s444_s3 + $0x8] sm:$0xf] %vm233_vm3, %v230_v4 }
  0xb9   :  { %235 = vst.msk [vmem:[%s444_s3 + $0x4] sm:$0xf] %vm233_vm3, %v229_v6  ;;  %v216_v9 = vld [vmem:[#allocation2 + $0x18] sm:$0xff] }
  0xba   :  { %v227_v8 = vmax.f32 %v217_v5, %v222_v7  ;;  %v221_v10 = vmul.f32 0.1, %v216_v9 }
  0xbc   :  { %v232_v11 = vpack.c.bf16 %v227_v8, %v227_v8  ;;  %v226_v12 = vmax.f32 %v216_v9, %v221_v10 }
  0xbe   :  { %238 = vst.msk [vmem:[%s444_s3 + $0x10] sm:$0xf] %vm233_vm3, %v232_v11  ;;  %v231_v13 = vpack.c.bf16 %v226_v12, %v226_v12 }
  0xc0   :  { %237 = vst.msk [vmem:[%s444_s3 + $0xc] sm:$0xf] %vm233_vm3, %v231_v13 }

// kernel: tile.88
= control target key start
LH: loop header
LB: loop body
LE: loop exit
PB: predicated region body
PF: predicated region fallthrough
CT: control target
= control target key end

     0   :  { %s28_s0 = inlined_call_operand.vmem [shape: f32[4], index: 0, kind: input, shape index: {}]   ;;  %s29_s1 = inlined_call_operand.vmem [shape: f32[9,4], index: 1, kind: output, shape index: {}]  }
   0x1   :  { %v4_v0 = vld [vmem:[%s28_s0] ss:$0 sm:$0xff] }
   0x2   :  { %5 = vst [vmem:[%s29_s1] sm:$0xff] %v4_v0 }
   0x3   :  { %8 = vst [vmem:[%s29_s1 + $0x8] sm:$0xff] %v4_v0 }

// kernel: tile.89
= control target key start
LH: loop header
LB: loop body
LE: loop exit
PB: predicated region body
PF: predicated region fallthrough
CT: control target
= control target key end

     0   :  { %s75_s10 = smov 32   ;;  %s76_s11 = smov 24   ;;  %vm3_vm0 = vcmask 31744   ;;  %vm9_vm1 = vcmask 294144   ;;  %vm15_vm2 = vcmask 261344   ;;  %vm21_vm3 = vcmask 228544   ;;  %s123_s0 = inlined_call_operand.vmem [shape: f32[9,4], index: 0, kind: input, shape index: {}]   ;;  %s124_s1 = inlined_call_operand.vmem [shape: f32[1,36], index: 1, kind: output, shape index: {}]  }
   0x1   :  { %v59_v0 = vld [vmem:[%s123_s0 + $0x8] sm:$0x1]   ;;  %v61_v1 = vld [vmem:[%s123_s0 + $0x6] sm:$0x1]   ;;  %v63_v2 = vld [vmem:[%s123_s0 + $0x4] sm:$0x1]  }
   0x2   :  { %7 = vrot.lane.b32.xlu0 %v59_v0, %s75_s10  ;;  %19 = vrot.lane.b32.xlu1 %v61_v1, %s76_s11  ;;  %s77_s14 = smov 16   ;;  %v60_v3 = vld [vmem:[%s123_s0 + $0x7] sm:$0x1]   ;;  %v62_v4 = vld [vmem:[%s123_s0 + $0x5] sm:$0x1]   ;;  %s78_s19 = smov 28  }
   0x3   :  { %31 = vrot.lane.b32.xlu2 %v63_v2, %s77_s14  ;;  %s79_s20 = smov 20   ;;  %v64_v5 = vld [vmem:[%s123_s0 + $0x3] sm:$0x1]   ;;  %s80_s23 = smov 12   ;;  %v65_v6 = vld [vmem:[%s123_s0 + $0x2] sm:$0x1]  }
   0x4   :  { %v66_v7 = vld [vmem:[%s123_s0 + $0x1] sm:$0x1]   ;;  %s81_s28 = smov 8   ;;  %s82_s29 = smov 4   ;;  %v2_v8 = vld [vmem:[%s123_s0] sm:$0x1]  }
   0x5   :  { %4 = vst.msk [vmem:[#allocation0] sm:$0x1] %vm3_vm0, %v2_v8   ;;  %vm27_vm4 = vcmask 195744   ;;  %vm33_vm5 = vcmask 162944   ;;  %vm39_vm6 = vcmask 130144   ;;  %vm45_vm7 = vcmask 97344  }
   0x6   :  { %vm51_vm8 = vcmask 64544  }
   0xa   :  { %13 = vrot.lane.b32.xlu0 %v60_v3, %s78_s19  ;;  %25 = vrot.lane.b32.xlu1 %v62_v4, %s79_s20 }
   0xb   :  { %37 = vrot.lane.b32.xlu2 %v64_v5, %s80_s23 }
  0x12   :  { %43 = vrot.lane.b32.xlu0 %v65_v6, %s81_s28  ;;  %49 = vrot.lane.b32.xlu1 %v66_v7, %s82_s29 }
  0x5d   :  { %v32_v9 = vpop.permute.xlu2 %31  }
  0x65   :  { %v38_v10 = vpop.permute.xlu2 %37  }
  0x74   :  { %v8_v11 = vpop.permute.xlu0 %7   ;;  %v20_v12 = vpop.permute.xlu1 %19  }
  0x75   :  { %10 = vst.msk [vmem:[#allocation0] sm:$0x1] %vm9_vm1, %v8_v11  }
  0x7c   :  { %v14_v13 = vpop.permute.xlu0 %13   ;;  %v26_v14 = vpop.permute.xlu1 %25  }
  0x7d   :  { %16 = vst.msk [vmem:[#allocation0] sm:$0x1] %vm15_vm2, %v14_v13  }
  0x7e   :  { %22 = vst.msk [vmem:[#allocation0] sm:$0x1] %vm21_vm3, %v20_v12  }
  0x7f   :  { %28 = vst.msk [vmem:[#allocation0] sm:$0x1] %vm27_vm4, %v26_v14  }
  0x80   :  { %34 = vst.msk [vmem:[#allocation0] sm:$0x1] %vm33_vm5, %v32_v9  }
  0x81   :  { %40 = vst.msk [vmem:[#allocation0] sm:$0x1] %vm39_vm6, %v38_v10  }
  0x84   :  { %v44_v15 = vpop.permute.xlu0 %43   ;;  %v50_v16 = vpop.permute.xlu1 %49  }
  0x85   :  { %46 = vst.msk [vmem:[#allocation0] sm:$0x1] %vm45_vm7, %v44_v15  }
  0x86   :  { %52 = vst.msk [vmem:[#allocation0] sm:$0x1] %vm51_vm8, %v50_v16  }
  0x8d   :  { %v55_v17 = vld [vmem:[#allocation0] sm:$0x1] }
  0x8e   :  { %58 = vst [vmem:[%s124_s1] sm:$0x1] %v55_v17 }

// kernel: mbstftd_forward.19
= control target key start
LH: loop header
LB: loop body
LE: loop exit
PB: predicated region body
PF: predicated region fallthrough
CT: control target
= control target key end

     0   :  { %vm245_vm0 = vcmask 1045504   ;;  %vm235_vm1 = vcmask 359424   ;;  %vm23_vm2 = vcmask 293888   ;;  %vm352_vm3 = vcmask 289792   ;;  %s657_s1 = inlined_call_operand.vmem [shape: bf16[300,36], index: 1, kind: input, shape index: {}]   ;;  %s658_s0 = inlined_call_operand.vmem [shape: bf16[40,300], index: 0, kind: input, shape index: {}]   ;;  %s659_s2 = inlined_call_operand.vmem [shape: f32[1,36], index: 2, kind: input, shape index: {}]   ;;  %s660_s3 = inlined_call_operand.vmem [shape: bf16[40,36], index: 3, kind: output, shape index: {}]  }
   0x1   :  { %v478_v0 = vld [vmem:[%s657_s1 + $0x38] sm:$0xff]  ;;  %v477_v2 = vld [vmem:[%s657_s1 + $0x30] sm:$0xff]  ;;  %v476_v8 = vld [vmem:[%s657_s1 + $0x28] sm:$0xff] }
   0x2   :  { %v486_v1 = vld [vmem:[%s657_s1 + $0x78] sm:$0xff]  ;;  %249 = vmatpush.bf16.msra.mxu0 %v478_v0  ;;  %v485_v3 = vld [vmem:[%s657_s1 + $0x70] sm:$0xff]  ;;  %490 = vmatpush.bf16.msra.mxu3 %v478_v0  ;;  %v484_v9 = vld [vmem:[%s657_s1 + $0x68] sm:$0xff] }
   0x3   :  { %272 = vmatpush.bf16.msra.mxu1 %v486_v1  ;;  %v460_v4 = vld [vmem:[%s657_s1 + $0x90] sm:$0xf]  ;;  %v489_v5 = vld [vmem:[%s657_s1 + $0x90] sm:$0x30]  ;;  %v488_v10 = vld [vmem:[%s657_s1 + $0x88] sm:$0xff] }
   0x4   :  { %v461_v6 = vor.u32 %v489_v5, %v460_v4  ;;  %v475_v11 = vld [vmem:[%s657_s1 + $0x20] sm:$0xff]  ;;  %v372_v14 = vld [vmem:[%s658_s0 + $0x8] sm:$0xf]  ;;  %v467_v15 = vld [vmem:[%s658_s0 + $0x10] sm:$0xf0] }
   0x5   :  { %v483_v12 = vld [vmem:[%s657_s1 + $0x60] sm:$0xff]  ;;  %v474_v16 = vld [vmem:[%s657_s1 + $0x18] sm:$0xff]  ;;  %v373_v18 = vor.u32 %v467_v15, %v372_v14  ;;  %v473_v19 = vld [vmem:[%s657_s1 + $0x10] sm:$0xff] }
   0x6   :  { %v247_v7 = vsel %vm245_vm0, %v461_v6, 0  ;;  %250 = vmatpush.bf16.msra.mxu0 %v477_v2  ;;  %491 = vmatpush.bf16.msra.mxu3 %v477_v2  ;;  %v487_v13 = vld [vmem:[%s657_s1 + $0x80] sm:$0xff]  ;;  %v482_v17 = vld [vmem:[%s657_s1 + $0x58] sm:$0xff]  ;;  %v481_v20 = vld [vmem:[%s657_s1 + $0x50] sm:$0xff] }
   0x7   :  { %273 = vmatpush.bf16.msra.mxu1 %v485_v3  ;;  %300 = vmatpush.bf16.msra.mxu2 %v247_v7  ;;  %v472_v21 = vld [vmem:[%s657_s1 + $0x8] sm:$0xff]  ;;  %v471_v23 = vld [vmem:[%s657_s1] sm:$0xff]  ;;  %v366_v28 = vld [vmem:[%s658_s0 + $0xc] sm:$0xf0] }
   0x8   :  { %v480_v22 = vld [vmem:[%s657_s1 + $0x48] sm:$0xff]  ;;  %v479_v24 = vld [vmem:[%s657_s1 + $0x40] sm:$0xff]  ;;  %v376_v29 = vld [vmem:[%s658_s0 + $0x18] sm:$0xf] }
   0x9   :  { %v364_v25 = vld [vmem:[%s658_s0] sm:$0xf]  ;;  %v466_v26 = vld [vmem:[%s658_s0 + $0x8] sm:$0xf0]  ;;  %v465_v27 = vld [vmem:[%s658_s0 + $0x4] sm:$0xf] }
   0xa   :  { %251 = vmatpush.bf16.msra.mxu0 %v476_v8  ;;  %492 = vmatpush.bf16.msra.mxu3 %v476_v8  ;;  %v469_v30 = vld [vmem:[%s658_s0 + $0x20] sm:$0xf0]  ;;  %v384_v31 = vld [vmem:[%s658_s0 + $0x20] sm:$0xf]  ;;  %v470_v32 = vld [vmem:[%s658_s0 + $0x28] sm:$0xf0]  ;;  %v365_v33 = vor.u32 %v466_v26, %v364_v25  ;;  %v369_v34 = vor.u32 %v465_v27, %v366_v28 }
   0xb   :  { %274 = vmatpush.bf16.msra.mxu1 %v484_v9  ;;  %301 = vmatpush.bf16.msra.mxu2 %v488_v10  ;;  %v377_v35 = vor.u32 %v469_v30, %v376_v29  ;;  %v385_v36 = vor.u32 %v470_v32, %v384_v31  ;;  %v42_v37 = vld [vmem:[%s658_s0 + $0x30] sm:$0xff]  ;;  %v43_v38 = vld [vmem:[%s658_s0 + $0x38] sm:$0xf]  ;;  %v468_v39 = vld [vmem:[%s658_s0 + $0x1c] sm:$0xf] }
   0xc   :  { %v378_v40 = vld [vmem:[%s658_s0 + $0x24] sm:$0xf0]  ;;  %v104_v41 = vunpack.c.l.b16 %v42_v37  ;;  %v106_v42 = vunpack.c.l.b16 %v43_v38  ;;  %v105_v46 = vunpack.c.h.b16 %v42_v37  ;;  %v498_v48 = vld [vmem:[%s659_s2] ss:$0 sm:$0xff] }
   0xd   :  { %v381_v43 = vor.u32 %v468_v39, %v378_v40  ;;  %24 = vst.msk [vmem:[#allocation2] sm:$0xff] %vm23_vm2, %v498_v48 }
   0xe   :  { %252 = vmatpush.bf16.msra.mxu0 %v475_v11  ;;  %493 = vmatpush.bf16.msra.mxu3 %v475_v11  ;;  %v113_v44 = vpack.c.b16 %v104_v41, %v104_v41  ;;  %v115_v45 = vpack.c.b16 %v106_v42, %v106_v42  ;;  %v114_v47 = vpack.c.b16 %v105_v46, %v105_v46 }
   0xf   :  { %275 = vmatpush.bf16.msra.mxu1 %v483_v12  ;;  %302 = vmatpush.bf16.msra.mxu2 %v487_v13  ;;  %25 = vst.msk [vmem:[#allocation2 + $0x8] sm:$0xff] %vm23_vm2, %v498_v48 }
  0x10   :  { %26 = vst.msk [vmem:[#allocation2 + $0x10] sm:$0xff] %vm23_vm2, %v498_v48 }
  0x11   :  { %27 = vst.msk [vmem:[#allocation2 + $0x18] sm:$0xff] %vm23_vm2, %v498_v48 }
  0x12   :  { %253 = vmatpush.bf16.msra.mxu0 %v474_v16  ;;  %494 = vmatpush.bf16.msra.mxu3 %v474_v16  ;;  %28 = vst.msk [vmem:[#allocation2 + $0x20] sm:$0xff] %vm23_vm2, %v498_v48 }
  0x13   :  { %276 = vmatpush.bf16.msra.mxu1 %v482_v17  ;;  %462 = vmatmul.msk.bf16.vlgmr.msra.gmra.mxu2 %vm235_vm1, %v373_v18 }
  0x14   :  { %v29_v54 = vld [vmem:[#allocation2] sm:$0xff] }
  0x16   :  { %254 = vmatpush.bf16.msra.mxu0 %v473_v19  ;;  %495 = vmatpush.bf16.msra.mxu3 %v473_v19  ;;  %v30_v62 = vld [vmem:[#allocation2 + $0x8] sm:$0xff] }
  0x17   :  { %277 = vmatpush.bf16.msra.mxu1 %v481_v20  ;;  %v31_v8 = vld [vmem:[#allocation2 + $0x10] sm:$0xff] }
  0x18   :  { %v32_v19 = vld [vmem:[#allocation2 + $0x18] sm:$0xff] }
  0x19   :  { %v33_v30 = vld [vmem:[#allocation2 + $0x20] sm:$0xff] }
  0x1a   :  { %255 = vmatpush.bf16.msra.mxu0 %v472_v21  ;;  %496 = vmatpush.bf16.msra.mxu3 %v472_v21 }
  0x1b   :  { %278 = vmatpush.bf16.msra.mxu1 %v480_v22 }
  0x1e   :  { %256 = vmatpush.bf16.msra.mxu0 %v471_v23  ;;  %497 = vmatpush.bf16.msra.mxu3 %v471_v23 }
  0x1f   :  { %279 = vmatpush.bf16.msra.mxu1 %v479_v24 }
  0x21   :  { %257 = vmatmul.bf16.vlgmr.msra.gmra.mxu0 %v365_v33  ;;  %262 = vmatmul.bf16.vlgmr.msra.gmra.mxu3 %v377_v35 }
  0x22   :  { %280 = vmatmul.bf16.vlgmr.msra.gmra.mxu1 %v369_v34 }
  0x23   :  { %463 = vmatmul.msk.bf16.gmra.mxu2 %vm235_vm1, %v385_v36 }
  0x31   :  { %267 = vmatmul.bf16.gmra.mxu3 %v113_v44 }
  0x32   :  { %285 = vmatmul.bf16.gmra.mxu1 %v381_v43 }
  0x33   :  { %464 = vmatmul.msk.bf16.gmra.mxu2 %vm235_vm1, %v115_v45 }
  0x42   :  { %290 = vmatmul.bf16.gmra.mxu1 %v114_v47 }
  0x96   :  { %v304_v49 = vpop.f32.mrf.mxu2 }
  0x9e   :  { %v258_v50 = vpop.f32.mrf.mxu0  ;;  %v306_v53 = vpop.f32.mrf.mxu2 }
  0x9f   :  { %v281_v51 = vpop.f32.mrf.mxu1 }
  0xa0   :  { %v282_v52 = vadd.f32 %v281_v51, %v258_v50 }
  0xa2   :  { %v305_v55 = vadd.f32 %v304_v49, %v282_v52 }
  0xa4   :  { %v318_v56 = vadd.f32 %v305_v55, %v29_v54  ;;  %v263_v57 = vpop.f32.mrf.mxu3 }
  0xa6   :  { %324 = vst.msk [vmem:[#allocation2] sm:$0xff] %vm23_vm2, %v318_v56  ;;  %v260_v58 = vpop.f32.mrf.mxu0  ;;  %v309_v61 = vpop.f32.mrf.mxu2 }
  0xa7   :  { %v283_v59 = vpop.f32.mrf.mxu1 }
  0xa8   :  { %v284_v60 = vadd.f32 %v283_v59, %v260_v58 }
  0xaa   :  { %v307_v63 = vadd.f32 %v306_v53, %v284_v60 }
  0xac   :  { %v319_v0 = vadd.f32 %v307_v63, %v30_v62  ;;  %v265_v3 = vpop.f32.mrf.mxu3 }
  0xad   :  { %v332_v1 = vld [vmem:[#allocation2] sm:$0xff] }
  0xae   :  { %v337_v2 = vmul.f32 0.1, %v332_v1  ;;  %325 = vst.msk [vmem:[#allocation2 + $0x8] sm:$0xff] %vm23_vm2, %v319_v0  ;;  %v311_v7 = vpop.f32.mrf.mxu2 }
  0xaf   :  { %v286_v4 = vpop.f32.mrf.mxu1 }
  0xb0   :  { %v342_v5 = vmax.f32 %v332_v1, %v337_v2  ;;  %v287_v6 = vadd.f32 %v286_v4, %v263_v57 }
  0xb2   :  { %v347_v9 = vpack.c.bf16 %v342_v5, %v342_v5  ;;  %v310_v10 = vadd.f32 %v309_v61, %v287_v6 }
  0xb4   :  { %353 = vst.msk [vmem:[%s660_s3] sm:$0xf] %vm352_vm3, %v347_v9  ;;  %v320_v11 = vadd.f32 %v310_v10, %v31_v8  ;;  %v268_v14 = vpop.f32.mrf.mxu3 }
  0xb5   :  { %v333_v12 = vld [vmem:[#allocation2 + $0x8] sm:$0xff] }
  0xb6   :  { %v338_v13 = vmul.f32 0.1, %v333_v12  ;;  %326 = vst.msk [vmem:[#allocation2 + $0x10] sm:$0xff] %vm23_vm2, %v320_v11  ;;  %v314_v18 = vpop.f32.mrf.mxu2 }
  0xb7   :  { %v288_v15 = vpop.f32.mrf.mxu1 }
  0xb8   :  { %v343_v16 = vmax.f32 %v333_v12, %v338_v13  ;;  %v289_v17 = vadd.f32 %v288_v15, %v265_v3 }
  0xba   :  { %v348_v20 = vpack.c.bf16 %v343_v16, %v343_v16  ;;  %v312_v21 = vadd.f32 %v311_v7, %v289_v17 }
  0xbc   :  { %354 = vst.msk [vmem:[%s660_s3 + $0x4] sm:$0xf] %vm352_vm3, %v348_v20  ;;  %v321_v22 = vadd.f32 %v312_v21, %v32_v19  ;;  %v270_v25 = vpop.f32.mrf.mxu3 }
  0xbd   :  { %v334_v23 = vld [vmem:[#allocation2 + $0x10] sm:$0xff] }
  0xbe   :  { %v339_v24 = vmul.f32 0.1, %v334_v23  ;;  %327 = vst.msk [vmem:[#allocation2 + $0x18] sm:$0xff] %vm23_vm2, %v321_v22  ;;  %v316_v29 = vpop.f32.mrf.mxu2 }
  0xbf   :  { %v291_v26 = vpop.f32.mrf.mxu1 }
  0xc0   :  { %v344_v27 = vmax.f32 %v334_v23, %v339_v24  ;;  %v292_v28 = vadd.f32 %v291_v26, %v268_v14 }
  0xc2   :  { %v349_v31 = vpack.c.bf16 %v344_v27, %v344_v27  ;;  %v315_v32 = vadd.f32 %v314_v18, %v292_v28 }
  0xc4   :  { %355 = vst.msk [vmem:[%s660_s3 + $0x8] sm:$0xf] %vm352_vm3, %v349_v31  ;;  %v322_v33 = vadd.f32 %v315_v32, %v33_v30 }
  0xc5   :  { %v335_v34 = vld [vmem:[#allocation2 + $0x18] sm:$0xff] }
  0xc6   :  { %v340_v35 = vmul.f32 0.1, %v335_v34  ;;  %328 = vst.msk [vmem:[#allocation2 + $0x20] sm:$0xff] %vm23_vm2, %v322_v33 }
  0xc7   :  { %v293_v36 = vpop.f32.mrf.mxu1 }
  0xc8   :  { %v345_v37 = vmax.f32 %v335_v34, %v340_v35 }
  0xca   :  { %v350_v38 = vpack.c.bf16 %v345_v37, %v345_v37 }
  0xcc   :  { %356 = vst.msk [vmem:[%s660_s3 + $0xc] sm:$0xf] %vm352_vm3, %v350_v38 }
  0xcd   :  { %v336_v39 = vld [vmem:[#allocation2 + $0x20] sm:$0xff] }
  0xce   :  { %v341_v40 = vmul.f32 0.1, %v336_v39 }
  0xd0   :  { %v346_v41 = vmax.f32 %v336_v39, %v341_v40 }
  0xd2   :  { %v351_v42 = vpack.c.bf16 %v346_v41, %v346_v41 }
  0xd4   :  { %357 = vst.msk [vmem:[%s660_s3 + $0x10] sm:$0xf] %vm352_vm3, %v351_v42 }

// kernel: tile.93
= control target key start
LH: loop header
LB: loop body
LE: loop exit
PB: predicated region body
PF: predicated region fallthrough
CT: control target
= control target key end

     0   :  { %s22_s0 = inlined_call_operand.vmem [shape: f32[4], index: 0, kind: input, shape index: {}]   ;;  %s23_s1 = inlined_call_operand.vmem [shape: f32[5,4], index: 1, kind: output, shape index: {}]  }
   0x1   :  { %v4_v0 = vld [vmem:[%s22_s0] ss:$0 sm:$0xff] }
   0x2   :  { %5 = vst [vmem:[%s23_s1] sm:$0xff] %v4_v0 }

// kernel: tile.94
= control target key start
LH: loop header
LB: loop body
LE: loop exit
PB: predicated region body
PF: predicated region fallthrough
CT: control target
= control target key end

     0   :  { %s43_s10 = smov 16   ;;  %s44_s11 = smov 8   ;;  %vm3_vm0 = vcmask 31744   ;;  %vm9_vm1 = vcmask 162944   ;;  %vm15_vm2 = vcmask 130144   ;;  %vm21_vm3 = vcmask 97344   ;;  %s75_s0 = inlined_call_operand.vmem [shape: f32[5,4], index: 0, kind: input, shape index: {}]   ;;  %s76_s1 = inlined_call_operand.vmem [shape: f32[1,20], index: 1, kind: output, shape index: {}]  }
   0x1   :  { %v35_v0 = vld [vmem:[%s75_s0 + $0x4] sm:$0x1]   ;;  %v37_v1 = vld [vmem:[%s75_s0 + $0x2] sm:$0x1]   ;;  %v36_v2 = vld [vmem:[%s75_s0 + $0x3] sm:$0x1]  }
   0x2   :  { %7 = vrot.lane.b32.xlu0 %v35_v0, %s43_s10  ;;  %19 = vrot.lane.b32.xlu1 %v37_v1, %s44_s11  ;;  %v38_v3 = vld [vmem:[%s75_s0 + $0x1] sm:$0x1]   ;;  %s45_s16 = smov 12   ;;  %s46_s17 = smov 4   ;;  %v2_v4 = vld [vmem:[%s75_s0] sm:$0x1]  }
   0x3   :  { %4 = vst.msk [vmem:[#allocation0] sm:$0x1] %vm3_vm0, %v2_v4   ;;  %vm27_vm4 = vcmask 64544  }
   0xa   :  { %13 = vrot.lane.b32.xlu0 %v36_v2, %s45_s16  ;;  %25 = vrot.lane.b32.xlu1 %v38_v3, %s46_s17 }
  0x74   :  { %v8_v5 = vpop.permute.xlu0 %7   ;;  %v20_v6 = vpop.permute.xlu1 %19  }
  0x75   :  { %10 = vst.msk [vmem:[#allocation0] sm:$0x1] %vm9_vm1, %v8_v5  }
  0x7c   :  { %v14_v7 = vpop.permute.xlu0 %13   ;;  %v26_v8 = vpop.permute.xlu1 %25  }
  0x7d   :  { %16 = vst.msk [vmem:[#allocation0] sm:$0x1] %vm15_vm2, %v14_v7  }
  0x7e   :  { %22 = vst.msk [vmem:[#allocation0] sm:$0x1] %vm21_vm3, %v20_v6  }
  0x7f   :  { %28 = vst.msk [vmem:[#allocation0] sm:$0x1] %vm27_vm4, %v26_v8  }
  0x86   :  { %v31_v9 = vld [vmem:[#allocation0] sm:$0x1] }
  0x87   :  { %34 = vst [vmem:[%s76_s1] sm:$0x1] %v31_v9 }

// kernel: mbstftd_forward.20
= control target key start
LH: loop header
LB: loop body
LE: loop exit
PB: predicated region body
PF: predicated region fallthrough
CT: control target
= control target key end

     0   :  { %vm176_vm0 = vcmask 1045504   ;;  %vm166_vm1 = vcmask 621568   ;;  %vm23_vm2 = vcmask 162816   ;;  %vm260_vm3 = vcmask 158720   ;;  %s497_s1 = inlined_call_operand.vmem [shape: bf16[204,20], index: 1, kind: input, shape index: {}]   ;;  %s498_s0 = inlined_call_operand.vmem [shape: bf16[40,204], index: 0, kind: input, shape index: {}]   ;;  %s499_s2 = inlined_call_operand.vmem [shape: f32[1,20], index: 2, kind: input, shape index: {}]   ;;  %s500_s3 = inlined_call_operand.vmem [shape: bf16[40,20], index: 3, kind: output, shape index: {}]  }
   0x1   :  { %v352_v0 = vld [vmem:[%s497_s1 + $0x38] sm:$0xff]  ;;  %v336_v1 = vld [vmem:[%s497_s1 + $0x60] sm:$0xf]  ;;  %v357_v2 = vld [vmem:[%s497_s1 + $0x60] sm:$0x30] }
   0x2   :  { %358 = vmatpush.bf16.msra.mxu2 %v352_v0  ;;  %180 = vmatpush.bf16.msra.mxu0 %v352_v0  ;;  %v351_v3 = vld [vmem:[%s497_s1 + $0x30] sm:$0xff]  ;;  %v337_v4 = vor.u32 %v357_v2, %v336_v1  ;;  %v356_v6 = vld [vmem:[%s497_s1 + $0x58] sm:$0xff]  ;;  %v350_v7 = vld [vmem:[%s497_s1 + $0x28] sm:$0xff] }
   0x3   :  { %v355_v8 = vld [vmem:[%s497_s1 + $0x50] sm:$0xff]  ;;  %v349_v9 = vld [vmem:[%s497_s1 + $0x20] sm:$0xff]  ;;  %v354_v10 = vld [vmem:[%s497_s1 + $0x48] sm:$0xff] }
   0x4   :  { %v178_v5 = vsel %vm176_vm0, %v337_v4, 0  ;;  %v348_v11 = vld [vmem:[%s497_s1 + $0x18] sm:$0xff]  ;;  %v353_v12 = vld [vmem:[%s497_s1 + $0x40] sm:$0xff]  ;;  %v343_v13 = vld [vmem:[%s498_s0 + $0x14] sm:$0xf] }
   0x5   :  { %366 = vmatpush.bf16.msra.mxu3 %v178_v5  ;;  %206 = vmatpush.bf16.msra.mxu1 %v178_v5  ;;  %v282_v14 = vld [vmem:[%s498_s0 + $0x18] sm:$0xf0]  ;;  %v341_v15 = vld [vmem:[%s498_s0 + $0x4] sm:$0xf]  ;;  %v274_v16 = vld [vmem:[%s498_s0 + $0x8] sm:$0xf0] }
   0x6   :  { %359 = vmatpush.bf16.msra.mxu2 %v351_v3  ;;  %181 = vmatpush.bf16.msra.mxu0 %v351_v3  ;;  %v347_v17 = vld [vmem:[%s497_s1 + $0x10] sm:$0xff]  ;;  %v285_v18 = vor.u32 %v343_v13, %v282_v14  ;;  %v277_v19 = vor.u32 %v341_v15, %v274_v16  ;;  %v346_v20 = vld [vmem:[%s497_s1 + $0x8] sm:$0xff]  ;;  %v345_v21 = vld [vmem:[%s497_s1] sm:$0xff] }
   0x7   :  { %v280_v22 = vld [vmem:[%s498_s0 + $0x10] sm:$0xf]  ;;  %v344_v23 = vld [vmem:[%s498_s0 + $0x14] sm:$0xf0]  ;;  %v272_v24 = vld [vmem:[%s498_s0] sm:$0xf] }
   0x8   :  { %v342_v25 = vld [vmem:[%s498_s0 + $0x4] sm:$0xf0]  ;;  %v281_v26 = vor.u32 %v344_v23, %v280_v22  ;;  %v38_v28 = vld [vmem:[%s498_s0 + $0x20] sm:$0xff] }
   0x9   :  { %367 = vmatpush.bf16.msra.mxu3 %v356_v6  ;;  %207 = vmatpush.bf16.msra.mxu1 %v356_v6  ;;  %v273_v27 = vor.u32 %v342_v25, %v272_v24  ;;  %v79_v29 = vunpack.c.h.b16 %v38_v28  ;;  %v78_v31 = vunpack.c.l.b16 %v38_v28  ;;  %v371_v33 = vld [vmem:[%s499_s2] ss:$0 sm:$0xff] }
   0xa   :  { %360 = vmatpush.bf16.msra.mxu2 %v350_v7  ;;  %182 = vmatpush.bf16.msra.mxu0 %v350_v7  ;;  %24 = vst.msk [vmem:[#allocation2] sm:$0xff] %vm23_vm2, %v371_v33 }
   0xb   :  { %v85_v30 = vpack.c.b16 %v79_v29, %v79_v29  ;;  %v84_v32 = vpack.c.b16 %v78_v31, %v78_v31  ;;  %25 = vst.msk [vmem:[#allocation2 + $0x8] sm:$0xff] %vm23_vm2, %v371_v33 }
   0xc   :  { %26 = vst.msk [vmem:[#allocation2 + $0x10] sm:$0xff] %vm23_vm2, %v371_v33 }
   0xd   :  { %368 = vmatpush.bf16.msra.mxu3 %v355_v8  ;;  %208 = vmatpush.bf16.msra.mxu1 %v355_v8  ;;  %27 = vst.msk [vmem:[#allocation2 + $0x18] sm:$0xff] %vm23_vm2, %v371_v33 }
   0xe   :  { %361 = vmatpush.bf16.msra.mxu2 %v349_v9  ;;  %183 = vmatpush.bf16.msra.mxu0 %v349_v9  ;;  %28 = vst.msk [vmem:[#allocation2 + $0x20] sm:$0xff] %vm23_vm2, %v371_v33 }
  0x11   :  { %369 = vmatpush.bf16.msra.mxu3 %v354_v10  ;;  %209 = vmatpush.bf16.msra.mxu1 %v354_v10  ;;  %v29_v37 = vld [vmem:[#allocation2] sm:$0xff] }
  0x12   :  { %362 = vmatpush.bf16.msra.mxu2 %v348_v11  ;;  %184 = vmatpush.bf16.msra.mxu0 %v348_v11  ;;  %v30_v46 = vld [vmem:[#allocation2 + $0x8] sm:$0xff] }
  0x13   :  { %v31_v41 = vld [vmem:[#allocation2 + $0x10] sm:$0xff] }
  0x14   :  { %v32_v53 = vld [vmem:[#allocation2 + $0x18] sm:$0xff] }
  0x15   :  { %370 = vmatpush.bf16.msra.mxu3 %v353_v12  ;;  %210 = vmatpush.bf16.msra.mxu1 %v353_v12  ;;  %v33_v1 = vld [vmem:[#allocation2 + $0x20] sm:$0xff] }
  0x16   :  { %363 = vmatpush.bf16.msra.mxu2 %v347_v17  ;;  %185 = vmatpush.bf16.msra.mxu0 %v347_v17 }
  0x18   :  { %339 = vmatmul.msk.bf16.vlgmr.msra.gmra.mxu3 %vm166_vm1, %v285_v18  ;;  %338 = vmatmul.msk.bf16.vlgmr.msra.gmra.mxu1 %vm166_vm1, %v277_v19 }
  0x1a   :  { %364 = vmatpush.bf16.msra.mxu2 %v346_v20  ;;  %186 = vmatpush.bf16.msra.mxu0 %v346_v20 }
  0x1e   :  { %365 = vmatpush.bf16.msra.mxu2 %v345_v21  ;;  %187 = vmatpush.bf16.msra.mxu0 %v345_v21 }
  0x21   :  { %193 = vmatmul.bf16.vlgmr.msra.gmra.mxu2 %v281_v26  ;;  %188 = vmatmul.bf16.vlgmr.msra.gmra.mxu0 %v273_v27 }
  0x28   :  { %340 = vmatmul.msk.bf16.gmra.mxu3 %vm166_vm1, %v85_v30 }
  0x31   :  { %198 = vmatmul.bf16.gmra.mxu2 %v84_v32 }
  0x95   :  { %v212_v34 = vpop.f32.mrf.mxu1 }
  0x9b   :  { %v217_v35 = vpop.f32.mrf.mxu3 }
  0x9d   :  { %v214_v43 = vpop.f32.mrf.mxu1 }
  0x9e   :  { %v189_v36 = vpop.f32.mrf.mxu0 }
  0x9f   :  { %v213_v38 = vadd.f32 %v212_v34, %v189_v36 }
  0xa1   :  { %v226_v39 = vadd.f32 %v213_v38, %v29_v37 }
  0xa3   :  { %232 = vst.msk [vmem:[#allocation2] sm:$0xff] %vm23_vm2, %v226_v39  ;;  %v219_v40 = vpop.f32.mrf.mxu3 }
  0xa4   :  { %v194_v42 = vpop.f32.mrf.mxu2 }
  0xa5   :  { %v218_v44 = vadd.f32 %v217_v35, %v194_v42 }
  0xa6   :  { %v191_v45 = vpop.f32.mrf.mxu0 }
  0xa7   :  { %v228_v47 = vadd.f32 %v218_v44, %v31_v41  ;;  %v215_v48 = vadd.f32 %v214_v43, %v191_v45 }
  0xa9   :  { %234 = vst.msk [vmem:[#allocation2 + $0x10] sm:$0xff] %vm23_vm2, %v228_v47  ;;  %v227_v49 = vadd.f32 %v215_v48, %v30_v46 }
  0xaa   :  { %v240_v50 = vld [vmem:[#allocation2] sm:$0xff] }
  0xab   :  { %v245_v51 = vmul.f32 0.1, %v240_v50  ;;  %233 = vst.msk [vmem:[#allocation2 + $0x8] sm:$0xff] %vm23_vm2, %v227_v49  ;;  %v222_v52 = vpop.f32.mrf.mxu3 }
  0xac   :  { %v196_v54 = vpop.f32.mrf.mxu2 }
  0xad   :  { %v250_v55 = vmax.f32 %v240_v50, %v245_v51  ;;  %v220_v56 = vadd.f32 %v219_v40, %v196_v54 }
  0xaf   :  { %v255_v57 = vpack.c.bf16 %v250_v55, %v250_v55  ;;  %v229_v58 = vadd.f32 %v220_v56, %v32_v53 }
  0xb0   :  { %v242_v59 = vld [vmem:[#allocation2 + $0x10] sm:$0xff] }
  0xb1   :  { %261 = vst.msk [vmem:[%s500_s3] sm:$0xf] %vm260_vm3, %v255_v57  ;;  %v247_v60 = vmul.f32 0.1, %v242_v59 }
  0xb2   :  { %v241_v61 = vld [vmem:[#allocation2 + $0x8] sm:$0xff]  ;;  %235 = vst.msk [vmem:[#allocation2 + $0x18] sm:$0xff] %vm23_vm2, %v229_v58 }
  0xb3   :  { %v252_v62 = vmax.f32 %v242_v59, %v247_v60  ;;  %v246_v63 = vmul.f32 0.1, %v241_v61  ;;  %v224_v0 = vpop.f32.mrf.mxu3 }
  0xb4   :  { %v199_v2 = vpop.f32.mrf.mxu2 }
  0xb5   :  { %v257_v3 = vpack.c.bf16 %v252_v62, %v252_v62  ;;  %v251_v4 = vmax.f32 %v241_v61, %v246_v63  ;;  %v223_v5 = vadd.f32 %v222_v52, %v199_v2 }
  0xb7   :  { %263 = vst.msk [vmem:[%s500_s3 + $0x8] sm:$0xf] %vm260_vm3, %v257_v3  ;;  %v256_v6 = vpack.c.bf16 %v251_v4, %v251_v4  ;;  %v230_v7 = vadd.f32 %v223_v5, %v33_v1 }
  0xb9   :  { %262 = vst.msk [vmem:[%s500_s3 + $0x4] sm:$0xf] %vm260_vm3, %v256_v6  ;;  %v243_v8 = vld [vmem:[#allocation2 + $0x18] sm:$0xff] }
  0xba   :  { %v248_v9 = vmul.f32 0.1, %v243_v8  ;;  %236 = vst.msk [vmem:[#allocation2 + $0x20] sm:$0xff] %vm23_vm2, %v230_v7 }
  0xbc   :  { %v253_v10 = vmax.f32 %v243_v8, %v248_v9  ;;  %v201_v11 = vpop.f32.mrf.mxu2 }
  0xbe   :  { %v258_v12 = vpack.c.bf16 %v253_v10, %v253_v10 }
  0xc0   :  { %264 = vst.msk [vmem:[%s500_s3 + $0xc] sm:$0xf] %vm260_vm3, %v258_v12 }
  0xc1   :  { %v244_v13 = vld [vmem:[#allocation2 + $0x20] sm:$0xff] }
  0xc2   :  { %v249_v14 = vmul.f32 0.1, %v244_v13 }
  0xc4   :  { %v254_v15 = vmax.f32 %v244_v13, %v249_v14 }
  0xc6   :  { %v259_v16 = vpack.c.bf16 %v254_v15, %v254_v15 }
  0xc8   :  { %265 = vst.msk [vmem:[%s500_s3 + $0x10] sm:$0xf] %vm260_vm3, %v259_v16 }

// kernel: tile.98
= control target key start
LH: loop header
LB: loop body
LE: loop exit
PB: predicated region body
PF: predicated region fallthrough
CT: control target
= control target key end

     0   :  { %s22_s0 = inlined_call_operand.vmem [shape: f32[4], index: 0, kind: input, shape index: {}]   ;;  %s23_s1 = inlined_call_operand.vmem [shape: f32[3,4], index: 1, kind: output, shape index: {}]  }
   0x1   :  { %v4_v0 = vld [vmem:[%s22_s0] ss:$0 sm:$0xff] }
   0x2   :  { %5 = vst [vmem:[%s23_s1] sm:$0xf] %v4_v0 }

// kernel: tile.99
= control target key start
LH: loop header
LB: loop body
LE: loop exit
PB: predicated region body
PF: predicated region fallthrough
CT: control target
= control target key end

     0   :  { %s30_s8 = smov 4   ;;  %vm7_vm0 = vcmask 31744   ;;  %vm13_vm1 = vcmask 97344   ;;  %vm19_vm2 = vcmask 64544   ;;  %s47_s0 = inlined_call_operand.vmem [shape: f32[3,4], index: 0, kind: input, shape index: {}]   ;;  %s48_s1 = inlined_call_operand.vmem [shape: f32[1,12], index: 1, kind: output, shape index: {}]  }
   0x1   :  { %v4_v0 = vld [vmem:[%s47_s0] sm:$0xf]  ;;  %s29_s0 = smov 8  }
   0x2   :  { %5 = vst [vmem:[#allocation1] sm:$0xf] %v4_v0 }
   0x9   :  { %v10_v1 = vld [vmem:[#allocation1 + $0x2] sm:$0x1]   ;;  %v16_v2 = vld [vmem:[#allocation1 + $0x1] sm:$0x1]   ;;  %v6_v3 = vld [vmem:[#allocation1] sm:$0x1]  }
   0xa   :  { %11 = vrot.lane.b32.xlu0 %v10_v1, %s29_s0  ;;  %8 = vst.msk [vmem:[#allocation0] sm:$0x1] %vm7_vm0, %v6_v3  }
  0x12   :  { %17 = vrot.lane.b32.xlu0 %v16_v2, %s30_s8 }
  0x7c   :  { %v12_v4 = vpop.permute.xlu0 %11  }
  0x7d   :  { %14 = vst.msk [vmem:[#allocation0] sm:$0x1] %vm13_vm1, %v12_v4  }
  0x84   :  { %v18_v5 = vpop.permute.xlu0 %17  }
  0x85   :  { %20 = vst.msk [vmem:[#allocation0] sm:$0x1] %vm19_vm2, %v18_v5  }
  0x8c   :  { %v23_v6 = vld [vmem:[#allocation0] sm:$0x1] }
  0x8d   :  { %26 = vst [vmem:[%s48_s1] sm:$0x1] %v23_v6 }

// kernel: mbstftd_forward.21
= control target key start
LH: loop header
LB: loop body
LE: loop exit
PB: predicated region body
PF: predicated region fallthrough
CT: control target
= control target key end

     0   :  { %vm152_vm0 = vcmask 1045504   ;;  %vm142_vm1 = vcmask 228352   ;;  %vm23_vm2 = vcmask 97280   ;;  %vm236_vm3 = vcmask 93184   ;;  %s452_s1 = inlined_call_operand.vmem [shape: bf16[156,12], index: 1, kind: input, shape index: {}]   ;;  %s453_s0 = inlined_call_operand.vmem [shape: bf16[40,156], index: 0, kind: input, shape index: {}]   ;;  %s454_s2 = inlined_call_operand.vmem [shape: f32[1,12], index: 2, kind: input, shape index: {}]   ;;  %s455_s3 = inlined_call_operand.vmem [shape: bf16[40,12], index: 3, kind: output, shape index: {}]  }
   0x1   :  { %v316_v0 = vld [vmem:[%s452_s1 + $0x38] sm:$0xff]  ;;  %v300_v1 = vld [vmem:[%s452_s1 + $0x48] sm:$0xf]  ;;  %v318_v2 = vld [vmem:[%s452_s1 + $0x48] sm:$0x30] }
   0x2   :  { %v301_v3 = vor.u32 %v318_v2, %v300_v1  ;;  %156 = vmatpush.bf16.msra.mxu0 %v316_v0  ;;  %319 = vmatpush.bf16.msra.mxu2 %v316_v0  ;;  %v315_v4 = vld [vmem:[%s452_s1 + $0x30] sm:$0xff]  ;;  %v317_v6 = vld [vmem:[%s452_s1 + $0x40] sm:$0xff]  ;;  %v250_v8 = vld [vmem:[%s453_s0 + $0x8] sm:$0xf0] }
   0x3   :  { %320 = vmatpush.bf16.msra.mxu3 %v316_v0  ;;  %v305_v7 = vld [vmem:[%s453_s0 + $0x4] sm:$0xf]  ;;  %v314_v9 = vld [vmem:[%s452_s1 + $0x28] sm:$0xff]  ;;  %v312_v12 = vld [vmem:[%s452_s1 + $0x18] sm:$0xff] }
   0x4   :  { %v154_v5 = vsel %vm152_vm0, %v301_v3, 0  ;;  %v253_v10 = vor.u32 %v305_v7, %v250_v8  ;;  %v313_v11 = vld [vmem:[%s452_s1 + $0x20] sm:$0xff]  ;;  %v311_v13 = vld [vmem:[%s452_s1 + $0x10] sm:$0xff]  ;;  %v258_v15 = vld [vmem:[%s453_s0 + $0x18] sm:$0xf0] }
   0x5   :  { %185 = vmatpush.bf16.msra.mxu1 %v154_v5  ;;  %v307_v14 = vld [vmem:[%s453_s0 + $0x14] sm:$0xf]  ;;  %v310_v16 = vld [vmem:[%s452_s1 + $0x8] sm:$0xff]  ;;  %v38_v18 = vld [vmem:[%s453_s0 + $0x20] sm:$0xff] }
   0x6   :  { %157 = vmatpush.bf16.msra.mxu0 %v315_v4  ;;  %321 = vmatpush.bf16.msra.mxu2 %v315_v4  ;;  %v261_v17 = vor.u32 %v307_v14, %v258_v15  ;;  %v309_v19 = vld [vmem:[%s452_s1] sm:$0xff]  ;;  %v306_v21 = vld [vmem:[%s453_s0 + $0x4] sm:$0xf0]  ;;  %v256_v22 = vld [vmem:[%s453_s0 + $0x10] sm:$0xf]  ;;  %v72_v24 = vunpack.c.l.b16 %v38_v18  ;;  %v73_v28 = vunpack.c.h.b16 %v38_v18 }
   0x7   :  { %322 = vmatpush.bf16.msra.mxu3 %v315_v4  ;;  %v248_v20 = vld [vmem:[%s453_s0] sm:$0xf]  ;;  %v308_v23 = vld [vmem:[%s453_s0 + $0x14] sm:$0xf0] }
   0x8   :  { %v249_v25 = vor.u32 %v306_v21, %v248_v20  ;;  %v257_v26 = vor.u32 %v308_v23, %v256_v22  ;;  %v78_v27 = vpack.c.b16 %v72_v24, %v72_v24  ;;  %v79_v29 = vpack.c.b16 %v73_v28, %v73_v28  ;;  %v335_v30 = vld [vmem:[%s454_s2] ss:$0 sm:$0xff] }
   0x9   :  { %186 = vmatpush.bf16.msra.mxu1 %v317_v6  ;;  %24 = vst.msk [vmem:[#allocation2] sm:$0xff] %vm23_vm2, %v335_v30 }
   0xa   :  { %158 = vmatpush.bf16.msra.mxu0 %v314_v9  ;;  %323 = vmatpush.bf16.msra.mxu2 %v314_v9  ;;  %25 = vst.msk [vmem:[#allocation2 + $0x8] sm:$0xff] %vm23_vm2, %v335_v30 }
   0xb   :  { %324 = vmatpush.bf16.msra.mxu3 %v314_v9  ;;  %26 = vst.msk [vmem:[#allocation2 + $0x10] sm:$0xff] %vm23_vm2, %v335_v30 }
   0xc   :  { %302 = vmatmul.msk.bf16.vlgmr.msra.gmra.mxu1 %vm142_vm1, %v253_v10  ;;  %27 = vst.msk [vmem:[#allocation2 + $0x18] sm:$0xff] %vm23_vm2, %v335_v30 }
   0xd   :  { %28 = vst.msk [vmem:[#allocation2 + $0x20] sm:$0xff] %vm23_vm2, %v335_v30 }
   0xe   :  { %159 = vmatpush.bf16.msra.mxu0 %v313_v11  ;;  %325 = vmatpush.bf16.msra.mxu2 %v313_v11 }
   0xf   :  { %326 = vmatpush.bf16.msra.mxu3 %v313_v11 }
  0x10   :  { %v29_v34 = vld [vmem:[#allocation2] sm:$0xff] }
  0x11   :  { %v30_v43 = vld [vmem:[#allocation2 + $0x8] sm:$0xff] }
  0x12   :  { %160 = vmatpush.bf16.msra.mxu0 %v312_v12  ;;  %327 = vmatpush.bf16.msra.mxu2 %v312_v12  ;;  %v31_v39 = vld [vmem:[#allocation2 + $0x10] sm:$0xff] }
  0x13   :  { %328 = vmatpush.bf16.msra.mxu3 %v312_v12  ;;  %v32_v54 = vld [vmem:[#allocation2 + $0x18] sm:$0xff] }
  0x14   :  { %v33_v47 = vld [vmem:[#allocation2 + $0x20] sm:$0xff] }
  0x16   :  { %161 = vmatpush.bf16.msra.mxu0 %v311_v13  ;;  %329 = vmatpush.bf16.msra.mxu2 %v311_v13 }
  0x17   :  { %330 = vmatpush.bf16.msra.mxu3 %v311_v13 }
  0x1a   :  { %162 = vmatpush.bf16.msra.mxu0 %v310_v16  ;;  %331 = vmatpush.bf16.msra.mxu2 %v310_v16 }
  0x1b   :  { %332 = vmatpush.bf16.msra.mxu3 %v310_v16 }
  0x1c   :  { %303 = vmatmul.msk.bf16.gmra.mxu1 %vm142_vm1, %v261_v17 }
  0x1e   :  { %163 = vmatpush.bf16.msra.mxu0 %v309_v19  ;;  %333 = vmatpush.bf16.msra.mxu2 %v309_v19 }
  0x1f   :  { %334 = vmatpush.bf16.msra.mxu3 %v309_v19 }
  0x21   :  { %164 = vmatmul.bf16.vlgmr.msra.gmra.mxu0 %v249_v25  ;;  %169 = vmatmul.bf16.vlgmr.msra.gmra.mxu2 %v257_v26 }
  0x22   :  { %174 = vmatmul.bf16.vlgmr.msra.gmra.mxu3 %v78_v27 }
  0x2c   :  { %304 = vmatmul.msk.bf16.gmra.mxu1 %vm142_vm1, %v79_v29 }
  0x89   :  { %v188_v31 = vpop.f32.mrf.mxu1 }
  0x91   :  { %v190_v32 = vpop.f32.mrf.mxu1 }
  0x99   :  { %v193_v33 = vpop.f32.mrf.mxu1 }
  0x9e   :  { %v165_v35 = vpop.f32.mrf.mxu0 }
  0x9f   :  { %v189_v36 = vadd.f32 %v188_v31, %v165_v35 }
  0xa1   :  { %v195_v37 = vpop.f32.mrf.mxu1  ;;  %v202_v38 = vadd.f32 %v189_v36, %v29_v34 }
  0xa3   :  { %208 = vst.msk [vmem:[#allocation2] sm:$0xff] %vm23_vm2, %v202_v38 }
  0xa4   :  { %v170_v40 = vpop.f32.mrf.mxu2 }
  0xa5   :  { %v194_v41 = vadd.f32 %v193_v33, %v170_v40  ;;  %v175_v42 = vpop.f32.mrf.mxu3 }
  0xa6   :  { %v167_v44 = vpop.f32.mrf.mxu0 }
  0xa7   :  { %v204_v45 = vadd.f32 %v194_v41, %v31_v39  ;;  %v191_v46 = vadd.f32 %v190_v32, %v167_v44 }
  0xa9   :  { %v198_v48 = vpop.f32.mrf.mxu1  ;;  %210 = vst.msk [vmem:[#allocation2 + $0x10] sm:$0xff] %vm23_vm2, %v204_v45  ;;  %v203_v49 = vadd.f32 %v191_v46, %v30_v43 }
  0xaa   :  { %v199_v50 = vadd.f32 %v198_v48, %v175_v42  ;;  %v216_v51 = vld [vmem:[#allocation2] sm:$0xff] }
  0xab   :  { %v221_v52 = vmul.f32 0.1, %v216_v51  ;;  %209 = vst.msk [vmem:[#allocation2 + $0x8] sm:$0xff] %vm23_vm2, %v203_v49 }
  0xac   :  { %v206_v53 = vadd.f32 %v199_v50, %v33_v47  ;;  %v172_v55 = vpop.f32.mrf.mxu2 }
  0xad   :  { %v226_v56 = vmax.f32 %v216_v51, %v221_v52  ;;  %v196_v57 = vadd.f32 %v195_v37, %v172_v55  ;;  %v177_v58 = vpop.f32.mrf.mxu3 }
  0xae   :  { %212 = vst.msk [vmem:[#allocation2 + $0x20] sm:$0xff] %vm23_vm2, %v206_v53 }
  0xaf   :  { %v231_v59 = vpack.c.bf16 %v226_v56, %v226_v56  ;;  %v205_v60 = vadd.f32 %v196_v57, %v32_v54 }
  0xb0   :  { %v218_v61 = vld [vmem:[#allocation2 + $0x10] sm:$0xff] }
  0xb1   :  { %v200_v62 = vpop.f32.mrf.mxu1  ;;  %237 = vst.msk [vmem:[%s455_s3] sm:$0xf] %vm236_vm3, %v231_v59  ;;  %v223_v63 = vmul.f32 0.1, %v218_v61 }
  0xb2   :  { %v217_v0 = vld [vmem:[#allocation2 + $0x8] sm:$0xff]  ;;  %211 = vst.msk [vmem:[#allocation2 + $0x18] sm:$0xff] %vm23_vm2, %v205_v60 }
  0xb3   :  { %v228_v1 = vmax.f32 %v218_v61, %v223_v63  ;;  %v222_v2 = vmul.f32 0.1, %v217_v0 }
  0xb5   :  { %v220_v3 = vld [vmem:[#allocation2 + $0x20] sm:$0xff]  ;;  %v233_v4 = vpack.c.bf16 %v228_v1, %v228_v1  ;;  %v227_v5 = vmax.f32 %v217_v0, %v222_v2 }
  0xb6   :  { %v225_v6 = vmul.f32 0.1, %v220_v3 }
  0xb7   :  { %239 = vst.msk [vmem:[%s455_s3 + $0x8] sm:$0xf] %vm236_vm3, %v233_v4  ;;  %v232_v7 = vpack.c.bf16 %v227_v5, %v227_v5 }
  0xb8   :  { %v230_v8 = vmax.f32 %v220_v3, %v225_v6 }
  0xb9   :  { %238 = vst.msk [vmem:[%s455_s3 + $0x4] sm:$0xf] %vm236_vm3, %v232_v7  ;;  %v219_v10 = vld [vmem:[#allocation2 + $0x18] sm:$0xff] }
  0xba   :  { %v235_v9 = vpack.c.bf16 %v230_v8, %v230_v8  ;;  %v224_v11 = vmul.f32 0.1, %v219_v10 }
  0xbc   :  { %241 = vst.msk [vmem:[%s455_s3 + $0x10] sm:$0xf] %vm236_vm3, %v235_v9  ;;  %v229_v12 = vmax.f32 %v219_v10, %v224_v11 }
  0xbe   :  { %v234_v13 = vpack.c.bf16 %v229_v12, %v229_v12 }
  0xc0   :  { %240 = vst.msk [vmem:[%s455_s3 + $0xc] sm:$0xf] %vm236_vm3, %v234_v13 }

// kernel: mbstftd_forward.22
= control target key start
LH: loop header
LB: loop body
LE: loop exit
PB: predicated region body
PF: predicated region fallthrough
CT: control target
= control target key end

     0   :  { %vm93_vm0 = vcmask 1045504   ;;  %vm23_vm1 = vcmask 97280   ;;  %vm83_vm2 = vcmask 490496   ;;  %vm154_vm3 = vcmask 93184   ;;  %s283_s1 = inlined_call_operand.vmem [shape: bf16[60,12], index: 1, kind: input, shape index: {}]   ;;  %s284_s2 = inlined_call_operand.vmem [shape: f32[1,12], index: 2, kind: input, shape index: {}]   ;;  %s285_s0 = inlined_call_operand.vmem [shape: bf16[40,60], index: 0, kind: input, shape index: {}]   ;;  %s286_s3 = inlined_call_operand.vmem [shape: bf16[40,12], index: 3, kind: output, shape index: {}]  }
   0x1   :  { %v186_v0 = vld [vmem:[%s283_s1 + $0x18] sm:$0xf]  ;;  %v196_v1 = vld [vmem:[%s283_s1 + $0x18] sm:$0x30]  ;;  %v205_v4 = vld [vmem:[%s284_s2] ss:$0 sm:$0xff] }
   0x2   :  { %v187_v2 = vor.u32 %v196_v1, %v186_v0  ;;  %v195_v5 = vld [vmem:[%s283_s1 + $0x10] sm:$0xff]  ;;  %24 = vst.msk [vmem:[#allocation2] sm:$0xff] %vm23_vm1, %v205_v4  ;;  %v194_v6 = vld [vmem:[%s283_s1 + $0x8] sm:$0xff]  ;;  %v193_v8 = vld [vmem:[%s283_s1] sm:$0xff] }
   0x3   :  { %25 = vst.msk [vmem:[#allocation2 + $0x8] sm:$0xff] %vm23_vm1, %v205_v4  ;;  %v38_v7 = vld [vmem:[%s285_s0 + $0x10] sm:$0xf]  ;;  %v191_v10 = vld [vmem:[%s285_s0] sm:$0xff]  ;;  %v192_v11 = vld [vmem:[%s285_s0 + $0x8] sm:$0xff] }
   0x4   :  { %v95_v3 = vsel %vm93_vm0, %v187_v2, 0  ;;  %26 = vst.msk [vmem:[#allocation2 + $0x10] sm:$0xff] %vm23_vm1, %v205_v4  ;;  %v56_v9 = vunpack.c.l.b16 %v38_v7 }
   0x5   :  { %101 = vmatpush.bf16.msra.mxu0 %v95_v3  ;;  %197 = vmatpush.bf16.msra.mxu1 %v95_v3  ;;  %27 = vst.msk [vmem:[#allocation2 + $0x18] sm:$0xff] %vm23_vm1, %v205_v4 }
   0x6   :  { %198 = vmatpush.bf16.msra.mxu2 %v95_v3  ;;  %28 = vst.msk [vmem:[#allocation2 + $0x20] sm:$0xff] %vm23_vm1, %v205_v4  ;;  %v59_v12 = vpack.c.b16 %v56_v9, %v56_v9 }
   0x9   :  { %102 = vmatpush.bf16.msra.mxu0 %v195_v5  ;;  %199 = vmatpush.bf16.msra.mxu1 %v195_v5  ;;  %v29_v13 = vld [vmem:[#allocation2] sm:$0xff] }
   0xa   :  { %200 = vmatpush.bf16.msra.mxu2 %v195_v5  ;;  %v30_v20 = vld [vmem:[#allocation2 + $0x8] sm:$0xff] }
   0xb   :  { %v31_v14 = vld [vmem:[#allocation2 + $0x10] sm:$0xff] }
   0xc   :  { %v32_v21 = vld [vmem:[#allocation2 + $0x18] sm:$0xff] }
   0xd   :  { %103 = vmatpush.bf16.msra.mxu0 %v194_v6  ;;  %201 = vmatpush.bf16.msra.mxu1 %v194_v6  ;;  %v33_v19 = vld [vmem:[#allocation2 + $0x20] sm:$0xff] }
   0xe   :  { %202 = vmatpush.bf16.msra.mxu2 %v194_v6 }
  0x11   :  { %104 = vmatpush.bf16.msra.mxu0 %v193_v8  ;;  %203 = vmatpush.bf16.msra.mxu1 %v193_v8 }
  0x12   :  { %204 = vmatpush.bf16.msra.mxu2 %v193_v8 }
  0x14   :  { %188 = vmatmul.msk.bf16.vlgmr.msra.gmra.mxu0 %vm83_vm2, %v191_v10  ;;  %189 = vmatmul.msk.bf16.vlgmr.msra.gmra.mxu1 %vm83_vm2, %v192_v11 }
  0x15   :  { %190 = vmatmul.msk.bf16.vlgmr.msra.gmra.mxu2 %vm83_vm2, %v59_v12 }
  0x91   :  { %v106_v15 = vpop.f32.mrf.mxu0  ;;  %v111_v16 = vpop.f32.mrf.mxu1 }
  0x92   :  { %v120_v17 = vadd.f32 %v106_v15, %v29_v13  ;;  %v122_v18 = vadd.f32 %v111_v16, %v31_v14 }
  0x94   :  { %126 = vst.msk [vmem:[#allocation2] sm:$0xff] %vm23_vm1, %v120_v17 }
  0x95   :  { %128 = vst.msk [vmem:[#allocation2 + $0x10] sm:$0xff] %vm23_vm1, %v122_v18 }
  0x98   :  { %v116_v22 = vpop.f32.mrf.mxu2 }
  0x99   :  { %v124_v23 = vadd.f32 %v116_v22, %v33_v19  ;;  %v108_v24 = vpop.f32.mrf.mxu0  ;;  %v113_v25 = vpop.f32.mrf.mxu1 }
  0x9a   :  { %v121_v26 = vadd.f32 %v108_v24, %v30_v20  ;;  %v123_v27 = vadd.f32 %v113_v25, %v32_v21 }
  0x9b   :  { %v134_v28 = vld [vmem:[#allocation2] sm:$0xff]  ;;  %130 = vst.msk [vmem:[#allocation2 + $0x20] sm:$0xff] %vm23_vm1, %v124_v23 }
  0x9c   :  { %v139_v29 = vmul.f32 0.1, %v134_v28  ;;  %v136_v30 = vld [vmem:[#allocation2 + $0x10] sm:$0xff]  ;;  %127 = vst.msk [vmem:[#allocation2 + $0x8] sm:$0xff] %vm23_vm1, %v121_v26 }
  0x9d   :  { %v141_v31 = vmul.f32 0.1, %v136_v30  ;;  %129 = vst.msk [vmem:[#allocation2 + $0x18] sm:$0xff] %vm23_vm1, %v123_v27 }
  0x9e   :  { %v144_v32 = vmax.f32 %v134_v28, %v139_v29 }
  0x9f   :  { %v146_v33 = vmax.f32 %v136_v30, %v141_v31 }
  0xa0   :  { %v149_v34 = vpack.c.bf16 %v144_v32, %v144_v32  ;;  %v118_v35 = vpop.f32.mrf.mxu2 }
  0xa1   :  { %v151_v36 = vpack.c.bf16 %v146_v33, %v146_v33 }
  0xa2   :  { %155 = vst.msk [vmem:[%s286_s3] sm:$0xf] %vm154_vm3, %v149_v34  ;;  %v138_v37 = vld [vmem:[#allocation2 + $0x20] sm:$0xff] }
  0xa3   :  { %157 = vst.msk [vmem:[%s286_s3 + $0x8] sm:$0xf] %vm154_vm3, %v151_v36  ;;  %v143_v38 = vmul.f32 0.1, %v138_v37  ;;  %v135_v39 = vld [vmem:[#allocation2 + $0x8] sm:$0xff] }
  0xa4   :  { %v140_v40 = vmul.f32 0.1, %v135_v39  ;;  %v137_v41 = vld [vmem:[#allocation2 + $0x18] sm:$0xff] }
  0xa5   :  { %v148_v42 = vmax.f32 %v138_v37, %v143_v38  ;;  %v142_v43 = vmul.f32 0.1, %v137_v41 }
  0xa6   :  { %v145_v44 = vmax.f32 %v135_v39, %v140_v40 }
  0xa7   :  { %v153_v45 = vpack.c.bf16 %v148_v42, %v148_v42  ;;  %v147_v46 = vmax.f32 %v137_v41, %v142_v43 }
  0xa8   :  { %v150_v47 = vpack.c.bf16 %v145_v44, %v145_v44 }
  0xa9   :  { %159 = vst.msk [vmem:[%s286_s3 + $0x10] sm:$0xf] %vm154_vm3, %v153_v45  ;;  %v152_v48 = vpack.c.bf16 %v147_v46, %v147_v46 }
  0xaa   :  { %156 = vst.msk [vmem:[%s286_s3 + $0x4] sm:$0xf] %vm154_vm3, %v150_v47 }
  0xab   :  { %158 = vst.msk [vmem:[%s286_s3 + $0xc] sm:$0xf] %vm154_vm3, %v152_v48 }

// kernel: mbstftd_forward.23
= control target key start
LH: loop header
LB: loop body
LE: loop exit
PB: predicated region body
PF: predicated region fallthrough
CT: control target
= control target key end

     0   :  { %vm106_vm0 = vcmask 1041408   ;;  %vm23_vm1 = vcmask 39936   ;;  %vm96_vm2 = vcmask 687104   ;;  %s292_s1 = inlined_call_operand.vmem [shape: bf16[84,5], index: 1, kind: input, shape index: {}]   ;;  %s293_s2 = inlined_call_operand.vmem [shape: f32[1,5], index: 2, kind: input, shape index: {}]   ;;  %s294_s0 = inlined_call_operand.vmem [shape: bf16[40,84], index: 0, kind: input, shape index: {}]   ;;  %s295_s3 = inlined_call_operand.vmem [shape: f32[40,5], index: 3, kind: output, shape index: {}]  }
   0x1   :  { %v49_v0 = vld [vmem:[%s292_s1 + $0x28] sm:$0x3]  ;;  %v211_v3 = vld [vmem:[%s293_s2] ss:$0 sm:$0xff]  ;;  %v197_v6 = vld [vmem:[%s292_s1 + $0x18] sm:$0xff] }
   0x2   :  { %v84_v1 = vunpack.c.l.b16 %v49_v0  ;;  %24 = vst.msk [vmem:[#allocation2] sm:$0xff] %vm23_vm1, %v211_v3  ;;  %v198_v5 = vld [vmem:[%s292_s1 + $0x20] sm:$0xff]  ;;  %v196_v7 = vld [vmem:[%s292_s1 + $0x10] sm:$0xff]  ;;  %v195_v8 = vld [vmem:[%s292_s1 + $0x8] sm:$0xff] }
   0x3   :  { %25 = vst.msk [vmem:[#allocation2 + $0x8] sm:$0xff] %vm23_vm1, %v211_v3  ;;  %v38_v9 = vld [vmem:[%s294_s0 + $0x10] sm:$0xf]  ;;  %v194_v10 = vld [vmem:[%s292_s1] sm:$0xff]  ;;  %v193_v13 = vld [vmem:[%s294_s0 + $0x8] sm:$0xff] }
   0x4   :  { %v90_v2 = vpack.c.b16 %v84_v1, %v84_v1  ;;  %26 = vst.msk [vmem:[#allocation2 + $0x10] sm:$0xff] %vm23_vm1, %v211_v3  ;;  %v59_v11 = vunpack.c.l.b16 %v38_v9  ;;  %v192_v12 = vld [vmem:[%s294_s0] sm:$0xff] }
   0x5   :  { %27 = vst.msk [vmem:[#allocation2 + $0x18] sm:$0xff] %vm23_vm1, %v211_v3 }
   0x6   :  { %v108_v4 = vsel %vm106_vm0, %v90_v2, 0  ;;  %28 = vst.msk [vmem:[#allocation2 + $0x20] sm:$0xff] %vm23_vm1, %v211_v3  ;;  %v62_v14 = vpack.c.b16 %v59_v11, %v59_v11 }
   0x7   :  { %112 = vmatpush.bf16.msra.mxu0 %v108_v4  ;;  %199 = vmatpush.bf16.msra.mxu1 %v108_v4 }
   0x8   :  { %200 = vmatpush.bf16.msra.mxu2 %v108_v4 }
   0x9   :  { %v29_v15 = vld [vmem:[#allocation2] sm:$0xff] }
   0xa   :  { %v30_v22 = vld [vmem:[#allocation2 + $0x8] sm:$0xff] }
   0xb   :  { %113 = vmatpush.bf16.msra.mxu0 %v198_v5  ;;  %201 = vmatpush.bf16.msra.mxu1 %v198_v5  ;;  %v31_v16 = vld [vmem:[#allocation2 + $0x10] sm:$0xff] }
   0xc   :  { %202 = vmatpush.bf16.msra.mxu2 %v198_v5  ;;  %v32_v24 = vld [vmem:[#allocation2 + $0x18] sm:$0xff] }
   0xd   :  { %v33_v21 = vld [vmem:[#allocation2 + $0x20] sm:$0xff] }
   0xf   :  { %114 = vmatpush.bf16.msra.mxu0 %v197_v6  ;;  %203 = vmatpush.bf16.msra.mxu1 %v197_v6 }
  0x10   :  { %204 = vmatpush.bf16.msra.mxu2 %v197_v6 }
  0x13   :  { %115 = vmatpush.bf16.msra.mxu0 %v196_v7  ;;  %205 = vmatpush.bf16.msra.mxu1 %v196_v7 }
  0x14   :  { %206 = vmatpush.bf16.msra.mxu2 %v196_v7 }
  0x17   :  { %116 = vmatpush.bf16.msra.mxu0 %v195_v8  ;;  %207 = vmatpush.bf16.msra.mxu1 %v195_v8 }
  0x18   :  { %208 = vmatpush.bf16.msra.mxu2 %v195_v8 }
  0x1b   :  { %117 = vmatpush.bf16.msra.mxu0 %v194_v10  ;;  %209 = vmatpush.bf16.msra.mxu1 %v194_v10 }
  0x1c   :  { %210 = vmatpush.bf16.msra.mxu2 %v194_v10 }
  0x1e   :  { %189 = vmatmul.msk.bf16.vlgmr.msra.gmra.mxu0 %vm96_vm2, %v192_v12  ;;  %190 = vmatmul.msk.bf16.vlgmr.msra.gmra.mxu1 %vm96_vm2, %v193_v13 }
  0x1f   :  { %191 = vmatmul.msk.bf16.vlgmr.msra.gmra.mxu2 %vm96_vm2, %v62_v14 }
  0x9b   :  { %v119_v17 = vpop.f32.mrf.mxu0  ;;  %v124_v18 = vpop.f32.mrf.mxu1 }
  0x9c   :  { %v133_v19 = vadd.f32 %v119_v17, %v29_v15  ;;  %v135_v20 = vadd.f32 %v124_v18, %v31_v16 }
  0x9e   :  { %139 = vst.msk [vmem:[#allocation2] sm:$0xff] %vm23_vm1, %v133_v19 }
  0x9f   :  { %141 = vst.msk [vmem:[#allocation2 + $0x10] sm:$0xff] %vm23_vm1, %v135_v20 }
  0xa2   :  { %v129_v23 = vpop.f32.mrf.mxu2 }
  0xa3   :  { %v137_v25 = vadd.f32 %v129_v23, %v33_v21  ;;  %v121_v26 = vpop.f32.mrf.mxu0  ;;  %v126_v27 = vpop.f32.mrf.mxu1 }
  0xa4   :  { %v134_v28 = vadd.f32 %v121_v26, %v30_v22  ;;  %v136_v30 = vadd.f32 %v126_v27, %v32_v24 }
  0xa5   :  { %v147_v29 = vld [vmem:[#allocation2] sm:$0xff]  ;;  %143 = vst.msk [vmem:[#allocation2 + $0x20] sm:$0xff] %vm23_vm1, %v137_v25 }
  0xa6   :  { %152 = vst.msk [vmem:[%s295_s3] sm:$0xff] %vm23_vm1, %v147_v29  ;;  %v149_v31 = vld [vmem:[#allocation2 + $0x10] sm:$0xff] }
  0xa7   :  { %154 = vst.msk [vmem:[%s295_s3 + $0x10] sm:$0xff] %vm23_vm1, %v149_v31 }
  0xa8   :  { %140 = vst.msk [vmem:[#allocation2 + $0x8] sm:$0xff] %vm23_vm1, %v134_v28 }
  0xa9   :  { %142 = vst.msk [vmem:[#allocation2 + $0x18] sm:$0xff] %vm23_vm1, %v136_v30 }
  0xaa   :  { %v131_v32 = vpop.f32.mrf.mxu2 }
  0xac   :  { %v151_v33 = vld [vmem:[#allocation2 + $0x20] sm:$0xff] }
  0xad   :  { %156 = vst.msk [vmem:[%s295_s3 + $0x20] sm:$0xff] %vm23_vm1, %v151_v33 }
  0xaf   :  { %v148_v34 = vld [vmem:[#allocation2 + $0x8] sm:$0xff] }
  0xb0   :  { %153 = vst.msk [vmem:[%s295_s3 + $0x8] sm:$0xff] %vm23_vm1, %v148_v34  ;;  %v150_v35 = vld [vmem:[#allocation2 + $0x18] sm:$0xff] }
  0xb1   :  { %155 = vst.msk [vmem:[%s295_s3 + $0x18] sm:$0xff] %vm23_vm1, %v150_v35 }

</bundles_post_ra>
